<compile_context>
chip_gen: v6e
topology: v6e:2x2x1
jax: 0.10.0
libtpu: 0.0.40
codegen_flags: <defaults>
</compile_context>

<pallas_src>
import functools

import jax
import jax.numpy as jnp
from jax.experimental import pallas as pl
from jax.experimental.pallas import tpu as pltpu

LANE = 128
BN_EPS = 1e-5


# ----------------------------- small helpers ---------------------------------

def _round_up(x, m):
    return ((x + m - 1) // m) * m


def _pad_last(a, to):
    c = a.shape[-1]
    if c == to:
        return a
    return jnp.pad(a, [(0, 0)] * (a.ndim - 1) + [(0, to - c)])


def _nbytes(shape, dtype):
    n = 1
    for s in shape:
        n *= int(s)
    return n * jnp.dtype(dtype).itemsize


def _cparams(est_bytes, semantics):
    # Explicit scoped-VMEM budget: ~2.5x the live blocks (double buffering + headroom),
    # floor at the default-ish 32 MiB, cap well under v7x's 64 MiB physical VMEM.
    limit = int(min(max(2.5 * est_bytes, 32 << 20), 56 << 20))
    return pltpu.CompilerParams(dimension_semantics=semantics,
                                vmem_limit_bytes=limit)


# ----------------------------- Pallas kernels --------------------------------

def _plane_conv3x3_kernel(*refs, H, W, epilogue):
    """Fused stride-1 3x3 conv on one batch element (whole plane resident in VMEM).

    y = EPILOGUE( conv3x3( relu(x * s_in + b_in) ) )
      epilogue == "bnrelu"       : EPILOGUE(a) = relu(a * s_out + b_out)
      epilogue == "add"          : EPILOGUE(a) = a + res
      epilogue == "add_shortcut" : EPILOGUE(a) = a + relu(res*s_sc + b_sc) @ w_sc  (fused 1x1)
    """
    if epilogue == "bnrelu":
        x_ref, sin_ref, bin_ref, w_ref, sout_ref, bout_ref, o_ref, pad_ref = refs
    elif epilogue == "add":
        x_ref, sin_ref, bin_ref, w_ref, res_ref, o_ref, pad_ref = refs
    else:  # "add_shortcut"
        (x_ref, sin_ref, bin_ref, w_ref, res_ref, ssc_ref, bsc_ref, wsc_ref,
         o_ref, pad_ref) = refs

    cin = x_ref.shape[-1]
    cout = o_ref.shape[-1]

    # Input affine+ReLU written into a zero-initialised VMEM scratch so the spatial
    # zero padding is applied AFTER the activation (== Conv2d(pad=1) on relu(bn(x))).
    pad_ref[...] = jnp.zeros_like(pad_ref)
    pre = jnp.maximum(x_ref[0] * sin_ref[0] + bin_ref[0], 0.0)     # (H, W, cin) f32
    pad_ref[1:H + 1, 1:W + 1, :] = pre

    # 3x3 conv as 9 shifted (H*W, Cin) @ (Cin, Cout) MXU matmuls, bf16 in / f32 accumulate.
    acc = None
    for dh in range(3):
        for dw in range(3):
            win = pad_ref[dh:dh + H, dw:dw + W, :]
            win = win.reshape(H * W, cin).astype(jnp.bfloat16)
            part = jnp.dot(win, w_ref[3 * dh + dw],
                           preferred_element_type=jnp.float32)
            acc = part if acc is None else acc + part

    if epilogue == "bnrelu":
        out = jnp.maximum(acc * sout_ref[0] + bout_ref[0], 0.0)
    else:
        if epilogue == "add_shortcut":
            cres = res_ref.shape[-1]
            r = jnp.maximum(res_ref[0] * ssc_ref[0] + bsc_ref[0], 0.0)
            r = r.reshape(H * W, cres).astype(jnp.bfloat16)
            res = jnp.dot(r, wsc_ref[...], preferred_element_type=jnp.float32)
        else:
            res = res_ref[0].reshape(H * W, cout)
        out = acc + res

    o_ref[0] = out.reshape(H, W, cout)


def _matmul_bnrelu_kernel(a_ref, b_ref, s_ref, t_ref, o_ref):
    acc = jnp.dot(a_ref[...], b_ref[...], preferred_element_type=jnp.float32)
    o_ref[...] = jnp.maximum(acc * s_ref[...] + t_ref[...], 0.0)


def _bnrelu_kernel(x_ref, s_ref, b_ref, o_ref):
    o_ref[...] = jnp.maximum(x_ref[...] * s_ref[...] + b_ref[...], 0.0)


# ----------------------------- kernel wrappers --------------------------------

def plane_conv3x3(x, w9, s_in, b_in, *, epilogue, s_out=None, b_out=None,
                  res=None, s_sc=None, b_sc=None, w_sc=None):
    """Fused stride-1 3x3 conv.  x: (N, H, W, Cin_p) f32, w9: (9, Cin_p, Cout_p) bf16."""
    n, h, wd, cin = x.shape
    cout = w9.shape[-1]
    assert h % 8 == 0 and wd % 8 == 0, "plane conv kernel expects H, W multiples of 8"

    blk = lambda i: (i, 0, 0, 0)
    x_spec = pl.BlockSpec((1, h, wd, cin), blk)
    vec_in = pl.BlockSpec((1, 1, cin), lambda i: (0, 0, 0))
    vec_out = pl.BlockSpec((1, 1, cout), lambda i: (0, 0, 0))
    w_spec = pl.BlockSpec((9, cin, cout), lambda i: (0, 0, 0))

    args = [x, s_in, b_in, w9]
    specs = [x_spec, vec_in, vec_in, w_spec]
    est = (_nbytes((1, h, wd, cin), jnp.float32)
           + _nbytes((9, cin, cout), jnp.bfloat16)
           + _nbytes((1, h, wd, cout), jnp.float32)
           + _nbytes((h + 2, wd + 2, cin), jnp.float32))

    if epilogue == "bnrelu":
        args += [s_out, b_out]
        specs += [vec_out, vec_out]
    else:
        cres = res.shape[-1]
        args += [res]
        specs += [pl.BlockSpec((1, h, wd, cres), blk)]
        est += _nbytes((1, h, wd, cres), jnp.float32)
        if epilogue == "add_shortcut":
            vec_res = pl.BlockSpec((1, 1, cres), lambda i: (0, 0, 0))
            wsc_spec = pl.BlockSpec((cres, cout), lambda i: (0, 0))
            args += [s_sc, b_sc, w_sc]
            specs += [vec_res, vec_res, wsc_spec]
            est += _nbytes((cres, cout), jnp.bfloat16)

    kern = functools.partial(_plane_conv3x3_kernel, H=h, W=wd, epilogue=epilogue)
    return pl.pallas_call(
        kern,
        out_shape=jax.ShapeDtypeStruct((n, h, wd, cout), jnp.float32),
        grid=(n,),
        in_specs=specs,
        out_specs=pl.BlockSpec((1, h, wd, cout), blk),
        scratch_shapes=[pltpu.VMEM((h + 2, wd + 2, cin), jnp.float32)],
        compiler_params=_cparams(est, ("parallel",)),
    )(*args)


def matmul_bnrelu(a, bmat, s_out, b_out):
    """relu((A @ B) * s + b).  A: (M, K) bf16, B: (K, Cout_p) bf16, K kept whole."""
    m, k = a.shape
    nout = bmat.shape[1]
    tm = 512 if m >= 512 else _round_up(m, 8)
    mp = _round_up(m, tm)
    if mp != m:
        a = jnp.pad(a, ((0, mp - m), (0, 0)))   # rare path (strided conv only)
    est = (_nbytes((tm, k), jnp.bfloat16) + _nbytes((k, nout), jnp.bfloat16)
           + _nbytes((tm, nout), jnp.float32))
    out = pl.pallas_call(
        _matmul_bnrelu_kernel,
        out_shape=jax.ShapeDtypeStruct((mp, nout), jnp.float32),
        grid=(mp // tm,),
        in_specs=[pl.BlockSpec((tm, k), lambda i: (i, 0)),
                  pl.BlockSpec((k, nout), lambda i: (0, 0)),
                  pl.BlockSpec((1, nout), lambda i: (0, 0)),
                  pl.BlockSpec((1, nout), lambda i: (0, 0))],
        out_specs=pl.BlockSpec((tm, nout), lambda i: (i, 0)),
        compiler_params=_cparams(est, ("parallel",)),
    )(a, bmat, s_out, b_out)
    return out[:m]


def bnrelu(x, s, b):
    """relu(x * s + b) over (N, H, W, Cp); only used ahead of the strided-conv fallback."""
    n, h, wd, c = x.shape
    m = n * h * wd
    assert m % 8 == 0
    x2 = x.reshape(m, c)
    tm = next(t for t in (1024, 512, 256, 128, 64, 32, 16, 8) if m % t == 0)
    est = 2 * _nbytes((tm, c), jnp.float32)
    out = pl.pallas_call(
        _bnrelu_kernel,
        out_shape=jax.ShapeDtypeStruct((m, c), jnp.float32),
        grid=(m // tm,),
        in_specs=[pl.BlockSpec((tm, c), lambda i: (i, 0)),
                  pl.BlockSpec((1, c), lambda i: (0, 0)),
                  pl.BlockSpec((1, c), lambda i: (0, 0))],
        out_specs=pl.BlockSpec((tm, c), lambda i: (i, 0)),
        compiler_params=_cparams(est, ("parallel",)),
    )(x2, s.reshape(1, c), b.reshape(1, c))
    return out.reshape(n, h, wd, c)


# ----------------------------- plain-JAX glue ---------------------------------

def _im2col_3x3(pre, stride):
    """9-tap patch matrix for the (rare) strided conv; columns ordered (dh, dw, ci)."""
    n, h, wd, c = pre.shape
    xp = jnp.pad(pre, ((0, 0), (1, 1), (1, 1), (0, 0)))
    ho = (h - 1) // stride + 1
    wo = (wd - 1) // stride + 1
    cols = []
    for dh in range(3):
        for dw in range(3):
            cols.append(xp[:, dh:dh + stride * (ho - 1) + 1:stride,
                           dw:dw + stride * (wo - 1) + 1:stride, :])
    a = jnp.concatenate(cols, axis=-1).reshape(n * ho * wo, 9 * c)
    return a.astype(jnp.bfloat16), ho, wo


def _prep_w3x3(w_oihw, cin_p, cout_p):
    """(Cout, Cin, 3, 3) -> (9, Cin_p, Cout_p) bf16, tap-major (dh, dw), zero-padded."""
    cout, cin = w_oihw.shape[0], w_oihw.shape[1]
    w = jnp.transpose(w_oihw, (2, 3, 1, 0)).reshape(9, cin, cout)
    w = jnp.pad(w, ((0, 0), (0, cin_p - cin), (0, cout_p - cout)))
    return w.astype(jnp.bfloat16)


def _bn_affine(gamma, beta, rm, rv, cp):
    s = gamma / jnp.sqrt(rv + BN_EPS)
    b = beta - rm * s
    return (_pad_last(s, cp).reshape(1, 1, cp), _pad_last(b, cp).reshape(1, 1, cp))


# ----------------------------- BasicBlock / ConvGroup -------------------------

def basic_block_forward(p, x, stride, equal_in_out):
    """x: (N, H, W, cin_p) NHWC, channels zero-padded to a multiple of 128."""
    n, _, _, cin_p = x.shape
    cout = p["conv1"].shape[0]
    cin = p["conv1"].shape[1]
    cout_p = _round_up(cout, LANE)

    s1, b1 = _bn_affine(p["gamma1"], p["beta1"], p["rm1"], p["rv1"], cin_p)
    s2, b2 = _bn_affine(p["gamma2"], p["beta2"], p["rm2"], p["rv2"], cout_p)
    w1 = _prep_w3x3(p["conv1"], cin_p, cout_p)
    w2 = _prep_w3x3(p["conv2"], cout_p, cout_p)

    pre = None
    if stride == 1:
        # conv1: bn1+relu fused on the input, bn2+relu fused on the output -> one kernel.
        h1 = plane_conv3x3(x, w1, s1, b1, epilogue="bnrelu", s_out=s2, b_out=b2)
    else:
        # Strided conv1 (first block of a strided group only): materialize pre once,
        # small plain-JAX im2col, matmul kernel with fused bn2+relu epilogue.
        # TODO(synk): the strided 3x3 conv is not yet a single fused plane kernel.
        pre = bnrelu(x, s1, b1)
        a, ho, wo = _im2col_3x3(pre, stride)
        h1 = matmul_bnrelu(a, w1.reshape(9 * cin_p, cout_p),
                           s2.reshape(1, cout_p), b2.reshape(1, cout_p))
        h1 = h1.reshape(n, ho, wo, cout_p)

    ident_s = jnp.ones((1, 1, cout_p), jnp.float32)
    ident_b = jnp.zeros((1, 1, cout_p), jnp.float32)

    if equal_in_out:
        # conv2 with the residual add (x itself) fused into its epilogue.
        y = plane_conv3x3(h1, w2, ident_s, ident_b, epilogue="add", res=x)
    else:
        # conv2 with the 1x1 shortcut conv AND the residual add fused into its epilogue.
        wsc = p["shortcut"][:, :, 0, 0].T                                   # (cin, cout)
        wsc = jnp.pad(wsc, ((0, cin_p - cin), (0, cout_p - cout))).astype(jnp.bfloat16)
        if stride == 1:
            res_in, ssc, bsc = x, s1, b1          # shortcut = conv1x1(relu(bn1(x)))
        else:
            res_in = pre[:, ::stride, ::stride, :]  # already activated
            ssc = jnp.ones((1, 1, cin_p), jnp.float32)
            bsc = jnp.zeros((1, 1, cin_p), jnp.float32)
        y = plane_conv3x3(h1, w2, ident_s, ident_b, epilogue="add_shortcut",
                          res=res_in, s_sc=ssc, b_sc=bsc, w_sc=wsc)
    return y


def conv_group_forward(params_list, x_nchw, in_planes, out_planes, stride):
    """Matches ConvGroup.forward: input/output NCHW."""
    cin_p = _round_up(in_planes, LANE)
    x = jnp.transpose(x_nchw, (0, 2, 3, 1))      # NCHW -> NHWC
    x = _pad_last(x, cin_p)                      # lane-dense channel padding (zeros)
    for i, p in enumerate(params_list):
        blk_in = in_planes if i == 0 else out_planes
        blk_stride = stride if i == 0 else 1
        x = basic_block_forward(p, x, blk_stride, blk_in == out_planes)
    x = x[..., :out_planes]
    return jnp.transpose(x, (0, 3, 1, 2))        # NHWC -> NCHW


# ----------------------------- parameter init ---------------------------------

def init_basic_block(key, in_planes, out_planes):
    ks = jax.random.split(key, 11)
    kaiming1 = (2.0 / (3 * 3 * out_planes)) ** 0.5
    p = {
        "gamma1": 1.0 + 0.1 * jax.random.normal(ks[0], (in_planes,), jnp.float32),
        "beta1": 0.1 * jax.random.normal(ks[1], (in_planes,), jnp.float32),
        "rm1": 0.1 * jax.random.normal(ks[2], (in_planes,), jnp.float32),
        "rv1": 1.0 + 0.1 * jnp.abs(jax.random.normal(ks[3], (in_planes,), jnp.float32)),
        "conv1": kaiming1 * jax.random.normal(ks[4], (out_planes, in_planes, 3, 3), jnp.float32),
        "gamma2": 1.0 + 0.1 * jax.random.normal(ks[5], (out_planes,), jnp.float32),
        "beta2": 0.1 * jax.random.normal(ks[6], (out_planes,), jnp.float32),
        "rm2": 0.1 * jax.random.normal(ks[7], (out_planes,), jnp.float32),
        "rv2": 1.0 + 0.1 * jnp.abs(jax.random.normal(ks[8], (out_planes,), jnp.float32)),
        "conv2": kaiming1 * jax.random.normal(ks[9], (out_planes, out_planes, 3, 3), jnp.float32),
    }
    if in_planes != out_planes:
        p["shortcut"] = ((2.0 / out_planes) ** 0.5 *
                         jax.random.normal(ks[10], (out_planes, in_planes, 1, 1), jnp.float32))
    return p


def init_conv_group(key, num_blocks, in_planes, out_planes):
    keys = jax.random.split(key, num_blocks)
    return [init_basic_block(keys[i],
                             in_planes if i == 0 else out_planes,
                             out_planes)
            for i in range(num_blocks)]


# ----------------------------- pure-JAX reference (matched bf16 matmul) -------

def _ref_conv(x, w, stride, pad):
    return jax.lax.conv_general_dilated(
        x.astype(jnp.bfloat16), w.astype(jnp.bfloat16),
        (stride, stride), ((pad, pad), (pad, pad)),
        dimension_numbers=("NCHW", "OIHW", "NCHW"),
        preferred_element_type=jnp.float32)


def _ref_block(p, x, stride, eq):
    s1 = p["gamma1"] / jnp.sqrt(p["rv1"] + BN_EPS)
    b1 = p["beta1"] - p["rm1"] * s1
    pre = jnp.maximum(x * s1[None, :, None, None] + b1[None, :, None, None], 0.0)
    sc = x if eq else pre
    out = _ref_conv(pre, p["conv1"], stride, 1)
    s2 = p["gamma2"] / jnp.sqrt(p["rv2"] + BN_EPS)
    b2 = p["beta2"] - p["rm2"] * s2
    out = jnp.maximum(out * s2[None, :, None, None] + b2[None, :, None, None], 0.0)
    out = _ref_conv(out, p["conv2"], 1, 1)
    resid = sc if eq else _ref_conv(sc, p["shortcut"], stride, 0)
    return out + resid


def _ref_group(params_list, x, in_planes, out_planes, stride):
    for i, p in enumerate(params_list):
        blk_in = in_planes if i == 0 else out_planes
        blk_stride = stride if i == 0 else 1
        x = _ref_block(p, x, blk_stride, blk_in == out_planes)
    return x


# ----------------------------- main -------------------------------------------

if __name__ == "__main__":
    key = jax.random.PRNGKey(0)
    k_x, k_p = jax.random.split(key)

    # ConvGroup(num_blocks=2, in_planes=4, out_planes=8, block=BasicBlock, stride=2)
    num_blocks, in_planes, out_planes, stride = 2, 4, 8, 2
    x = jax.random.normal(k_x, (2, in_planes, 16, 16), jnp.float32)   # NCHW like PyTorch

    params = init_conv_group(k_p, num_blocks, in_planes, out_planes)

    fwd = jax.jit(functools.partial(conv_group_forward, in_planes=in_planes,
                                    out_planes=out_planes, stride=stride))
    y = jax.block_until_ready(fwd(params, x))
    assert y.shape == (2, out_planes, 8, 8), y.shape

    y_ref = _ref_group(params, x, in_planes, out_planes, stride)
    err = float(jnp.max(jnp.abs(y - y_ref)))
    assert err < 2e-2, err

    print("KERNEL_OK")
</pallas_src>

<mosaic_0001>
module attributes {stable_mosaic.version = 11 : i64} {
  func.func @_bnrelu_kernel(%arg0: i32, %arg1: memref<512x128xf32, #tpu.memory_space<vmem>>, %arg2: memref<1x128xf32, #tpu.memory_space<vmem>>, %arg3: memref<1x128xf32, #tpu.memory_space<vmem>>, %arg4: memref<512x128xf32, #tpu.memory_space<vmem>>) attributes {dimension_semantics = [#tpu.dimension_semantics<parallel>], iteration_bounds = array<i64: 1>, scalar_prefetch = 0 : i64, scratch_operands = 0 : i64, tpu.core_type = #tpu.core_type<tc>, window_params = [{transform_indices = @transform_0, window_bounds = array<i64: 512, 128>}, {pipeline_mode = #tpu.pipeline_mode<synchronous>, transform_indices = @transform_1, window_bounds = array<i64: 1, 128>}, {pipeline_mode = #tpu.pipeline_mode<synchronous>, transform_indices = @transform_2, window_bounds = array<i64: 1, 128>}, {transform_indices = @transform_3, window_bounds = array<i64: 512, 128>}]} {
    %c0 = arith.constant 0 : index
    %c0_0 = arith.constant 0 : index
    %0 = vector.load %arg1[%c0, %c0_0] : memref<512x128xf32, #tpu.memory_space<vmem>>, vector<512x128xf32>
    %c0_1 = arith.constant 0 : index
    %c0_2 = arith.constant 0 : index
    %1 = vector.load %arg2[%c0_1, %c0_2] : memref<1x128xf32, #tpu.memory_space<vmem>>, vector<1x128xf32>
    %2 = vector.broadcast %1 : vector<1x128xf32> to vector<512x128xf32>
    %3 = arith.mulf %0, %2 : vector<512x128xf32>
    %c0_3 = arith.constant 0 : index
    %c0_4 = arith.constant 0 : index
    %4 = vector.load %arg3[%c0_3, %c0_4] : memref<1x128xf32, #tpu.memory_space<vmem>>, vector<1x128xf32>
    %5 = vector.broadcast %4 : vector<1x128xf32> to vector<512x128xf32>
    %6 = arith.addf %3, %5 : vector<512x128xf32>
    %cst = arith.constant 0.000000e+00 : f32
    %7 = vector.broadcast %cst : f32 to vector<512x128xf32>
    %8 = arith.maximumf %6, %7 : vector<512x128xf32>
    %c0_5 = arith.constant 0 : index
    %c0_6 = arith.constant 0 : index
    %9 = vector.load %arg4[%c0_5, %c0_6] : memref<512x128xf32, #tpu.memory_space<vmem>>, vector<512x128xf32>
    tpu.vector_store %arg4[%c0_5, %c0_6], %8 {strides = array<i32>} : memref<512x128xf32, #tpu.memory_space<vmem>>, vector<512x128xf32>,
    return
  }
  func.func @transform_0(%arg0: i32) -> (i32, i32) {
    %c0_i32 = arith.constant 0 : i32
    %c0_i32_0 = arith.constant 0 : i32
    return %arg0, %c0_i32 : i32, i32
  }
  func.func @transform_1(%arg0: i32) -> (i32, i32) {
    %c0_i32 = arith.constant 0 : i32
    %c0_i32_0 = arith.constant 0 : i32
    %c0_i32_1 = arith.constant 0 : i32
    return %c0_i32, %c0_i32_0 : i32, i32
  }
  func.func @transform_2(%arg0: i32) -> (i32, i32) {
    %c0_i32 = arith.constant 0 : i32
    %c0_i32_0 = arith.constant 0 : i32
    %c0_i32_1 = arith.constant 0 : i32
    return %c0_i32, %c0_i32_0 : i32, i32
  }
  func.func @transform_3(%arg0: i32) -> (i32, i32) {
    %c0_i32 = arith.constant 0 : i32
    %c0_i32_0 = arith.constant 0 : i32
    return %arg0, %c0_i32 : i32, i32
  }
}

module attributes {stable_mosaic.version = 11 : i64} {
  func.func @_matmul_bnrelu_kernel(%arg0: i32, %arg1: memref<128x1152xbf16, #tpu.memory_space<vmem>>, %arg2: memref<1152x128xbf16, #tpu.memory_space<vmem>>, %arg3: memref<1x128xf32, #tpu.memory_space<vmem>>, %arg4: memref<1x128xf32, #tpu.memory_space<vmem>>, %arg5: memref<128x128xf32, #tpu.memory_space<vmem>>) attributes {dimension_semantics = [#tpu.dimension_semantics<parallel>], iteration_bounds = array<i64: 1>, scalar_prefetch = 0 : i64, scratch_operands = 0 : i64, tpu.core_type = #tpu.core_type<tc>, window_params = [{transform_indices = @transform_0, window_bounds = array<i64: 128, 1152>}, {pipeline_mode = #tpu.pipeline_mode<synchronous>, transform_indices = @transform_1, window_bounds = array<i64: 1152, 128>}, {pipeline_mode = #tpu.pipeline_mode<synchronous>, transform_indices = @transform_2, window_bounds = array<i64: 1, 128>}, {pipeline_mode = #tpu.pipeline_mode<synchronous>, transform_indices = @transform_3, window_bounds = array<i64: 1, 128>}, {transform_indices = @transform_4, window_bounds = array<i64: 128, 128>}]} {
    %c0 = arith.constant 0 : index
    %c0_0 = arith.constant 0 : index
    %0 = vector.load %arg1[%c0, %c0_0] : memref<128x1152xbf16, #tpu.memory_space<vmem>>, vector<128x1152xbf16>
    %c0_1 = arith.constant 0 : index
    %c0_2 = arith.constant 0 : index
    %1 = vector.load %arg2[%c0_1, %c0_2] : memref<1152x128xbf16, #tpu.memory_space<vmem>>, vector<1152x128xbf16>
    %cst = arith.constant dense<0.000000e+00> : vector<128x128xf32>
    %2 = tpu.matmul %0, %1, %cst {dimension_numbers = #tpu.dot_dimension_numbers<[1], [0], [0], [1], [0, 0, 1, 1], [], []>} : vector<128x1152xbf16>, vector<1152x128xbf16>, vector<128x128xf32> -> vector<128x128xf32>
    %c0_3 = arith.constant 0 : index
    %c0_4 = arith.constant 0 : index
    %3 = vector.load %arg3[%c0_3, %c0_4] : memref<1x128xf32, #tpu.memory_space<vmem>>, vector<1x128xf32>
    %4 = vector.broadcast %3 : vector<1x128xf32> to vector<128x128xf32>
    %5 = arith.mulf %2, %4 : vector<128x128xf32>
    %c0_5 = arith.constant 0 : index
    %c0_6 = arith.constant 0 : index
    %6 = vector.load %arg4[%c0_5, %c0_6] : memref<1x128xf32, #tpu.memory_space<vmem>>, vector<1x128xf32>
    %7 = vector.broadcast %6 : vector<1x128xf32> to vector<128x128xf32>
    %8 = arith.addf %5, %7 : vector<128x128xf32>
    %cst_7 = arith.constant 0.000000e+00 : f32
    %9 = vector.broadcast %cst_7 : f32 to vector<128x128xf32>
    %10 = arith.maximumf %8, %9 : vector<128x128xf32>
    %c0_8 = arith.constant 0 : index
    %c0_9 = arith.constant 0 : index
    %11 = vector.load %arg5[%c0_8, %c0_9] : memref<128x128xf32, #tpu.memory_space<vmem>>, vector<128x128xf32>
    tpu.vector_store %arg5[%c0_8, %c0_9], %10 {strides = array<i32>} : memref<128x128xf32, #tpu.memory_space<vmem>>, vector<128x128xf32>,
    return
  }
  func.func @transform_0(%arg0: i32) -> (i32, i32) {
    %c0_i32 = arith.constant 0 : i32
    %c0_i32_0 = arith.constant 0 : i32
    return %arg0, %c0_i32 : i32, i32
  }
  func.func @transform_1(%arg0: i32) -> (i32, i32) {
    %c0_i32 = arith.constant 0 : i32
    %c0_i32_0 = arith.constant 0 : i32
    %c0_i32_1 = arith.constant 0 : i32
    return %c0_i32, %c0_i32_0 : i32, i32
  }
  func.func @transform_2(%arg0: i32) -> (i32, i32) {
    %c0_i32 = arith.constant 0 : i32
    %c0_i32_0 = arith.constant 0 : i32
    %c0_i32_1 = arith.constant 0 : i32
    return %c0_i32, %c0_i32_0 : i32, i32
  }
  func.func @transform_3(%arg0: i32) -> (i32, i32) {
    %c0_i32 = arith.constant 0 : i32
    %c0_i32_0 = arith.constant 0 : i32
    %c0_i32_1 = arith.constant 0 : i32
    return %c0_i32, %c0_i32_0 : i32, i32
  }
  func.func @transform_4(%arg0: i32) -> (i32, i32) {
    %c0_i32 = arith.constant 0 : i32
    %c0_i32_0 = arith.constant 0 : i32
    return %arg0, %c0_i32 : i32, i32
  }
}

module attributes {stable_mosaic.version = 11 : i64} {
  func.func @_plane_conv3x3_kernel(%arg0: i32, %arg1: memref<1x8x8x128xf32, #tpu.memory_space<vmem>>, %arg2: memref<1x1x128xf32, #tpu.memory_space<vmem>>, %arg3: memref<1x1x128xf32, #tpu.memory_space<vmem>>, %arg4: memref<9x128x128xbf16, #tpu.memory_space<vmem>>, %arg5: memref<1x8x8x128xf32, #tpu.memory_space<vmem>>, %arg6: memref<1x1x128xf32, #tpu.memory_space<vmem>>, %arg7: memref<1x1x128xf32, #tpu.memory_space<vmem>>, %arg8: memref<128x128xbf16, #tpu.memory_space<vmem>>, %arg9: memref<1x8x8x128xf32, #tpu.memory_space<vmem>>, %arg10: memref<10x10x128xf32, #tpu.memory_space<vmem>>) attributes {dimension_semantics = [#tpu.dimension_semantics<parallel>], iteration_bounds = array<i64: 2>, scalar_prefetch = 0 : i64, scratch_operands = 1 : i64, tpu.core_type = #tpu.core_type<tc>, window_params = [{transform_indices = @transform_0, window_bounds = array<i64: 1, 8, 8, 128>}, {pipeline_mode = #tpu.pipeline_mode<synchronous>, transform_indices = @transform_1, window_bounds = array<i64: 1, 1, 128>}, {pipeline_mode = #tpu.pipeline_mode<synchronous>, transform_indices = @transform_2, window_bounds = array<i64: 1, 1, 128>}, {pipeline_mode = #tpu.pipeline_mode<synchronous>, transform_indices = @transform_3, window_bounds = array<i64: 9, 128, 128>}, {transform_indices = @transform_4, window_bounds = array<i64: 1, 8, 8, 128>}, {pipeline_mode = #tpu.pipeline_mode<synchronous>, transform_indices = @transform_5, window_bounds = array<i64: 1, 1, 128>}, {pipeline_mode = #tpu.pipeline_mode<synchronous>, transform_indices = @transform_6, window_bounds = array<i64: 1, 1, 128>}, {pipeline_mode = #tpu.pipeline_mode<synchronous>, transform_indices = @transform_7, window_bounds = array<i64: 128, 128>}, {transform_indices = @transform_8, window_bounds = array<i64: 1, 8, 8, 128>}]} {
    %cst = arith.constant 0.000000e+00 : f32
    %0 = vector.broadcast %cst : f32 to vector<10x10x128xf32>
    %c0 = arith.constant 0 : index
    %c0_0 = arith.constant 0 : index
    %c0_1 = arith.constant 0 : index
    %1 = vector.load %arg10[%c0, %c0_0, %c0_1] : memref<10x10x128xf32, #tpu.memory_space<vmem>>, vector<10x10x128xf32>
    tpu.vector_store %arg10[%c0, %c0_0, %c0_1], %0 {strides = array<i32>} : memref<10x10x128xf32, #tpu.memory_space<vmem>>, vector<10x10x128xf32>,
    %c0_2 = arith.constant 0 : index
    %c0_3 = arith.constant 0 : index
    %c0_4 = arith.constant 0 : index
    %c0_5 = arith.constant 0 : index
    %2 = vector.load %arg1[%c0_2, %c0_3, %c0_4, %c0_5] : memref<1x8x8x128xf32, #tpu.memory_space<vmem>>, vector<1x8x8x128xf32>
    %3 = vector.shape_cast %2 : vector<1x8x8x128xf32> to vector<8x8x128xf32>
    %c0_6 = arith.constant 0 : index
    %c0_7 = arith.constant 0 : index
    %c0_8 = arith.constant 0 : index
    %4 = vector.load %arg2[%c0_6, %c0_7, %c0_8] : memref<1x1x128xf32, #tpu.memory_space<vmem>>, vector<1x1x128xf32>
    %5 = vector.shape_cast %4 : vector<1x1x128xf32> to vector<1x128xf32>
    %6 = vector.shape_cast %5 : vector<1x128xf32> to vector<1x1x128xf32>
    %7 = vector.broadcast %6 : vector<1x1x128xf32> to vector<8x8x128xf32>
    %8 = arith.mulf %3, %7 : vector<8x8x128xf32>
    %c0_9 = arith.constant 0 : index
    %c0_10 = arith.constant 0 : index
    %c0_11 = arith.constant 0 : index
    %9 = vector.load %arg3[%c0_9, %c0_10, %c0_11] : memref<1x1x128xf32, #tpu.memory_space<vmem>>, vector<1x1x128xf32>
    %10 = vector.shape_cast %9 : vector<1x1x128xf32> to vector<1x128xf32>
    %11 = vector.shape_cast %10 : vector<1x128xf32> to vector<1x1x128xf32>
    %12 = vector.broadcast %11 : vector<1x1x128xf32> to vector<8x8x128xf32>
    %13 = arith.addf %8, %12 : vector<8x8x128xf32>
    %cst_12 = arith.constant 0.000000e+00 : f32
    %14 = vector.broadcast %cst_12 : f32 to vector<8x8x128xf32>
    %15 = arith.maximumf %13, %14 : vector<8x8x128xf32>
    %c1 = arith.constant 1 : index
    %c1_13 = arith.constant 1 : index
    %c0_14 = arith.constant 0 : index
    %16 = vector.load %arg10[%c1, %c1_13, %c0_14] : memref<10x10x128xf32, #tpu.memory_space<vmem>>, vector<8x8x128xf32>
    tpu.vector_store %arg10[%c1, %c1_13, %c0_14], %15 {strides = array<i32>} : memref<10x10x128xf32, #tpu.memory_space<vmem>>, vector<8x8x128xf32>,
    %c0_15 = arith.constant 0 : index
    %c0_16 = arith.constant 0 : index
    %c0_17 = arith.constant 0 : index
    %17 = vector.load %arg10[%c0_15, %c0_16, %c0_17] : memref<10x10x128xf32, #tpu.memory_space<vmem>>, vector<8x8x128xf32>
    %18 = vector.shape_cast %17 : vector<8x8x128xf32> to vector<64x128xf32>
    %19 = arith.truncf %18 : vector<64x128xf32> to vector<64x128xbf16>
    %c0_18 = arith.constant 0 : index
    %c0_19 = arith.constant 0 : index
    %c0_20 = arith.constant 0 : index
    %20 = vector.load %arg4[%c0_18, %c0_19, %c0_20] : memref<9x128x128xbf16, #tpu.memory_space<vmem>>, vector<1x128x128xbf16>
    %21 = vector.shape_cast %20 : vector<1x128x128xbf16> to vector<128x128xbf16>
    %cst_21 = arith.constant dense<0.000000e+00> : vector<64x128xf32>
    %22 = tpu.matmul %19, %21, %cst_21 {dimension_numbers = #tpu.dot_dimension_numbers<[1], [0], [0], [1], [0, 0, 1, 1], [], []>} : vector<64x128xbf16>, vector<128x128xbf16>, vector<64x128xf32> -> vector<64x128xf32>
    %c0_22 = arith.constant 0 : index
    %c1_23 = arith.constant 1 : index
    %c0_24 = arith.constant 0 : index
    %23 = vector.load %arg10[%c0_22, %c1_23, %c0_24] : memref<10x10x128xf32, #tpu.memory_space<vmem>>, vector<8x8x128xf32>
    %24 = vector.shape_cast %23 : vector<8x8x128xf32> to vector<64x128xf32>
    %25 = arith.truncf %24 : vector<64x128xf32> to vector<64x128xbf16>
    %c1_25 = arith.constant 1 : index
    %c0_26 = arith.constant 0 : index
    %c0_27 = arith.constant 0 : index
    %26 = vector.load %arg4[%c1_25, %c0_26, %c0_27] : memref<9x128x128xbf16, #tpu.memory_space<vmem>>, vector<1x128x128xbf16>
    %27 = vector.shape_cast %26 : vector<1x128x128xbf16> to vector<128x128xbf16>
    %cst_28 = arith.constant dense<0.000000e+00> : vector<64x128xf32>
    %28 = tpu.matmul %25, %27, %cst_28 {dimension_numbers = #tpu.dot_dimension_numbers<[1], [0], [0], [1], [0, 0, 1, 1], [], []>} : vector<64x128xbf16>, vector<128x128xbf16>, vector<64x128xf32> -> vector<64x128xf32>
    %29 = arith.addf %22, %28 : vector<64x128xf32>
    %c0_29 = arith.constant 0 : index
    %c2 = arith.constant 2 : index
    %c0_30 = arith.constant 0 : index
    %30 = vector.load %arg10[%c0_29, %c2, %c0_30] : memref<10x10x128xf32, #tpu.memory_space<vmem>>, vector<8x8x128xf32>
    %31 = vector.shape_cast %30 : vector<8x8x128xf32> to vector<64x128xf32>
    %32 = arith.truncf %31 : vector<64x128xf32> to vector<64x128xbf16>
    %c2_31 = arith.constant 2 : index
    %c0_32 = arith.constant 0 : index
    %c0_33 = arith.constant 0 : index
    %33 = vector.load %arg4[%c2_31, %c0_32, %c0_33] : memref<9x128x128xbf16, #tpu.memory_space<vmem>>, vector<1x128x128xbf16>
    %34 = vector.shape_cast %33 : vector<1x128x128xbf16> to vector<128x128xbf16>
    %cst_34 = arith.constant dense<0.000000e+00> : vector<64x128xf32>
    %35 = tpu.matmul %32, %34, %cst_34 {dimension_numbers = #tpu.dot_dimension_numbers<[1], [0], [0], [1], [0, 0, 1, 1], [], []>} : vector<64x128xbf16>, vector<128x128xbf16>, vector<64x128xf32> -> vector<64x128xf32>
    %36 = arith.addf %29, %35 : vector<64x128xf32>
    %c1_35 = arith.constant 1 : index
    %c0_36 = arith.constant 0 : index
    %c0_37 = arith.constant 0 : index
    %37 = vector.load %arg10[%c1_35, %c0_36, %c0_37] : memref<10x10x128xf32, #tpu.memory_space<vmem>>, vector<8x8x128xf32>
    %38 = vector.shape_cast %37 : vector<8x8x128xf32> to vector<64x128xf32>
    %39 = arith.truncf %38 : vector<64x128xf32> to vector<64x128xbf16>
    %c3 = arith.constant 3 : index
    %c0_38 = arith.constant 0 : index
    %c0_39 = arith.constant 0 : index
    %40 = vector.load %arg4[%c3, %c0_38, %c0_39] : memref<9x128x128xbf16, #tpu.memory_space<vmem>>, vector<1x128x128xbf16>
    %41 = vector.shape_cast %40 : vector<1x128x128xbf16> to vector<128x128xbf16>
    %cst_40 = arith.constant dense<0.000000e+00> : vector<64x128xf32>
    %42 = tpu.matmul %39, %41, %cst_40 {dimension_numbers = #tpu.dot_dimension_numbers<[1], [0], [0], [1], [0, 0, 1, 1], [], []>} : vector<64x128xbf16>, vector<128x128xbf16>, vector<64x128xf32> -> vector<64x128xf32>
    %43 = arith.addf %36, %42 : vector<64x128xf32>
    %c1_41 = arith.constant 1 : index
    %c1_42 = arith.constant 1 : index
    %c0_43 = arith.constant 0 : index
    %44 = vector.load %arg10[%c1_41, %c1_42, %c0_43] : memref<10x10x128xf32, #tpu.memory_space<vmem>>, vector<8x8x128xf32>
    %45 = vector.shape_cast %44 : vector<8x8x128xf32> to vector<64x128xf32>
    %46 = arith.truncf %45 : vector<64x128xf32> to vector<64x128xbf16>
    %c4 = arith.constant 4 : index
    %c0_44 = arith.constant 0 : index
    %c0_45 = arith.constant 0 : index
    %47 = vector.load %arg4[%c4, %c0_44, %c0_45] : memref<9x128x128xbf16, #tpu.memory_space<vmem>>, vector<1x128x128xbf16>
    %48 = vector.shape_cast %47 : vector<1x128x128xbf16> to vector<128x128xbf16>
    %cst_46 = arith.constant dense<0.000000e+00> : vector<64x128xf32>
    %49 = tpu.matmul %46, %48, %cst_46 {dimension_numbers = #tpu.dot_dimension_numbers<[1], [0], [0], [1], [0, 0, 1, 1], [], []>} : vector<64x128xbf16>, vector<128x128xbf16>, vector<64x128xf32> -> vector<64x128xf32>
    %50 = arith.addf %43, %49 : vector<64x128xf32>
    %c1_47 = arith.constant 1 : index
    %c2_48 = arith.constant 2 : index
    %c0_49 = arith.constant 0 : index
    %51 = vector.load %arg10[%c1_47, %c2_48, %c0_49] : memref<10x10x128xf32, #tpu.memory_space<vmem>>, vector<8x8x128xf32>
    %52 = vector.shape_cast %51 : vector<8x8x128xf32> to vector<64x128xf32>
    %53 = arith.truncf %52 : vector<64x128xf32> to vector<64x128xbf16>
    %c5 = arith.constant 5 : index
    %c0_50 = arith.constant 0 : index
    %c0_51 = arith.constant 0 : index
    %54 = vector.load %arg4[%c5, %c0_50, %c0_51] : memref<9x128x128xbf16, #tpu.memory_space<vmem>>, vector<1x128x128xbf16>
    %55 = vector.shape_cast %54 : vector<1x128x128xbf16> to vector<128x128xbf16>
    %cst_52 = arith.constant dense<0.000000e+00> : vector<64x128xf32>
    %56 = tpu.matmul %53, %55, %cst_52 {dimension_numbers = #tpu.dot_dimension_numbers<[1], [0], [0], [1], [0, 0, 1, 1], [], []>} : vector<64x128xbf16>, vector<128x128xbf16>, vector<64x128xf32> -> vector<64x128xf32>
    %57 = arith.addf %50, %56 : vector<64x128xf32>
    %c2_53 = arith.constant 2 : index
    %c0_54 = arith.constant 0 : index
    %c0_55 = arith.constant 0 : index
    %58 = vector.load %arg10[%c2_53, %c0_54, %c0_55] : memref<10x10x128xf32, #tpu.memory_space<vmem>>, vector<8x8x128xf32>
    %59 = vector.shape_cast %58 : vector<8x8x128xf32> to vector<64x128xf32>
    %60 = arith.truncf %59 : vector<64x128xf32> to vector<64x128xbf16>
    %c6 = arith.constant 6 : index
    %c0_56 = arith.constant 0 : index
    %c0_57 = arith.constant 0 : index
    %61 = vector.load %arg4[%c6, %c0_56, %c0_57] : memref<9x128x128xbf16, #tpu.memory_space<vmem>>, vector<1x128x128xbf16>
    %62 = vector.shape_cast %61 : vector<1x128x128xbf16> to vector<128x128xbf16>
    %cst_58 = arith.constant dense<0.000000e+00> : vector<64x128xf32>
    %63 = tpu.matmul %60, %62, %cst_58 {dimension_numbers = #tpu.dot_dimension_numbers<[1], [0], [0], [1], [0, 0, 1, 1], [], []>} : vector<64x128xbf16>, vector<128x128xbf16>, vector<64x128xf32> -> vector<64x128xf32>
    %64 = arith.addf %57, %63 : vector<64x128xf32>
    %c2_59 = arith.constant 2 : index
    %c1_60 = arith.constant 1 : index
    %c0_61 = arith.constant 0 : index
    %65 = vector.load %arg10[%c2_59, %c1_60, %c0_61] : memref<10x10x128xf32, #tpu.memory_space<vmem>>, vector<8x8x128xf32>
    %66 = vector.shape_cast %65 : vector<8x8x128xf32> to vector<64x128xf32>
    %67 = arith.truncf %66 : vector<64x128xf32> to vector<64x128xbf16>
    %c7 = arith.constant 7 : index
    %c0_62 = arith.constant 0 : index
    %c0_63 = arith.constant 0 : index
    %68 = vector.load %arg4[%c7, %c0_62, %c0_63] : memref<9x128x128xbf16, #tpu.memory_space<vmem>>, vector<1x128x128xbf16>
    %69 = vector.shape_cast %68 : vector<1x128x128xbf16> to vector<128x128xbf16>
    %cst_64 = arith.constant dense<0.000000e+00> : vector<64x128xf32>
    %70 = tpu.matmul %67, %69, %cst_64 {dimension_numbers = #tpu.dot_dimension_numbers<[1], [0], [0], [1], [0, 0, 1, 1], [], []>} : vector<64x128xbf16>, vector<128x128xbf16>, vector<64x128xf32> -> vector<64x128xf32>
    %71 = arith.addf %64, %70 : vector<64x128xf32>
    %c2_65 = arith.constant 2 : index
    %c2_66 = arith.constant 2 : index
    %c0_67 = arith.constant 0 : index
    %72 = vector.load %arg10[%c2_65, %c2_66, %c0_67] : memref<10x10x128xf32, #tpu.memory_space<vmem>>, vector<8x8x128xf32>
    %73 = vector.shape_cast %72 : vector<8x8x128xf32> to vector<64x128xf32>
    %74 = arith.truncf %73 : vector<64x128xf32> to vector<64x128xbf16>
    %c8 = arith.constant 8 : index
    %c0_68 = arith.constant 0 : index
    %c0_69 = arith.constant 0 : index
    %75 = vector.load %arg4[%c8, %c0_68, %c0_69] : memref<9x128x128xbf16, #tpu.memory_space<vmem>>, vector<1x128x128xbf16>
    %76 = vector.shape_cast %75 : vector<1x128x128xbf16> to vector<128x128xbf16>
    %cst_70 = arith.constant dense<0.000000e+00> : vector<64x128xf32>
    %77 = tpu.matmul %74, %76, %cst_70 {dimension_numbers = #tpu.dot_dimension_numbers<[1], [0], [0], [1], [0, 0, 1, 1], [], []>} : vector<64x128xbf16>, vector<128x128xbf16>, vector<64x128xf32> -> vector<64x128xf32>
    %78 = arith.addf %71, %77 : vector<64x128xf32>
    %c0_71 = arith.constant 0 : index
    %c0_72 = arith.constant 0 : index
    %c0_73 = arith.constant 0 : index
    %c0_74 = arith.constant 0 : index
    %79 = vector.load %arg5[%c0_71, %c0_72, %c0_73, %c0_74] : memref<1x8x8x128xf32, #tpu.memory_space<vmem>>, vector<1x8x8x128xf32>
    %80 = vector.shape_cast %79 : vector<1x8x8x128xf32> to vector<8x8x128xf32>
    %c0_75 = arith.constant 0 : index
    %c0_76 = arith.constant 0 : index
    %c0_77 = arith.constant 0 : index
    %81 = vector.load %arg6[%c0_75, %c0_76, %c0_77] : memref<1x1x128xf32, #tpu.memory_space<vmem>>, vector<1x1x128xf32>
    %82 = vector.shape_cast %81 : vector<1x1x128xf32> to vector<1x128xf32>
    %83 = vector.shape_cast %82 : vector<1x128xf32> to vector<1x1x128xf32>
    %84 = vector.broadcast %83 : vector<1x1x128xf32> to vector<8x8x128xf32>
    %85 = arith.mulf %80, %84 : vector<8x8x128xf32>
    %c0_78 = arith.constant 0 : index
    %c0_79 = arith.constant 0 : index
    %c0_80 = arith.constant 0 : index
    %86 = vector.load %arg7[%c0_78, %c0_79, %c0_80] : memref<1x1x128xf32, #tpu.memory_space<vmem>>, vector<1x1x128xf32>
    %87 = vector.shape_cast %86 : vector<1x1x128xf32> to vector<1x128xf32>
    %88 = vector.shape_cast %87 : vector<1x128xf32> to vector<1x1x128xf32>
    %89 = vector.broadcast %88 : vector<1x1x128xf32> to vector<8x8x128xf32>
    %90 = arith.addf %85, %89 : vector<8x8x128xf32>
    %cst_81 = arith.constant 0.000000e+00 : f32
    %91 = vector.broadcast %cst_81 : f32 to vector<8x8x128xf32>
    %92 = arith.maximumf %90, %91 : vector<8x8x128xf32>
    %93 = vector.shape_cast %92 : vector<8x8x128xf32> to vector<64x128xf32>
    %94 = arith.truncf %93 : vector<64x128xf32> to vector<64x128xbf16>
    %c0_82 = arith.constant 0 : index
    %c0_83 = arith.constant 0 : index
    %95 = vector.load %arg8[%c0_82, %c0_83] : memref<128x128xbf16, #tpu.memory_space<vmem>>, vector<128x128xbf16>
    %cst_84 = arith.constant dense<0.000000e+00> : vector<64x128xf32>
    %96 = tpu.matmul %94, %95, %cst_84 {dimension_numbers = #tpu.dot_dimension_numbers<[1], [0], [0], [1], [0, 0, 1, 1], [], []>} : vector<64x128xbf16>, vector<128x128xbf16>, vector<64x128xf32> -> vector<64x128xf32>
    %97 = arith.addf %78, %96 : vector<64x128xf32>
    %98 = vector.shape_cast %97 : vector<64x128xf32> to vector<8x8x128xf32>
    %c0_85 = arith.constant 0 : index
    %c0_86 = arith.constant 0 : index
    %c0_87 = arith.constant 0 : index
    %c0_88 = arith.constant 0 : index
    %99 = vector.load %arg9[%c0_85, %c0_86, %c0_87, %c0_88] : memref<1x8x8x128xf32, #tpu.memory_space<vmem>>, vector<1x8x8x128xf32>
    %100 = vector.shape_cast %99 : vector<1x8x8x128xf32> to vector<8x8x128xf32>
    %101 = vector.shape_cast %98 : vector<8x8x128xf32> to vector<1x8x8x128xf32>
    tpu.vector_store %arg9[%c0_85, %c0_86, %c0_87, %c0_88], %101 {strides = array<i32>} : memref<1x8x8x128xf32, #tpu.memory_space<vmem>>, vector<1x8x8x128xf32>,
    return
  }
  func.func @transform_0(%arg0: i32) -> (i32, i32, i32, i32) {
    %c0_i32 = arith.constant 0 : i32
    %c0_i32_0 = arith.constant 0 : i32
    %c0_i32_1 = arith.constant 0 : i32
    %c0_i32_2 = arith.constant 0 : i32
    return %arg0, %c0_i32, %c0_i32_0, %c0_i32_1 : i32, i32, i32, i32
  }
  func.func @transform_1(%arg0: i32) -> (i32, i32, i32) {
    %c0_i32 = arith.constant 0 : i32
    %c0_i32_0 = arith.constant 0 : i32
    %c0_i32_1 = arith.constant 0 : i32
    %c0_i32_2 = arith.constant 0 : i32
    return %c0_i32, %c0_i32_0, %c0_i32_1 : i32, i32, i32
  }
  func.func @transform_2(%arg0: i32) -> (i32, i32, i32) {
    %c0_i32 = arith.constant 0 : i32
    %c0_i32_0 = arith.constant 0 : i32
    %c0_i32_1 = arith.constant 0 : i32
    %c0_i32_2 = arith.constant 0 : i32
    return %c0_i32, %c0_i32_0, %c0_i32_1 : i32, i32, i32
  }
  func.func @transform_3(%arg0: i32) -> (i32, i32, i32) {
    %c0_i32 = arith.constant 0 : i32
    %c0_i32_0 = arith.constant 0 : i32
    %c0_i32_1 = arith.constant 0 : i32
    %c0_i32_2 = arith.constant 0 : i32
    return %c0_i32, %c0_i32_0, %c0_i32_1 : i32, i32, i32
  }
  func.func @transform_4(%arg0: i32) -> (i32, i32, i32, i32) {
    %c0_i32 = arith.constant 0 : i32
    %c0_i32_0 = arith.constant 0 : i32
    %c0_i32_1 = arith.constant 0 : i32
    %c0_i32_2 = arith.constant 0 : i32
    return %arg0, %c0_i32, %c0_i32_0, %c0_i32_1 : i32, i32, i32, i32
  }
  func.func @transform_5(%arg0: i32) -> (i32, i32, i32) {
    %c0_i32 = arith.constant 0 : i32
    %c0_i32_0 = arith.constant 0 : i32
    %c0_i32_1 = arith.constant 0 : i32
    %c0_i32_2 = arith.constant 0 : i32
    return %c0_i32, %c0_i32_0, %c0_i32_1 : i32, i32, i32
  }
  func.func @transform_6(%arg0: i32) -> (i32, i32, i32) {
    %c0_i32 = arith.constant 0 : i32
    %c0_i32_0 = arith.constant 0 : i32
    %c0_i32_1 = arith.constant 0 : i32
    %c0_i32_2 = arith.constant 0 : i32
    return %c0_i32, %c0_i32_0, %c0_i32_1 : i32, i32, i32
  }
  func.func @transform_7(%arg0: i32) -> (i32, i32) {
    %c0_i32 = arith.constant 0 : i32
    %c0_i32_0 = arith.constant 0 : i32
    %c0_i32_1 = arith.constant 0 : i32
    return %c0_i32, %c0_i32_0 : i32, i32
  }
  func.func @transform_8(%arg0: i32) -> (i32, i32, i32, i32) {
    %c0_i32 = arith.constant 0 : i32
    %c0_i32_0 = arith.constant 0 : i32
    %c0_i32_1 = arith.constant 0 : i32
    %c0_i32_2 = arith.constant 0 : i32
    return %arg0, %c0_i32, %c0_i32_0, %c0_i32_1 : i32, i32, i32, i32
  }
}

module attributes {stable_mosaic.version = 11 : i64} {
  func.func @_plane_conv3x3_kernel(%arg0: i32, %arg1: memref<1x8x8x128xf32, #tpu.memory_space<vmem>>, %arg2: memref<1x1x128xf32, #tpu.memory_space<vmem>>, %arg3: memref<1x1x128xf32, #tpu.memory_space<vmem>>, %arg4: memref<9x128x128xbf16, #tpu.memory_space<vmem>>, %arg5: memref<1x1x128xf32, #tpu.memory_space<vmem>>, %arg6: memref<1x1x128xf32, #tpu.memory_space<vmem>>, %arg7: memref<1x8x8x128xf32, #tpu.memory_space<vmem>>, %arg8: memref<10x10x128xf32, #tpu.memory_space<vmem>>) attributes {dimension_semantics = [#tpu.dimension_semantics<parallel>], iteration_bounds = array<i64: 2>, scalar_prefetch = 0 : i64, scratch_operands = 1 : i64, tpu.core_type = #tpu.core_type<tc>, window_params = [{transform_indices = @transform_0, window_bounds = array<i64: 1, 8, 8, 128>}, {pipeline_mode = #tpu.pipeline_mode<synchronous>, transform_indices = @transform_1, window_bounds = array<i64: 1, 1, 128>}, {pipeline_mode = #tpu.pipeline_mode<synchronous>, transform_indices = @transform_2, window_bounds = array<i64: 1, 1, 128>}, {pipeline_mode = #tpu.pipeline_mode<synchronous>, transform_indices = @transform_3, window_bounds = array<i64: 9, 128, 128>}, {pipeline_mode = #tpu.pipeline_mode<synchronous>, transform_indices = @transform_4, window_bounds = array<i64: 1, 1, 128>}, {pipeline_mode = #tpu.pipeline_mode<synchronous>, transform_indices = @transform_5, window_bounds = array<i64: 1, 1, 128>}, {transform_indices = @transform_6, window_bounds = array<i64: 1, 8, 8, 128>}]} {
    %cst = arith.constant 0.000000e+00 : f32
    %0 = vector.broadcast %cst : f32 to vector<10x10x128xf32>
    %c0 = arith.constant 0 : index
    %c0_0 = arith.constant 0 : index
    %c0_1 = arith.constant 0 : index
    %1 = vector.load %arg8[%c0, %c0_0, %c0_1] : memref<10x10x128xf32, #tpu.memory_space<vmem>>, vector<10x10x128xf32>
    tpu.vector_store %arg8[%c0, %c0_0, %c0_1], %0 {strides = array<i32>} : memref<10x10x128xf32, #tpu.memory_space<vmem>>, vector<10x10x128xf32>,
    %c0_2 = arith.constant 0 : index
    %c0_3 = arith.constant 0 : index
    %c0_4 = arith.constant 0 : index
    %c0_5 = arith.constant 0 : index
    %2 = vector.load %arg1[%c0_2, %c0_3, %c0_4, %c0_5] : memref<1x8x8x128xf32, #tpu.memory_space<vmem>>, vector<1x8x8x128xf32>
    %3 = vector.shape_cast %2 : vector<1x8x8x128xf32> to vector<8x8x128xf32>
    %c0_6 = arith.constant 0 : index
    %c0_7 = arith.constant 0 : index
    %c0_8 = arith.constant 0 : index
    %4 = vector.load %arg2[%c0_6, %c0_7, %c0_8] : memref<1x1x128xf32, #tpu.memory_space<vmem>>, vector<1x1x128xf32>
    %5 = vector.shape_cast %4 : vector<1x1x128xf32> to vector<1x128xf32>
    %6 = vector.shape_cast %5 : vector<1x128xf32> to vector<1x1x128xf32>
    %7 = vector.broadcast %6 : vector<1x1x128xf32> to vector<8x8x128xf32>
    %8 = arith.mulf %3, %7 : vector<8x8x128xf32>
    %c0_9 = arith.constant 0 : index
    %c0_10 = arith.constant 0 : index
    %c0_11 = arith.constant 0 : index
    %9 = vector.load %arg3[%c0_9, %c0_10, %c0_11] : memref<1x1x128xf32, #tpu.memory_space<vmem>>, vector<1x1x128xf32>
    %10 = vector.shape_cast %9 : vector<1x1x128xf32> to vector<1x128xf32>
    %11 = vector.shape_cast %10 : vector<1x128xf32> to vector<1x1x128xf32>
    %12 = vector.broadcast %11 : vector<1x1x128xf32> to vector<8x8x128xf32>
    %13 = arith.addf %8, %12 : vector<8x8x128xf32>
    %cst_12 = arith.constant 0.000000e+00 : f32
    %14 = vector.broadcast %cst_12 : f32 to vector<8x8x128xf32>
    %15 = arith.maximumf %13, %14 : vector<8x8x128xf32>
    %c1 = arith.constant 1 : index
    %c1_13 = arith.constant 1 : index
    %c0_14 = arith.constant 0 : index
    %16 = vector.load %arg8[%c1, %c1_13, %c0_14] : memref<10x10x128xf32, #tpu.memory_space<vmem>>, vector<8x8x128xf32>
    tpu.vector_store %arg8[%c1, %c1_13, %c0_14], %15 {strides = array<i32>} : memref<10x10x128xf32, #tpu.memory_space<vmem>>, vector<8x8x128xf32>,
    %c0_15 = arith.constant 0 : index
    %c0_16 = arith.constant 0 : index
    %c0_17 = arith.constant 0 : index
    %17 = vector.load %arg8[%c0_15, %c0_16, %c0_17] : memref<10x10x128xf32, #tpu.memory_space<vmem>>, vector<8x8x128xf32>
    %18 = vector.shape_cast %17 : vector<8x8x128xf32> to vector<64x128xf32>
    %19 = arith.truncf %18 : vector<64x128xf32> to vector<64x128xbf16>
    %c0_18 = arith.constant 0 : index
    %c0_19 = arith.constant 0 : index
    %c0_20 = arith.constant 0 : index
    %20 = vector.load %arg4[%c0_18, %c0_19, %c0_20] : memref<9x128x128xbf16, #tpu.memory_space<vmem>>, vector<1x128x128xbf16>
    %21 = vector.shape_cast %20 : vector<1x128x128xbf16> to vector<128x128xbf16>
    %cst_21 = arith.constant dense<0.000000e+00> : vector<64x128xf32>
    %22 = tpu.matmul %19, %21, %cst_21 {dimension_numbers = #tpu.dot_dimension_numbers<[1], [0], [0], [1], [0, 0, 1, 1], [], []>} : vector<64x128xbf16>, vector<128x128xbf16>, vector<64x128xf32> -> vector<64x128xf32>
    %c0_22 = arith.constant 0 : index
    %c1_23 = arith.constant 1 : index
    %c0_24 = arith.constant 0 : index
    %23 = vector.load %arg8[%c0_22, %c1_23, %c0_24] : memref<10x10x128xf32, #tpu.memory_space<vmem>>, vector<8x8x128xf32>
    %24 = vector.shape_cast %23 : vector<8x8x128xf32> to vector<64x128xf32>
    %25 = arith.truncf %24 : vector<64x128xf32> to vector<64x128xbf16>
    %c1_25 = arith.constant 1 : index
    %c0_26 = arith.constant 0 : index
    %c0_27 = arith.constant 0 : index
    %26 = vector.load %arg4[%c1_25, %c0_26, %c0_27] : memref<9x128x128xbf16, #tpu.memory_space<vmem>>, vector<1x128x128xbf16>
    %27 = vector.shape_cast %26 : vector<1x128x128xbf16> to vector<128x128xbf16>
    %cst_28 = arith.constant dense<0.000000e+00> : vector<64x128xf32>
    %28 = tpu.matmul %25, %27, %cst_28 {dimension_numbers = #tpu.dot_dimension_numbers<[1], [0], [0], [1], [0, 0, 1, 1], [], []>} : vector<64x128xbf16>, vector<128x128xbf16>, vector<64x128xf32> -> vector<64x128xf32>
    %29 = arith.addf %22, %28 : vector<64x128xf32>
    %c0_29 = arith.constant 0 : index
    %c2 = arith.constant 2 : index
    %c0_30 = arith.constant 0 : index
    %30 = vector.load %arg8[%c0_29, %c2, %c0_30] : memref<10x10x128xf32, #tpu.memory_space<vmem>>, vector<8x8x128xf32>
    %31 = vector.shape_cast %30 : vector<8x8x128xf32> to vector<64x128xf32>
    %32 = arith.truncf %31 : vector<64x128xf32> to vector<64x128xbf16>
    %c2_31 = arith.constant 2 : index
    %c0_32 = arith.constant 0 : index
    %c0_33 = arith.constant 0 : index
    %33 = vector.load %arg4[%c2_31, %c0_32, %c0_33] : memref<9x128x128xbf16, #tpu.memory_space<vmem>>, vector<1x128x128xbf16>
    %34 = vector.shape_cast %33 : vector<1x128x128xbf16> to vector<128x128xbf16>
    %cst_34 = arith.constant dense<0.000000e+00> : vector<64x128xf32>
    %35 = tpu.matmul %32, %34, %cst_34 {dimension_numbers = #tpu.dot_dimension_numbers<[1], [0], [0], [1], [0, 0, 1, 1], [], []>} : vector<64x128xbf16>, vector<128x128xbf16>, vector<64x128xf32> -> vector<64x128xf32>
    %36 = arith.addf %29, %35 : vector<64x128xf32>
    %c1_35 = arith.constant 1 : index
    %c0_36 = arith.constant 0 : index
    %c0_37 = arith.constant 0 : index
    %37 = vector.load %arg8[%c1_35, %c0_36, %c0_37] : memref<10x10x128xf32, #tpu.memory_space<vmem>>, vector<8x8x128xf32>
    %38 = vector.shape_cast %37 : vector<8x8x128xf32> to vector<64x128xf32>
    %39 = arith.truncf %38 : vector<64x128xf32> to vector<64x128xbf16>
    %c3 = arith.constant 3 : index
    %c0_38 = arith.constant 0 : index
    %c0_39 = arith.constant 0 : index
    %40 = vector.load %arg4[%c3, %c0_38, %c0_39] : memref<9x128x128xbf16, #tpu.memory_space<vmem>>, vector<1x128x128xbf16>
    %41 = vector.shape_cast %40 : vector<1x128x128xbf16> to vector<128x128xbf16>
    %cst_40 = arith.constant dense<0.000000e+00> : vector<64x128xf32>
    %42 = tpu.matmul %39, %41, %cst_40 {dimension_numbers = #tpu.dot_dimension_numbers<[1], [0], [0], [1], [0, 0, 1, 1], [], []>} : vector<64x128xbf16>, vector<128x128xbf16>, vector<64x128xf32> -> vector<64x128xf32>
    %43 = arith.addf %36, %42 : vector<64x128xf32>
    %c1_41 = arith.constant 1 : index
    %c1_42 = arith.constant 1 : index
    %c0_43 = arith.constant 0 : index
    %44 = vector.load %arg8[%c1_41, %c1_42, %c0_43] : memref<10x10x128xf32, #tpu.memory_space<vmem>>, vector<8x8x128xf32>
    %45 = vector.shape_cast %44 : vector<8x8x128xf32> to vector<64x128xf32>
    %46 = arith.truncf %45 : vector<64x128xf32> to vector<64x128xbf16>
    %c4 = arith.constant 4 : index
    %c0_44 = arith.constant 0 : index
    %c0_45 = arith.constant 0 : index
    %47 = vector.load %arg4[%c4, %c0_44, %c0_45] : memref<9x128x128xbf16, #tpu.memory_space<vmem>>, vector<1x128x128xbf16>
    %48 = vector.shape_cast %47 : vector<1x128x128xbf16> to vector<128x128xbf16>
    %cst_46 = arith.constant dense<0.000000e+00> : vector<64x128xf32>
    %49 = tpu.matmul %46, %48, %cst_46 {dimension_numbers = #tpu.dot_dimension_numbers<[1], [0], [0], [1], [0, 0, 1, 1], [], []>} : vector<64x128xbf16>, vector<128x128xbf16>, vector<64x128xf32> -> vector<64x128xf32>
    %50 = arith.addf %43, %49 : vector<64x128xf32>
    %c1_47 = arith.constant 1 : index
    %c2_48 = arith.constant 2 : index
    %c0_49 = arith.constant 0 : index
    %51 = vector.load %arg8[%c1_47, %c2_48, %c0_49] : memref<10x10x128xf32, #tpu.memory_space<vmem>>, vector<8x8x128xf32>
    %52 = vector.shape_cast %51 : vector<8x8x128xf32> to vector<64x128xf32>
    %53 = arith.truncf %52 : vector<64x128xf32> to vector<64x128xbf16>
    %c5 = arith.constant 5 : index
    %c0_50 = arith.constant 0 : index
    %c0_51 = arith.constant 0 : index
    %54 = vector.load %arg4[%c5, %c0_50, %c0_51] : memref<9x128x128xbf16, #tpu.memory_space<vmem>>, vector<1x128x128xbf16>
    %55 = vector.shape_cast %54 : vector<1x128x128xbf16> to vector<128x128xbf16>
    %cst_52 = arith.constant dense<0.000000e+00> : vector<64x128xf32>
    %56 = tpu.matmul %53, %55, %cst_52 {dimension_numbers = #tpu.dot_dimension_numbers<[1], [0], [0], [1], [0, 0, 1, 1], [], []>} : vector<64x128xbf16>, vector<128x128xbf16>, vector<64x128xf32> -> vector<64x128xf32>
    %57 = arith.addf %50, %56 : vector<64x128xf32>
    %c2_53 = arith.constant 2 : index
    %c0_54 = arith.constant 0 : index
    %c0_55 = arith.constant 0 : index
    %58 = vector.load %arg8[%c2_53, %c0_54, %c0_55] : memref<10x10x128xf32, #tpu.memory_space<vmem>>, vector<8x8x128xf32>
    %59 = vector.shape_cast %58 : vector<8x8x128xf32> to vector<64x128xf32>
    %60 = arith.truncf %59 : vector<64x128xf32> to vector<64x128xbf16>
    %c6 = arith.constant 6 : index
    %c0_56 = arith.constant 0 : index
    %c0_57 = arith.constant 0 : index
    %61 = vector.load %arg4[%c6, %c0_56, %c0_57] : memref<9x128x128xbf16, #tpu.memory_space<vmem>>, vector<1x128x128xbf16>
    %62 = vector.shape_cast %61 : vector<1x128x128xbf16> to vector<128x128xbf16>
    %cst_58 = arith.constant dense<0.000000e+00> : vector<64x128xf32>
    %63 = tpu.matmul %60, %62, %cst_58 {dimension_numbers = #tpu.dot_dimension_numbers<[1], [0], [0], [1], [0, 0, 1, 1], [], []>} : vector<64x128xbf16>, vector<128x128xbf16>, vector<64x128xf32> -> vector<64x128xf32>
    %64 = arith.addf %57, %63 : vector<64x128xf32>
    %c2_59 = arith.constant 2 : index
    %c1_60 = arith.constant 1 : index
    %c0_61 = arith.constant 0 : index
    %65 = vector.load %arg8[%c2_59, %c1_60, %c0_61] : memref<10x10x128xf32, #tpu.memory_space<vmem>>, vector<8x8x128xf32>
    %66 = vector.shape_cast %65 : vector<8x8x128xf32> to vector<64x128xf32>
    %67 = arith.truncf %66 : vector<64x128xf32> to vector<64x128xbf16>
    %c7 = arith.constant 7 : index
    %c0_62 = arith.constant 0 : index
    %c0_63 = arith.constant 0 : index
    %68 = vector.load %arg4[%c7, %c0_62, %c0_63] : memref<9x128x128xbf16, #tpu.memory_space<vmem>>, vector<1x128x128xbf16>
    %69 = vector.shape_cast %68 : vector<1x128x128xbf16> to vector<128x128xbf16>
    %cst_64 = arith.constant dense<0.000000e+00> : vector<64x128xf32>
    %70 = tpu.matmul %67, %69, %cst_64 {dimension_numbers = #tpu.dot_dimension_numbers<[1], [0], [0], [1], [0, 0, 1, 1], [], []>} : vector<64x128xbf16>, vector<128x128xbf16>, vector<64x128xf32> -> vector<64x128xf32>
    %71 = arith.addf %64, %70 : vector<64x128xf32>
    %c2_65 = arith.constant 2 : index
    %c2_66 = arith.constant 2 : index
    %c0_67 = arith.constant 0 : index
    %72 = vector.load %arg8[%c2_65, %c2_66, %c0_67] : memref<10x10x128xf32, #tpu.memory_space<vmem>>, vector<8x8x128xf32>
    %73 = vector.shape_cast %72 : vector<8x8x128xf32> to vector<64x128xf32>
    %74 = arith.truncf %73 : vector<64x128xf32> to vector<64x128xbf16>
    %c8 = arith.constant 8 : index
    %c0_68 = arith.constant 0 : index
    %c0_69 = arith.constant 0 : index
    %75 = vector.load %arg4[%c8, %c0_68, %c0_69] : memref<9x128x128xbf16, #tpu.memory_space<vmem>>, vector<1x128x128xbf16>
    %76 = vector.shape_cast %75 : vector<1x128x128xbf16> to vector<128x128xbf16>
    %cst_70 = arith.constant dense<0.000000e+00> : vector<64x128xf32>
    %77 = tpu.matmul %74, %76, %cst_70 {dimension_numbers = #tpu.dot_dimension_numbers<[1], [0], [0], [1], [0, 0, 1, 1], [], []>} : vector<64x128xbf16>, vector<128x128xbf16>, vector<64x128xf32> -> vector<64x128xf32>
    %78 = arith.addf %71, %77 : vector<64x128xf32>
    %c0_71 = arith.constant 0 : index
    %c0_72 = arith.constant 0 : index
    %c0_73 = arith.constant 0 : index
    %79 = vector.load %arg5[%c0_71, %c0_72, %c0_73] : memref<1x1x128xf32, #tpu.memory_space<vmem>>, vector<1x1x128xf32>
    %80 = vector.shape_cast %79 : vector<1x1x128xf32> to vector<1x128xf32>
    %81 = vector.broadcast %80 : vector<1x128xf32> to vector<64x128xf32>
    %82 = arith.mulf %78, %81 : vector<64x128xf32>
    %c0_74 = arith.constant 0 : index
    %c0_75 = arith.constant 0 : index
    %c0_76 = arith.constant 0 : index
    %83 = vector.load %arg6[%c0_74, %c0_75, %c0_76] : memref<1x1x128xf32, #tpu.memory_space<vmem>>, vector<1x1x128xf32>
    %84 = vector.shape_cast %83 : vector<1x1x128xf32> to vector<1x128xf32>
    %85 = vector.broadcast %84 : vector<1x128xf32> to vector<64x128xf32>
    %86 = arith.addf %82, %85 : vector<64x128xf32>
    %cst_77 = arith.constant 0.000000e+00 : f32
    %87 = vector.broadcast %cst_77 : f32 to vector<64x128xf32>
    %88 = arith.maximumf %86, %87 : vector<64x128xf32>
    %89 = vector.shape_cast %88 : vector<64x128xf32> to vector<8x8x128xf32>
    %c0_78 = arith.constant 0 : index
    %c0_79 = arith.constant 0 : index
    %c0_80 = arith.constant 0 : index
    %c0_81 = arith.constant 0 : index
    %90 = vector.load %arg7[%c0_78, %c0_79, %c0_80, %c0_81] : memref<1x8x8x128xf32, #tpu.memory_space<vmem>>, vector<1x8x8x128xf32>
    %91 = vector.shape_cast %90 : vector<1x8x8x128xf32> to vector<8x8x128xf32>
    %92 = vector.shape_cast %89 : vector<8x8x128xf32> to vector<1x8x8x128xf32>
    tpu.vector_store %arg7[%c0_78, %c0_79, %c0_80, %c0_81], %92 {strides = array<i32>} : memref<1x8x8x128xf32, #tpu.memory_space<vmem>>, vector<1x8x8x128xf32>,
    return
  }
  func.func @transform_0(%arg0: i32) -> (i32, i32, i32, i32) {
    %c0_i32 = arith.constant 0 : i32
    %c0_i32_0 = arith.constant 0 : i32
    %c0_i32_1 = arith.constant 0 : i32
    %c0_i32_2 = arith.constant 0 : i32
    return %arg0, %c0_i32, %c0_i32_0, %c0_i32_1 : i32, i32, i32, i32
  }
  func.func @transform_1(%arg0: i32) -> (i32, i32, i32) {
    %c0_i32 = arith.constant 0 : i32
    %c0_i32_0 = arith.constant 0 : i32
    %c0_i32_1 = arith.constant 0 : i32
    %c0_i32_2 = arith.constant 0 : i32
    return %c0_i32, %c0_i32_0, %c0_i32_1 : i32, i32, i32
  }
  func.func @transform_2(%arg0: i32) -> (i32, i32, i32) {
    %c0_i32 = arith.constant 0 : i32
    %c0_i32_0 = arith.constant 0 : i32
    %c0_i32_1 = arith.constant 0 : i32
    %c0_i32_2 = arith.constant 0 : i32
    return %c0_i32, %c0_i32_0, %c0_i32_1 : i32, i32, i32
  }
  func.func @transform_3(%arg0: i32) -> (i32, i32, i32) {
    %c0_i32 = arith.constant 0 : i32
    %c0_i32_0 = arith.constant 0 : i32
    %c0_i32_1 = arith.constant 0 : i32
    %c0_i32_2 = arith.constant 0 : i32
    return %c0_i32, %c0_i32_0, %c0_i32_1 : i32, i32, i32
  }
  func.func @transform_4(%arg0: i32) -> (i32, i32, i32) {
    %c0_i32 = arith.constant 0 : i32
    %c0_i32_0 = arith.constant 0 : i32
    %c0_i32_1 = arith.constant 0 : i32
    %c0_i32_2 = arith.constant 0 : i32
    return %c0_i32, %c0_i32_0, %c0_i32_1 : i32, i32, i32
  }
  func.func @transform_5(%arg0: i32) -> (i32, i32, i32) {
    %c0_i32 = arith.constant 0 : i32
    %c0_i32_0 = arith.constant 0 : i32
    %c0_i32_1 = arith.constant 0 : i32
    %c0_i32_2 = arith.constant 0 : i32
    return %c0_i32, %c0_i32_0, %c0_i32_1 : i32, i32, i32
  }
  func.func @transform_6(%arg0: i32) -> (i32, i32, i32, i32) {
    %c0_i32 = arith.constant 0 : i32
    %c0_i32_0 = arith.constant 0 : i32
    %c0_i32_1 = arith.constant 0 : i32
    %c0_i32_2 = arith.constant 0 : i32
    return %arg0, %c0_i32, %c0_i32_0, %c0_i32_1 : i32, i32, i32, i32
  }
}

module attributes {stable_mosaic.version = 11 : i64} {
  func.func @_plane_conv3x3_kernel(%arg0: i32, %arg1: memref<1x8x8x128xf32, #tpu.memory_space<vmem>>, %arg2: memref<1x1x128xf32, #tpu.memory_space<vmem>>, %arg3: memref<1x1x128xf32, #tpu.memory_space<vmem>>, %arg4: memref<9x128x128xbf16, #tpu.memory_space<vmem>>, %arg5: memref<1x8x8x128xf32, #tpu.memory_space<vmem>>, %arg6: memref<1x8x8x128xf32, #tpu.memory_space<vmem>>, %arg7: memref<10x10x128xf32, #tpu.memory_space<vmem>>) attributes {dimension_semantics = [#tpu.dimension_semantics<parallel>], iteration_bounds = array<i64: 2>, scalar_prefetch = 0 : i64, scratch_operands = 1 : i64, tpu.core_type = #tpu.core_type<tc>, window_params = [{transform_indices = @transform_0, window_bounds = array<i64: 1, 8, 8, 128>}, {pipeline_mode = #tpu.pipeline_mode<synchronous>, transform_indices = @transform_1, window_bounds = array<i64: 1, 1, 128>}, {pipeline_mode = #tpu.pipeline_mode<synchronous>, transform_indices = @transform_2, window_bounds = array<i64: 1, 1, 128>}, {pipeline_mode = #tpu.pipeline_mode<synchronous>, transform_indices = @transform_3, window_bounds = array<i64: 9, 128, 128>}, {transform_indices = @transform_4, window_bounds = array<i64: 1, 8, 8, 128>}, {transform_indices = @transform_5, window_bounds = array<i64: 1, 8, 8, 128>}]} {
    %cst = arith.constant 0.000000e+00 : f32
    %0 = vector.broadcast %cst : f32 to vector<10x10x128xf32>
    %c0 = arith.constant 0 : index
    %c0_0 = arith.constant 0 : index
    %c0_1 = arith.constant 0 : index
    %1 = vector.load %arg7[%c0, %c0_0, %c0_1] : memref<10x10x128xf32, #tpu.memory_space<vmem>>, vector<10x10x128xf32>
    tpu.vector_store %arg7[%c0, %c0_0, %c0_1], %0 {strides = array<i32>} : memref<10x10x128xf32, #tpu.memory_space<vmem>>, vector<10x10x128xf32>,
    %c0_2 = arith.constant 0 : index
    %c0_3 = arith.constant 0 : index
    %c0_4 = arith.constant 0 : index
    %c0_5 = arith.constant 0 : index
    %2 = vector.load %arg1[%c0_2, %c0_3, %c0_4, %c0_5] : memref<1x8x8x128xf32, #tpu.memory_space<vmem>>, vector<1x8x8x128xf32>
    %3 = vector.shape_cast %2 : vector<1x8x8x128xf32> to vector<8x8x128xf32>
    %c0_6 = arith.constant 0 : index
    %c0_7 = arith.constant 0 : index
    %c0_8 = arith.constant 0 : index
    %4 = vector.load %arg2[%c0_6, %c0_7, %c0_8] : memref<1x1x128xf32, #tpu.memory_space<vmem>>, vector<1x1x128xf32>
    %5 = vector.shape_cast %4 : vector<1x1x128xf32> to vector<1x128xf32>
    %6 = vector.shape_cast %5 : vector<1x128xf32> to vector<1x1x128xf32>
    %7 = vector.broadcast %6 : vector<1x1x128xf32> to vector<8x8x128xf32>
    %8 = arith.mulf %3, %7 : vector<8x8x128xf32>
    %c0_9 = arith.constant 0 : index
    %c0_10 = arith.constant 0 : index
    %c0_11 = arith.constant 0 : index
    %9 = vector.load %arg3[%c0_9, %c0_10, %c0_11] : memref<1x1x128xf32, #tpu.memory_space<vmem>>, vector<1x1x128xf32>
    %10 = vector.shape_cast %9 : vector<1x1x128xf32> to vector<1x128xf32>
    %11 = vector.shape_cast %10 : vector<1x128xf32> to vector<1x1x128xf32>
    %12 = vector.broadcast %11 : vector<1x1x128xf32> to vector<8x8x128xf32>
    %13 = arith.addf %8, %12 : vector<8x8x128xf32>
    %cst_12 = arith.constant 0.000000e+00 : f32
    %14 = vector.broadcast %cst_12 : f32 to vector<8x8x128xf32>
    %15 = arith.maximumf %13, %14 : vector<8x8x128xf32>
    %c1 = arith.constant 1 : index
    %c1_13 = arith.constant 1 : index
    %c0_14 = arith.constant 0 : index
    %16 = vector.load %arg7[%c1, %c1_13, %c0_14] : memref<10x10x128xf32, #tpu.memory_space<vmem>>, vector<8x8x128xf32>
    tpu.vector_store %arg7[%c1, %c1_13, %c0_14], %15 {strides = array<i32>} : memref<10x10x128xf32, #tpu.memory_space<vmem>>, vector<8x8x128xf32>,
    %c0_15 = arith.constant 0 : index
    %c0_16 = arith.constant 0 : index
    %c0_17 = arith.constant 0 : index
    %17 = vector.load %arg7[%c0_15, %c0_16, %c0_17] : memref<10x10x128xf32, #tpu.memory_space<vmem>>, vector<8x8x128xf32>
    %18 = vector.shape_cast %17 : vector<8x8x128xf32> to vector<64x128xf32>
    %19 = arith.truncf %18 : vector<64x128xf32> to vector<64x128xbf16>
    %c0_18 = arith.constant 0 : index
    %c0_19 = arith.constant 0 : index
    %c0_20 = arith.constant 0 : index
    %20 = vector.load %arg4[%c0_18, %c0_19, %c0_20] : memref<9x128x128xbf16, #tpu.memory_space<vmem>>, vector<1x128x128xbf16>
    %21 = vector.shape_cast %20 : vector<1x128x128xbf16> to vector<128x128xbf16>
    %cst_21 = arith.constant dense<0.000000e+00> : vector<64x128xf32>
    %22 = tpu.matmul %19, %21, %cst_21 {dimension_numbers = #tpu.dot_dimension_numbers<[1], [0], [0], [1], [0, 0, 1, 1], [], []>} : vector<64x128xbf16>, vector<128x128xbf16>, vector<64x128xf32> -> vector<64x128xf32>
    %c0_22 = arith.constant 0 : index
    %c1_23 = arith.constant 1 : index
    %c0_24 = arith.constant 0 : index
    %23 = vector.load %arg7[%c0_22, %c1_23, %c0_24] : memref<10x10x128xf32, #tpu.memory_space<vmem>>, vector<8x8x128xf32>
    %24 = vector.shape_cast %23 : vector<8x8x128xf32> to vector<64x128xf32>
    %25 = arith.truncf %24 : vector<64x128xf32> to vector<64x128xbf16>
    %c1_25 = arith.constant 1 : index
    %c0_26 = arith.constant 0 : index
    %c0_27 = arith.constant 0 : index
    %26 = vector.load %arg4[%c1_25, %c0_26, %c0_27] : memref<9x128x128xbf16, #tpu.memory_space<vmem>>, vector<1x128x128xbf16>
    %27 = vector.shape_cast %26 : vector<1x128x128xbf16> to vector<128x128xbf16>
    %cst_28 = arith.constant dense<0.000000e+00> : vector<64x128xf32>
    %28 = tpu.matmul %25, %27, %cst_28 {dimension_numbers = #tpu.dot_dimension_numbers<[1], [0], [0], [1], [0, 0, 1, 1], [], []>} : vector<64x128xbf16>, vector<128x128xbf16>, vector<64x128xf32> -> vector<64x128xf32>
    %29 = arith.addf %22, %28 : vector<64x128xf32>
    %c0_29 = arith.constant 0 : index
    %c2 = arith.constant 2 : index
    %c0_30 = arith.constant 0 : index
    %30 = vector.load %arg7[%c0_29, %c2, %c0_30] : memref<10x10x128xf32, #tpu.memory_space<vmem>>, vector<8x8x128xf32>
    %31 = vector.shape_cast %30 : vector<8x8x128xf32> to vector<64x128xf32>
    %32 = arith.truncf %31 : vector<64x128xf32> to vector<64x128xbf16>
    %c2_31 = arith.constant 2 : index
    %c0_32 = arith.constant 0 : index
    %c0_33 = arith.constant 0 : index
    %33 = vector.load %arg4[%c2_31, %c0_32, %c0_33] : memref<9x128x128xbf16, #tpu.memory_space<vmem>>, vector<1x128x128xbf16>
    %34 = vector.shape_cast %33 : vector<1x128x128xbf16> to vector<128x128xbf16>
    %cst_34 = arith.constant dense<0.000000e+00> : vector<64x128xf32>
    %35 = tpu.matmul %32, %34, %cst_34 {dimension_numbers = #tpu.dot_dimension_numbers<[1], [0], [0], [1], [0, 0, 1, 1], [], []>} : vector<64x128xbf16>, vector<128x128xbf16>, vector<64x128xf32> -> vector<64x128xf32>
    %36 = arith.addf %29, %35 : vector<64x128xf32>
    %c1_35 = arith.constant 1 : index
    %c0_36 = arith.constant 0 : index
    %c0_37 = arith.constant 0 : index
    %37 = vector.load %arg7[%c1_35, %c0_36, %c0_37] : memref<10x10x128xf32, #tpu.memory_space<vmem>>, vector<8x8x128xf32>
    %38 = vector.shape_cast %37 : vector<8x8x128xf32> to vector<64x128xf32>
    %39 = arith.truncf %38 : vector<64x128xf32> to vector<64x128xbf16>
    %c3 = arith.constant 3 : index
    %c0_38 = arith.constant 0 : index
    %c0_39 = arith.constant 0 : index
    %40 = vector.load %arg4[%c3, %c0_38, %c0_39] : memref<9x128x128xbf16, #tpu.memory_space<vmem>>, vector<1x128x128xbf16>
    %41 = vector.shape_cast %40 : vector<1x128x128xbf16> to vector<128x128xbf16>
    %cst_40 = arith.constant dense<0.000000e+00> : vector<64x128xf32>
    %42 = tpu.matmul %39, %41, %cst_40 {dimension_numbers = #tpu.dot_dimension_numbers<[1], [0], [0], [1], [0, 0, 1, 1], [], []>} : vector<64x128xbf16>, vector<128x128xbf16>, vector<64x128xf32> -> vector<64x128xf32>
    %43 = arith.addf %36, %42 : vector<64x128xf32>
    %c1_41 = arith.constant 1 : index
    %c1_42 = arith.constant 1 : index
    %c0_43 = arith.constant 0 : index
    %44 = vector.load %arg7[%c1_41, %c1_42, %c0_43] : memref<10x10x128xf32, #tpu.memory_space<vmem>>, vector<8x8x128xf32>
    %45 = vector.shape_cast %44 : vector<8x8x128xf32> to vector<64x128xf32>
    %46 = arith.truncf %45 : vector<64x128xf32> to vector<64x128xbf16>
    %c4 = arith.constant 4 : index
    %c0_44 = arith.constant 0 : index
    %c0_45 = arith.constant 0 : index
    %47 = vector.load %arg4[%c4, %c0_44, %c0_45] : memref<9x128x128xbf16, #tpu.memory_space<vmem>>, vector<1x128x128xbf16>
    %48 = vector.shape_cast %47 : vector<1x128x128xbf16> to vector<128x128xbf16>
    %cst_46 = arith.constant dense<0.000000e+00> : vector<64x128xf32>
    %49 = tpu.matmul %46, %48, %cst_46 {dimension_numbers = #tpu.dot_dimension_numbers<[1], [0], [0], [1], [0, 0, 1, 1], [], []>} : vector<64x128xbf16>, vector<128x128xbf16>, vector<64x128xf32> -> vector<64x128xf32>
    %50 = arith.addf %43, %49 : vector<64x128xf32>
    %c1_47 = arith.constant 1 : index
    %c2_48 = arith.constant 2 : index
    %c0_49 = arith.constant 0 : index
    %51 = vector.load %arg7[%c1_47, %c2_48, %c0_49] : memref<10x10x128xf32, #tpu.memory_space<vmem>>, vector<8x8x128xf32>
    %52 = vector.shape_cast %51 : vector<8x8x128xf32> to vector<64x128xf32>
    %53 = arith.truncf %52 : vector<64x128xf32> to vector<64x128xbf16>
    %c5 = arith.constant 5 : index
    %c0_50 = arith.constant 0 : index
    %c0_51 = arith.constant 0 : index
    %54 = vector.load %arg4[%c5, %c0_50, %c0_51] : memref<9x128x128xbf16, #tpu.memory_space<vmem>>, vector<1x128x128xbf16>
    %55 = vector.shape_cast %54 : vector<1x128x128xbf16> to vector<128x128xbf16>
    %cst_52 = arith.constant dense<0.000000e+00> : vector<64x128xf32>
    %56 = tpu.matmul %53, %55, %cst_52 {dimension_numbers = #tpu.dot_dimension_numbers<[1], [0], [0], [1], [0, 0, 1, 1], [], []>} : vector<64x128xbf16>, vector<128x128xbf16>, vector<64x128xf32> -> vector<64x128xf32>
    %57 = arith.addf %50, %56 : vector<64x128xf32>
    %c2_53 = arith.constant 2 : index
    %c0_54 = arith.constant 0 : index
    %c0_55 = arith.constant 0 : index
    %58 = vector.load %arg7[%c2_53, %c0_54, %c0_55] : memref<10x10x128xf32, #tpu.memory_space<vmem>>, vector<8x8x128xf32>
    %59 = vector.shape_cast %58 : vector<8x8x128xf32> to vector<64x128xf32>
    %60 = arith.truncf %59 : vector<64x128xf32> to vector<64x128xbf16>
    %c6 = arith.constant 6 : index
    %c0_56 = arith.constant 0 : index
    %c0_57 = arith.constant 0 : index
    %61 = vector.load %arg4[%c6, %c0_56, %c0_57] : memref<9x128x128xbf16, #tpu.memory_space<vmem>>, vector<1x128x128xbf16>
    %62 = vector.shape_cast %61 : vector<1x128x128xbf16> to vector<128x128xbf16>
    %cst_58 = arith.constant dense<0.000000e+00> : vector<64x128xf32>
    %63 = tpu.matmul %60, %62, %cst_58 {dimension_numbers = #tpu.dot_dimension_numbers<[1], [0], [0], [1], [0, 0, 1, 1], [], []>} : vector<64x128xbf16>, vector<128x128xbf16>, vector<64x128xf32> -> vector<64x128xf32>
    %64 = arith.addf %57, %63 : vector<64x128xf32>
    %c2_59 = arith.constant 2 : index
    %c1_60 = arith.constant 1 : index
    %c0_61 = arith.constant 0 : index
    %65 = vector.load %arg7[%c2_59, %c1_60, %c0_61] : memref<10x10x128xf32, #tpu.memory_space<vmem>>, vector<8x8x128xf32>
    %66 = vector.shape_cast %65 : vector<8x8x128xf32> to vector<64x128xf32>
    %67 = arith.truncf %66 : vector<64x128xf32> to vector<64x128xbf16>
    %c7 = arith.constant 7 : index
    %c0_62 = arith.constant 0 : index
    %c0_63 = arith.constant 0 : index
    %68 = vector.load %arg4[%c7, %c0_62, %c0_63] : memref<9x128x128xbf16, #tpu.memory_space<vmem>>, vector<1x128x128xbf16>
    %69 = vector.shape_cast %68 : vector<1x128x128xbf16> to vector<128x128xbf16>
    %cst_64 = arith.constant dense<0.000000e+00> : vector<64x128xf32>
    %70 = tpu.matmul %67, %69, %cst_64 {dimension_numbers = #tpu.dot_dimension_numbers<[1], [0], [0], [1], [0, 0, 1, 1], [], []>} : vector<64x128xbf16>, vector<128x128xbf16>, vector<64x128xf32> -> vector<64x128xf32>
    %71 = arith.addf %64, %70 : vector<64x128xf32>
    %c2_65 = arith.constant 2 : index
    %c2_66 = arith.constant 2 : index
    %c0_67 = arith.constant 0 : index
    %72 = vector.load %arg7[%c2_65, %c2_66, %c0_67] : memref<10x10x128xf32, #tpu.memory_space<vmem>>, vector<8x8x128xf32>
    %73 = vector.shape_cast %72 : vector<8x8x128xf32> to vector<64x128xf32>
    %74 = arith.truncf %73 : vector<64x128xf32> to vector<64x128xbf16>
    %c8 = arith.constant 8 : index
    %c0_68 = arith.constant 0 : index
    %c0_69 = arith.constant 0 : index
    %75 = vector.load %arg4[%c8, %c0_68, %c0_69] : memref<9x128x128xbf16, #tpu.memory_space<vmem>>, vector<1x128x128xbf16>
    %76 = vector.shape_cast %75 : vector<1x128x128xbf16> to vector<128x128xbf16>
    %cst_70 = arith.constant dense<0.000000e+00> : vector<64x128xf32>
    %77 = tpu.matmul %74, %76, %cst_70 {dimension_numbers = #tpu.dot_dimension_numbers<[1], [0], [0], [1], [0, 0, 1, 1], [], []>} : vector<64x128xbf16>, vector<128x128xbf16>, vector<64x128xf32> -> vector<64x128xf32>
    %78 = arith.addf %71, %77 : vector<64x128xf32>
    %c0_71 = arith.constant 0 : index
    %c0_72 = arith.constant 0 : index
    %c0_73 = arith.constant 0 : index
    %c0_74 = arith.constant 0 : index
    %79 = vector.load %arg5[%c0_71, %c0_72, %c0_73, %c0_74] : memref<1x8x8x128xf32, #tpu.memory_space<vmem>>, vector<1x8x8x128xf32>
    %80 = vector.shape_cast %79 : vector<1x8x8x128xf32> to vector<8x8x128xf32>
    %81 = vector.shape_cast %80 : vector<8x8x128xf32> to vector<64x128xf32>
    %82 = arith.addf %78, %81 : vector<64x128xf32>
    %83 = vector.shape_cast %82 : vector<64x128xf32> to vector<8x8x128xf32>
    %c0_75 = arith.constant 0 : index
    %c0_76 = arith.constant 0 : index
    %c0_77 = arith.constant 0 : index
    %c0_78 = arith.constant 0 : index
    %84 = vector.load %arg6[%c0_75, %c0_76, %c0_77, %c0_78] : memref<1x8x8x128xf32, #tpu.memory_space<vmem>>, vector<1x8x8x128xf32>
    %85 = vector.shape_cast %84 : vector<1x8x8x128xf32> to vector<8x8x128xf32>
    %86 = vector.shape_cast %83 : vector<8x8x128xf32> to vector<1x8x8x128xf32>
    tpu.vector_store %arg6[%c0_75, %c0_76, %c0_77, %c0_78], %86 {strides = array<i32>} : memref<1x8x8x128xf32, #tpu.memory_space<vmem>>, vector<1x8x8x128xf32>,
    return
  }
  func.func @transform_0(%arg0: i32) -> (i32, i32, i32, i32) {
    %c0_i32 = arith.constant 0 : i32
    %c0_i32_0 = arith.constant 0 : i32
    %c0_i32_1 = arith.constant 0 : i32
    %c0_i32_2 = arith.constant 0 : i32
    return %arg0, %c0_i32, %c0_i32_0, %c0_i32_1 : i32, i32, i32, i32
  }
  func.func @transform_1(%arg0: i32) -> (i32, i32, i32) {
    %c0_i32 = arith.constant 0 : i32
    %c0_i32_0 = arith.constant 0 : i32
    %c0_i32_1 = arith.constant 0 : i32
    %c0_i32_2 = arith.constant 0 : i32
    return %c0_i32, %c0_i32_0, %c0_i32_1 : i32, i32, i32
  }
  func.func @transform_2(%arg0: i32) -> (i32, i32, i32) {
    %c0_i32 = arith.constant 0 : i32
    %c0_i32_0 = arith.constant 0 : i32
    %c0_i32_1 = arith.constant 0 : i32
    %c0_i32_2 = arith.constant 0 : i32
    return %c0_i32, %c0_i32_0, %c0_i32_1 : i32, i32, i32
  }
  func.func @transform_3(%arg0: i32) -> (i32, i32, i32) {
    %c0_i32 = arith.constant 0 : i32
    %c0_i32_0 = arith.constant 0 : i32
    %c0_i32_1 = arith.constant 0 : i32
    %c0_i32_2 = arith.constant 0 : i32
    return %c0_i32, %c0_i32_0, %c0_i32_1 : i32, i32, i32
  }
  func.func @transform_4(%arg0: i32) -> (i32, i32, i32, i32) {
    %c0_i32 = arith.constant 0 : i32
    %c0_i32_0 = arith.constant 0 : i32
    %c0_i32_1 = arith.constant 0 : i32
    %c0_i32_2 = arith.constant 0 : i32
    return %arg0, %c0_i32, %c0_i32_0, %c0_i32_1 : i32, i32, i32, i32
  }
  func.func @transform_5(%arg0: i32) -> (i32, i32, i32, i32) {
    %c0_i32 = arith.constant 0 : i32
    %c0_i32_0 = arith.constant 0 : i32
    %c0_i32_1 = arith.constant 0 : i32
    %c0_i32_2 = arith.constant 0 : i32
    return %arg0, %c0_i32, %c0_i32_0, %c0_i32_1 : i32, i32, i32, i32
  }
}

</mosaic_0001>

<bundles_post_ra>
// kernel: conv_group_forward.5
= control target key start
LH: loop header
LB: loop body
LE: loop exit
PB: predicated region body
PF: predicated region fallthrough
CT: control target
= control target key end

     0   :  { %s896_s0 = inlined_call_operand.vmem [shape: f32[512,128], index: 0, kind: input, shape index: {}]   ;;  %s897_s1 = inlined_call_operand.vmem [shape: f32[1,128], index: 1, kind: input, shape index: {}]   ;;  %s898_s2 = inlined_call_operand.vmem [shape: f32[1,128], index: 2, kind: input, shape index: {}]   ;;  %s899_s3 = inlined_call_operand.vmem [shape: f32[512,128], index: 3, kind: output, shape index: {}]  }
   0x1   :  { %v14_v0 = vld [vmem:[%s896_s0] sm:$0xff]  ;;  %v15_v4 = vld [vmem:[%s896_s0 + $0x8] sm:$0xff]  ;;  %v16_v5 = vld [vmem:[%s896_s0 + $0x10] sm:$0xff] }
   0x2   :  { %v380_v1 = vld [vmem:[%s897_s1] ss:$0 sm:$0xff]  ;;  %v17_v6 = vld [vmem:[%s896_s0 + $0x18] sm:$0xff]  ;;  %v19_v11 = vld [vmem:[%s896_s0 + $0x28] sm:$0xff] }
   0x3   :  { %v385_v2 = vld [vmem:[%s898_s2] ss:$0 sm:$0xff]  ;;  %v85_v3 = vmul.f32 %v380_v1, %v14_v0  ;;  %v86_v7 = vmul.f32 %v380_v1, %v15_v4  ;;  %v87_v8 = vmul.f32 %v380_v1, %v16_v5  ;;  %v88_v9 = vmul.f32 %v380_v1, %v17_v6  ;;  %v20_v12 = vld [vmem:[%s896_s0 + $0x30] sm:$0xff]  ;;  %v21_v17 = vld [vmem:[%s896_s0 + $0x38] sm:$0xff] }
   0x4   :  { %v18_v10 = vld [vmem:[%s896_s0 + $0x20] sm:$0xff]  ;;  %v90_v15 = vmul.f32 %v380_v1, %v19_v11  ;;  %v91_v16 = vmul.f32 %v380_v1, %v20_v12  ;;  %v92_v21 = vmul.f32 %v380_v1, %v21_v17  ;;  %v23_v27 = vld [vmem:[%s896_s0 + $0x48] sm:$0xff]  ;;  %v24_v28 = vld [vmem:[%s896_s0 + $0x50] sm:$0xff] }
   0x5   :  { %v156_v13 = vadd.f32 %v385_v2, %v85_v3  ;;  %v89_v14 = vmul.f32 %v380_v1, %v18_v10  ;;  %v157_v18 = vadd.f32 %v385_v2, %v86_v7  ;;  %v158_v19 = vadd.f32 %v385_v2, %v87_v8  ;;  %v22_v22 = vld [vmem:[%s896_s0 + $0x40] sm:$0xff]  ;;  %v25_v29 = vld [vmem:[%s896_s0 + $0x58] sm:$0xff]  ;;  %v27_v35 = vld [vmem:[%s896_s0 + $0x68] sm:$0xff] }
   0x6   :  { %v159_v20 = vadd.f32 %v385_v2, %v88_v9  ;;  %v161_v25 = vadd.f32 %v385_v2, %v90_v15  ;;  %v162_v26 = vadd.f32 %v385_v2, %v91_v16  ;;  %v163_v33 = vadd.f32 %v385_v2, %v92_v21  ;;  %v26_v34 = vld [vmem:[%s896_s0 + $0x60] sm:$0xff]  ;;  %v28_v36 = vld [vmem:[%s896_s0 + $0x70] sm:$0xff]  ;;  %v29_v41 = vld [vmem:[%s896_s0 + $0x78] sm:$0xff] }
   0x7   :  { %v220_v23 = vmax.f32 %v156_v13, 0.0  ;;  %v160_v24 = vadd.f32 %v385_v2, %v89_v14  ;;  %v221_v30 = vmax.f32 %v157_v18, 0.0  ;;  %v222_v31 = vmax.f32 %v158_v19, 0.0  ;;  %v30_v54 = vld [vmem:[%s896_s0 + $0x80] sm:$0xff]  ;;  %v31_v59 = vld [vmem:[%s896_s0 + $0x88] sm:$0xff]  ;;  %v32_v60 = vld [vmem:[%s896_s0 + $0x90] sm:$0xff] }
   0x8   :  { %v223_v32 = vmax.f32 %v159_v20, 0.0  ;;  %v225_v38 = vmax.f32 %v161_v25, 0.0  ;;  %v226_v39 = vmax.f32 %v162_v26, 0.0  ;;  %v93_v40 = vmul.f32 %v380_v1, %v22_v22  ;;  %v33_v61 = vld [vmem:[%s896_s0 + $0x98] sm:$0xff]  ;;  %v34_v4 = vld [vmem:[%s896_s0 + $0xa0] sm:$0xff]  ;;  %v35_v5 = vld [vmem:[%s896_s0 + $0xa8] sm:$0xff] }
   0x9   :  { %284 = vst [vmem:[%s899_s3] sm:$0xff] %v220_v23  ;;  %v224_v37 = vmax.f32 %v160_v24, 0.0  ;;  %285 = vst [vmem:[%s899_s3 + $0x8] sm:$0xff] %v221_v30  ;;  %v227_v42 = vmax.f32 %v163_v33, 0.0  ;;  %v94_v43 = vmul.f32 %v380_v1, %v23_v27  ;;  %v95_v44 = vmul.f32 %v380_v1, %v24_v28  ;;  %v36_v6 = vld [vmem:[%s896_s0 + $0xb0] sm:$0xff]  ;;  %v37_v11 = vld [vmem:[%s896_s0 + $0xb8] sm:$0xff] }
   0xa   :  { %286 = vst [vmem:[%s899_s3 + $0x10] sm:$0xff] %v222_v31  ;;  %287 = vst [vmem:[%s899_s3 + $0x18] sm:$0xff] %v223_v32  ;;  %v96_v45 = vmul.f32 %v380_v1, %v25_v29  ;;  %v164_v46 = vadd.f32 %v385_v2, %v93_v40  ;;  %v97_v47 = vmul.f32 %v380_v1, %v26_v34  ;;  %v38_v24 = vld [vmem:[%s896_s0 + $0xc0] sm:$0xff]  ;;  %v39_v29 = vld [vmem:[%s896_s0 + $0xc8] sm:$0xff] }
   0xb   :  { %288 = vst [vmem:[%s899_s3 + $0x20] sm:$0xff] %v224_v37  ;;  %289 = vst [vmem:[%s899_s3 + $0x28] sm:$0xff] %v225_v38  ;;  %v98_v48 = vmul.f32 %v380_v1, %v27_v35  ;;  %v99_v49 = vmul.f32 %v380_v1, %v28_v36  ;;  %v165_v50 = vadd.f32 %v385_v2, %v94_v43  ;;  %v40_v30 = vld [vmem:[%s896_s0 + $0xd0] sm:$0xff]  ;;  %v41_v31 = vld [vmem:[%s896_s0 + $0xd8] sm:$0xff] }
   0xc   :  { %290 = vst [vmem:[%s899_s3 + $0x30] sm:$0xff] %v226_v39  ;;  %291 = vst [vmem:[%s899_s3 + $0x38] sm:$0xff] %v227_v42  ;;  %v166_v51 = vadd.f32 %v385_v2, %v95_v44  ;;  %v167_v52 = vadd.f32 %v385_v2, %v96_v45  ;;  %v100_v53 = vmul.f32 %v380_v1, %v29_v41  ;;  %v228_v55 = vmax.f32 %v164_v46, 0.0  ;;  %v42_v36 = vld [vmem:[%s896_s0 + $0xe0] sm:$0xff]  ;;  %v43_v37 = vld [vmem:[%s896_s0 + $0xe8] sm:$0xff] }
   0xd   :  { %v168_v56 = vadd.f32 %v385_v2, %v97_v47  ;;  %v169_v57 = vadd.f32 %v385_v2, %v98_v48  ;;  %v170_v58 = vadd.f32 %v385_v2, %v99_v49  ;;  %v229_v62 = vmax.f32 %v165_v50, 0.0  ;;  %v44_v38 = vld [vmem:[%s896_s0 + $0xf0] sm:$0xff]  ;;  %v45_v43 = vld [vmem:[%s896_s0 + $0xf8] sm:$0xff] }
   0xe   :  { %v230_v63 = vmax.f32 %v166_v51, 0.0  ;;  %v231_v0 = vmax.f32 %v167_v52, 0.0  ;;  %v171_v3 = vadd.f32 %v385_v2, %v100_v53  ;;  %292 = vst [vmem:[%s899_s3 + $0x40] sm:$0xff] %v228_v55  ;;  %v101_v10 = vmul.f32 %v380_v1, %v30_v54 }
   0xf   :  { %v232_v7 = vmax.f32 %v168_v56, 0.0  ;;  %v233_v8 = vmax.f32 %v169_v57, 0.0  ;;  %v234_v9 = vmax.f32 %v170_v58, 0.0  ;;  %293 = vst [vmem:[%s899_s3 + $0x48] sm:$0xff] %v229_v62  ;;  %v102_v13 = vmul.f32 %v380_v1, %v31_v59  ;;  %v46_v56 = vld [vmem:[%s896_s0 + $0x100] sm:$0xff]  ;;  %v48_v62 = vld [vmem:[%s896_s0 + $0x110] sm:$0xff] }
  0x10   :  { %294 = vst [vmem:[%s899_s3 + $0x50] sm:$0xff] %v230_v63  ;;  %295 = vst [vmem:[%s899_s3 + $0x58] sm:$0xff] %v231_v0  ;;  %v235_v12 = vmax.f32 %v171_v3, 0.0  ;;  %v103_v14 = vmul.f32 %v380_v1, %v32_v60  ;;  %v104_v15 = vmul.f32 %v380_v1, %v33_v61  ;;  %v172_v16 = vadd.f32 %v385_v2, %v101_v10  ;;  %v47_v61 = vld [vmem:[%s896_s0 + $0x108] sm:$0xff]  ;;  %v49_v63 = vld [vmem:[%s896_s0 + $0x118] sm:$0xff] }
  0x11   :  { %296 = vst [vmem:[%s899_s3 + $0x60] sm:$0xff] %v232_v7  ;;  %297 = vst [vmem:[%s899_s3 + $0x68] sm:$0xff] %v233_v8  ;;  %v105_v17 = vmul.f32 %v380_v1, %v34_v4  ;;  %v106_v18 = vmul.f32 %v380_v1, %v35_v5  ;;  %v107_v19 = vmul.f32 %v380_v1, %v36_v6  ;;  %v50_v6 = vld [vmem:[%s896_s0 + $0x120] sm:$0xff]  ;;  %v51_v7 = vld [vmem:[%s896_s0 + $0x128] sm:$0xff] }
  0x12   :  { %298 = vst [vmem:[%s899_s3 + $0x70] sm:$0xff] %v234_v9  ;;  %299 = vst [vmem:[%s899_s3 + $0x78] sm:$0xff] %v235_v12  ;;  %v173_v20 = vadd.f32 %v385_v2, %v102_v13  ;;  %v174_v21 = vadd.f32 %v385_v2, %v103_v14  ;;  %v175_v22 = vadd.f32 %v385_v2, %v104_v15  ;;  %v236_v25 = vmax.f32 %v172_v16, 0.0  ;;  %v52_v8 = vld [vmem:[%s896_s0 + $0x130] sm:$0xff]  ;;  %v53_v13 = vld [vmem:[%s896_s0 + $0x138] sm:$0xff] }
  0x13   :  { %v108_v23 = vmul.f32 %v380_v1, %v37_v11  ;;  %v176_v26 = vadd.f32 %v385_v2, %v105_v17  ;;  %v177_v27 = vadd.f32 %v385_v2, %v106_v18  ;;  %v178_v28 = vadd.f32 %v385_v2, %v107_v19 }
  0x14   :  { %v237_v32 = vmax.f32 %v173_v20, 0.0  ;;  %v238_v33 = vmax.f32 %v174_v21, 0.0  ;;  %v239_v34 = vmax.f32 %v175_v22, 0.0  ;;  %300 = vst [vmem:[%s899_s3 + $0x80] sm:$0xff] %v236_v25  ;;  %v109_v42 = vmul.f32 %v380_v1, %v38_v24 }
  0x15   :  { %v179_v35 = vadd.f32 %v385_v2, %v108_v23  ;;  %v240_v39 = vmax.f32 %v176_v26, 0.0  ;;  %v241_v40 = vmax.f32 %v177_v27, 0.0  ;;  %v242_v41 = vmax.f32 %v178_v28, 0.0  ;;  %v54_v26 = vld [vmem:[%s896_s0 + $0x140] sm:$0xff] }
  0x16   :  { %301 = vst [vmem:[%s899_s3 + $0x88] sm:$0xff] %v237_v32  ;;  %302 = vst [vmem:[%s899_s3 + $0x90] sm:$0xff] %v238_v33  ;;  %v110_v45 = vmul.f32 %v380_v1, %v39_v29  ;;  %v111_v46 = vmul.f32 %v380_v1, %v40_v30  ;;  %v112_v47 = vmul.f32 %v380_v1, %v41_v31  ;;  %v55_v31 = vld [vmem:[%s896_s0 + $0x148] sm:$0xff]  ;;  %v56_v32 = vld [vmem:[%s896_s0 + $0x150] sm:$0xff] }
  0x17   :  { %303 = vst [vmem:[%s899_s3 + $0x98] sm:$0xff] %v239_v34  ;;  %v243_v44 = vmax.f32 %v179_v35, 0.0  ;;  %304 = vst [vmem:[%s899_s3 + $0xa0] sm:$0xff] %v240_v39  ;;  %v180_v48 = vadd.f32 %v385_v2, %v109_v42  ;;  %v113_v49 = vmul.f32 %v380_v1, %v42_v36  ;;  %v114_v50 = vmul.f32 %v380_v1, %v43_v37  ;;  %v57_v33 = vld [vmem:[%s896_s0 + $0x158] sm:$0xff]  ;;  %v59_v39 = vld [vmem:[%s896_s0 + $0x168] sm:$0xff] }
  0x18   :  { %305 = vst [vmem:[%s899_s3 + $0xa8] sm:$0xff] %v241_v40  ;;  %306 = vst [vmem:[%s899_s3 + $0xb0] sm:$0xff] %v242_v41  ;;  %v115_v51 = vmul.f32 %v380_v1, %v44_v38  ;;  %v181_v52 = vadd.f32 %v385_v2, %v110_v45  ;;  %v182_v53 = vadd.f32 %v385_v2, %v111_v46  ;;  %v58_v38 = vld [vmem:[%s896_s0 + $0x160] sm:$0xff]  ;;  %v60_v40 = vld [vmem:[%s896_s0 + $0x170] sm:$0xff] }
  0x19   :  { %307 = vst [vmem:[%s899_s3 + $0xb8] sm:$0xff] %v243_v44  ;;  %v183_v54 = vadd.f32 %v385_v2, %v112_v47  ;;  %v116_v55 = vmul.f32 %v380_v1, %v45_v43  ;;  %v244_v57 = vmax.f32 %v180_v48, 0.0  ;;  %v184_v58 = vadd.f32 %v385_v2, %v113_v49  ;;  %v61_v45 = vld [vmem:[%s896_s0 + $0x178] sm:$0xff] }
  0x1a   :  { %v185_v59 = vadd.f32 %v385_v2, %v114_v50  ;;  %v186_v60 = vadd.f32 %v385_v2, %v115_v51  ;;  %v245_v0 = vmax.f32 %v181_v52, 0.0  ;;  %v246_v3 = vmax.f32 %v182_v53, 0.0 }
  0x1b   :  { %v247_v4 = vmax.f32 %v183_v54, 0.0  ;;  %v187_v5 = vadd.f32 %v385_v2, %v116_v55  ;;  %308 = vst [vmem:[%s899_s3 + $0xc0] sm:$0xff] %v244_v57  ;;  %v248_v9 = vmax.f32 %v184_v58, 0.0  ;;  %v117_v12 = vmul.f32 %v380_v1, %v46_v56  ;;  %v62_v58 = vld [vmem:[%s896_s0 + $0x180] sm:$0xff] }
  0x1c   :  { %v249_v10 = vmax.f32 %v185_v59, 0.0  ;;  %v250_v11 = vmax.f32 %v186_v60, 0.0  ;;  %309 = vst [vmem:[%s899_s3 + $0xc8] sm:$0xff] %v245_v0  ;;  %310 = vst [vmem:[%s899_s3 + $0xd0] sm:$0xff] %v246_v3  ;;  %v118_v15 = vmul.f32 %v380_v1, %v47_v61  ;;  %v119_v16 = vmul.f32 %v380_v1, %v48_v62  ;;  %v64_v0 = vld [vmem:[%s896_s0 + $0x190] sm:$0xff]  ;;  %v65_v3 = vld [vmem:[%s896_s0 + $0x198] sm:$0xff] }
  0x1d   :  { %311 = vst [vmem:[%s899_s3 + $0xd8] sm:$0xff] %v247_v4  ;;  %v251_v14 = vmax.f32 %v187_v5, 0.0  ;;  %v120_v17 = vmul.f32 %v380_v1, %v49_v63  ;;  %312 = vst [vmem:[%s899_s3 + $0xe0] sm:$0xff] %v248_v9  ;;  %v188_v18 = vadd.f32 %v385_v2, %v117_v12  ;;  %v121_v19 = vmul.f32 %v380_v1, %v50_v6  ;;  %v63_v63 = vld [vmem:[%s896_s0 + $0x188] sm:$0xff] }
  0x1e   :  { %313 = vst [vmem:[%s899_s3 + $0xe8] sm:$0xff] %v249_v10  ;;  %314 = vst [vmem:[%s899_s3 + $0xf0] sm:$0xff] %v250_v11  ;;  %v122_v20 = vmul.f32 %v380_v1, %v51_v7  ;;  %v123_v21 = vmul.f32 %v380_v1, %v52_v8  ;;  %v189_v22 = vadd.f32 %v385_v2, %v118_v15  ;;  %v66_v8 = vld [vmem:[%s896_s0 + $0x1a0] sm:$0xff]  ;;  %v67_v9 = vld [vmem:[%s896_s0 + $0x1a8] sm:$0xff] }
  0x1f   :  { %315 = vst [vmem:[%s899_s3 + $0xf8] sm:$0xff] %v251_v14  ;;  %v190_v23 = vadd.f32 %v385_v2, %v119_v16  ;;  %v191_v24 = vadd.f32 %v385_v2, %v120_v17  ;;  %v124_v25 = vmul.f32 %v380_v1, %v53_v13  ;;  %v252_v27 = vmax.f32 %v188_v18, 0.0  ;;  %v68_v10 = vld [vmem:[%s896_s0 + $0x1b0] sm:$0xff]  ;;  %v69_v15 = vld [vmem:[%s896_s0 + $0x1b8] sm:$0xff] }
  0x20   :  { %v192_v28 = vadd.f32 %v385_v2, %v121_v19  ;;  %v193_v29 = vadd.f32 %v385_v2, %v122_v20  ;;  %v194_v30 = vadd.f32 %v385_v2, %v123_v21  ;;  %v253_v34 = vmax.f32 %v189_v22, 0.0 }
  0x21   :  { %v254_v35 = vmax.f32 %v190_v23, 0.0  ;;  %v255_v36 = vmax.f32 %v191_v24, 0.0  ;;  %v195_v37 = vadd.f32 %v385_v2, %v124_v25  ;;  %316 = vst [vmem:[%s899_s3 + $0x100] sm:$0xff] %v252_v27  ;;  %v125_v44 = vmul.f32 %v380_v1, %v54_v26 }
  0x22   :  { %v256_v41 = vmax.f32 %v192_v28, 0.0  ;;  %v257_v42 = vmax.f32 %v193_v29, 0.0  ;;  %v258_v43 = vmax.f32 %v194_v30, 0.0  ;;  %317 = vst [vmem:[%s899_s3 + $0x108] sm:$0xff] %v253_v34  ;;  %v126_v47 = vmul.f32 %v380_v1, %v55_v31  ;;  %v70_v28 = vld [vmem:[%s896_s0 + $0x1c0] sm:$0xff]  ;;  %v72_v34 = vld [vmem:[%s896_s0 + $0x1d0] sm:$0xff] }
  0x23   :  { %318 = vst [vmem:[%s899_s3 + $0x110] sm:$0xff] %v254_v35  ;;  %319 = vst [vmem:[%s899_s3 + $0x118] sm:$0xff] %v255_v36  ;;  %v259_v46 = vmax.f32 %v195_v37, 0.0  ;;  %v127_v48 = vmul.f32 %v380_v1, %v56_v32  ;;  %v128_v49 = vmul.f32 %v380_v1, %v57_v33  ;;  %v196_v50 = vadd.f32 %v385_v2, %v125_v44  ;;  %v71_v33 = vld [vmem:[%s896_s0 + $0x1c8] sm:$0xff]  ;;  %v73_v35 = vld [vmem:[%s896_s0 + $0x1d8] sm:$0xff] }
  0x24   :  { %320 = vst [vmem:[%s899_s3 + $0x120] sm:$0xff] %v256_v41  ;;  %321 = vst [vmem:[%s899_s3 + $0x128] sm:$0xff] %v257_v42  ;;  %v129_v51 = vmul.f32 %v380_v1, %v58_v38  ;;  %v130_v52 = vmul.f32 %v380_v1, %v59_v39  ;;  %v131_v53 = vmul.f32 %v380_v1, %v60_v40  ;;  %v74_v40 = vld [vmem:[%s896_s0 + $0x1e0] sm:$0xff]  ;;  %v75_v41 = vld [vmem:[%s896_s0 + $0x1e8] sm:$0xff] }
  0x25   :  { %322 = vst [vmem:[%s899_s3 + $0x130] sm:$0xff] %v258_v43  ;;  %323 = vst [vmem:[%s899_s3 + $0x138] sm:$0xff] %v259_v46  ;;  %v197_v54 = vadd.f32 %v385_v2, %v126_v47  ;;  %v198_v55 = vadd.f32 %v385_v2, %v127_v48  ;;  %v199_v56 = vadd.f32 %v385_v2, %v128_v49  ;;  %v260_v59 = vmax.f32 %v196_v50, 0.0  ;;  %v76_v42 = vld [vmem:[%s896_s0 + $0x1f0] sm:$0xff]  ;;  %v77_v47 = vld [vmem:[%s896_s0 + $0x1f8] sm:$0xff] }
  0x26   :  { %v132_v57 = vmul.f32 %v380_v1, %v61_v45  ;;  %v200_v60 = vadd.f32 %v385_v2, %v129_v51  ;;  %v201_v61 = vadd.f32 %v385_v2, %v130_v52  ;;  %v202_v62 = vadd.f32 %v385_v2, %v131_v53 }
  0x27   :  { %v261_v4 = vmax.f32 %v197_v54, 0.0  ;;  %v262_v5 = vmax.f32 %v198_v55, 0.0  ;;  %v263_v6 = vmax.f32 %v199_v56, 0.0  ;;  %324 = vst [vmem:[%s899_s3 + $0x140] sm:$0xff] %v260_v59  ;;  %v133_v14 = vmul.f32 %v380_v1, %v62_v58 }
  0x28   :  { %v203_v7 = vadd.f32 %v385_v2, %v132_v57  ;;  %v264_v11 = vmax.f32 %v200_v60, 0.0  ;;  %v265_v12 = vmax.f32 %v201_v61, 0.0  ;;  %v266_v13 = vmax.f32 %v202_v62, 0.0 }
  0x29   :  { %325 = vst [vmem:[%s899_s3 + $0x148] sm:$0xff] %v261_v4  ;;  %326 = vst [vmem:[%s899_s3 + $0x150] sm:$0xff] %v262_v5  ;;  %v134_v17 = vmul.f32 %v380_v1, %v63_v63  ;;  %v135_v18 = vmul.f32 %v380_v1, %v64_v0  ;;  %v136_v19 = vmul.f32 %v380_v1, %v65_v3 }
  0x2a   :  { %327 = vst [vmem:[%s899_s3 + $0x158] sm:$0xff] %v263_v6  ;;  %v267_v16 = vmax.f32 %v203_v7, 0.0  ;;  %328 = vst [vmem:[%s899_s3 + $0x160] sm:$0xff] %v264_v11  ;;  %v204_v20 = vadd.f32 %v385_v2, %v133_v14  ;;  %v137_v21 = vmul.f32 %v380_v1, %v66_v8  ;;  %v138_v22 = vmul.f32 %v380_v1, %v67_v9 }
  0x2b   :  { %329 = vst [vmem:[%s899_s3 + $0x168] sm:$0xff] %v265_v12  ;;  %330 = vst [vmem:[%s899_s3 + $0x170] sm:$0xff] %v266_v13  ;;  %v139_v23 = vmul.f32 %v380_v1, %v68_v10  ;;  %v205_v24 = vadd.f32 %v385_v2, %v134_v17  ;;  %v206_v25 = vadd.f32 %v385_v2, %v135_v18 }
  0x2c   :  { %331 = vst [vmem:[%s899_s3 + $0x178] sm:$0xff] %v267_v16  ;;  %v207_v26 = vadd.f32 %v385_v2, %v136_v19  ;;  %v140_v27 = vmul.f32 %v380_v1, %v69_v15  ;;  %v268_v29 = vmax.f32 %v204_v20, 0.0  ;;  %v208_v30 = vadd.f32 %v385_v2, %v137_v21 }
  0x2d   :  { %v209_v31 = vadd.f32 %v385_v2, %v138_v22  ;;  %v210_v32 = vadd.f32 %v385_v2, %v139_v23  ;;  %v269_v36 = vmax.f32 %v205_v24, 0.0  ;;  %v270_v37 = vmax.f32 %v206_v25, 0.0 }
  0x2e   :  { %v271_v38 = vmax.f32 %v207_v26, 0.0  ;;  %v211_v39 = vadd.f32 %v385_v2, %v140_v27  ;;  %332 = vst [vmem:[%s899_s3 + $0x180] sm:$0xff] %v268_v29  ;;  %v272_v43 = vmax.f32 %v208_v30, 0.0  ;;  %v141_v46 = vmul.f32 %v380_v1, %v70_v28 }
  0x2f   :  { %v273_v44 = vmax.f32 %v209_v31, 0.0  ;;  %v274_v45 = vmax.f32 %v210_v32, 0.0  ;;  %333 = vst [vmem:[%s899_s3 + $0x188] sm:$0xff] %v269_v36  ;;  %334 = vst [vmem:[%s899_s3 + $0x190] sm:$0xff] %v270_v37  ;;  %v142_v49 = vmul.f32 %v380_v1, %v71_v33  ;;  %v143_v50 = vmul.f32 %v380_v1, %v72_v34 }
  0x30   :  { %335 = vst [vmem:[%s899_s3 + $0x198] sm:$0xff] %v271_v38  ;;  %v275_v48 = vmax.f32 %v211_v39, 0.0  ;;  %v144_v51 = vmul.f32 %v380_v1, %v73_v35  ;;  %336 = vst [vmem:[%s899_s3 + $0x1a0] sm:$0xff] %v272_v43  ;;  %v212_v52 = vadd.f32 %v385_v2, %v141_v46  ;;  %v145_v53 = vmul.f32 %v380_v1, %v74_v40 }
  0x31   :  { %337 = vst [vmem:[%s899_s3 + $0x1a8] sm:$0xff] %v273_v44  ;;  %338 = vst [vmem:[%s899_s3 + $0x1b0] sm:$0xff] %v274_v45  ;;  %v146_v54 = vmul.f32 %v380_v1, %v75_v41  ;;  %v147_v55 = vmul.f32 %v380_v1, %v76_v42  ;;  %v213_v56 = vadd.f32 %v385_v2, %v142_v49 }
  0x32   :  { %339 = vst [vmem:[%s899_s3 + $0x1b8] sm:$0xff] %v275_v48  ;;  %v214_v57 = vadd.f32 %v385_v2, %v143_v50  ;;  %v215_v58 = vadd.f32 %v385_v2, %v144_v51  ;;  %v148_v59 = vmul.f32 %v380_v1, %v77_v47  ;;  %v276_v60 = vmax.f32 %v212_v52, 0.0 }
  0x33   :  { %v216_v61 = vadd.f32 %v385_v2, %v145_v53  ;;  %v217_v62 = vadd.f32 %v385_v2, %v146_v54  ;;  %v218_v63 = vadd.f32 %v385_v2, %v147_v55  ;;  %v277_v0 = vmax.f32 %v213_v56, 0.0 }
  0x34   :  { %v278_v3 = vmax.f32 %v214_v57, 0.0  ;;  %v279_v4 = vmax.f32 %v215_v58, 0.0  ;;  %v219_v5 = vadd.f32 %v385_v2, %v148_v59  ;;  %340 = vst [vmem:[%s899_s3 + $0x1c0] sm:$0xff] %v276_v60 }
  0x35   :  { %v280_v6 = vmax.f32 %v216_v61, 0.0  ;;  %v281_v7 = vmax.f32 %v217_v62, 0.0  ;;  %v282_v8 = vmax.f32 %v218_v63, 0.0  ;;  %341 = vst [vmem:[%s899_s3 + $0x1c8] sm:$0xff] %v277_v0 }
  0x36   :  { %342 = vst [vmem:[%s899_s3 + $0x1d0] sm:$0xff] %v278_v3  ;;  %343 = vst [vmem:[%s899_s3 + $0x1d8] sm:$0xff] %v279_v4  ;;  %v283_v1 = vmax.f32 %v219_v5, 0.0 }
  0x37   :  { %344 = vst [vmem:[%s899_s3 + $0x1e0] sm:$0xff] %v280_v6  ;;  %345 = vst [vmem:[%s899_s3 + $0x1e8] sm:$0xff] %v281_v7 }
  0x38   :  { %346 = vst [vmem:[%s899_s3 + $0x1f0] sm:$0xff] %v282_v8  ;;  %347 = vst [vmem:[%s899_s3 + $0x1f8] sm:$0xff] %v283_v1 }

// kernel: conv_group_forward.6
= control target key start
LH: loop header
LB: loop body
LE: loop exit
PB: predicated region body
PF: predicated region fallthrough
CT: control target
= control target key end

     0   :  { %s2912_s1 = inlined_call_operand.vmem [shape: bf16[1152,128], index: 1, kind: input, shape index: {}]   ;;  %s2913_s0 = inlined_call_operand.vmem [shape: bf16[128,1152], index: 0, kind: input, shape index: {}]   ;;  %s2914_s2 = inlined_call_operand.vmem [shape: f32[1,128], index: 2, kind: input, shape index: {}]   ;;  %s2915_s3 = inlined_call_operand.vmem [shape: f32[1,128], index: 3, kind: input, shape index: {}]   ;;  %s2916_s4 = inlined_call_operand.vmem [shape: f32[128,128], index: 4, kind: output, shape index: {}]  }
   0x1   :  { %v2075_v0 = vld [vmem:[%s2912_s1 + $0x78] sm:$0xff]   ;;  %v2079_v4 = vld [vmem:[%s2912_s1 + $0x70] sm:$0xff]   ;;  %v2083_v8 = vld [vmem:[%s2912_s1 + $0x68] sm:$0xff]  }
   0x2   :  { %v2076_v1 = vld [vmem:[%s2912_s1 + $0xf8] sm:$0xff]   ;;  %1755 = vmatprep.subr.bf16.mxu0 %v2075_v0  ;;  %v2080_v5 = vld [vmem:[%s2912_s1 + $0xf0] sm:$0xff]   ;;  %v2084_v9 = vld [vmem:[%s2912_s1 + $0xe8] sm:$0xff]  }
   0x3   :  { %v2077_v2 = vld [vmem:[%s2912_s1 + $0x38] sm:$0xff]   ;;  %1819 = vmatprep.subr.bf16.mxu1 %v2076_v1  ;;  %v2081_v6 = vld [vmem:[%s2912_s1 + $0x30] sm:$0xff]   ;;  %v2085_v10 = vld [vmem:[%s2912_s1 + $0x28] sm:$0xff]  }
   0x4   :  { %v2078_v3 = vld [vmem:[%s2912_s1 + $0xb8] sm:$0xff]   ;;  %1756 = vmatpush3.bf16.msra.mxu0 %v2077_v2  ;;  %v2082_v7 = vld [vmem:[%s2912_s1 + $0xb0] sm:$0xff]   ;;  %v2086_v11 = vld [vmem:[%s2912_s1 + $0xa8] sm:$0xff]  }
   0x5   :  { %1820 = vmatpush3.bf16.msra.mxu1 %v2078_v3  ;;  %1757 = vmatprep.subr.bf16.mxu0 %v2079_v4  ;;  %v2087_v12 = vld [vmem:[%s2912_s1 + $0x60] sm:$0xff]   ;;  %v2091_v16 = vld [vmem:[%s2912_s1 + $0x58] sm:$0xff]   ;;  %v2095_v20 = vld [vmem:[%s2912_s1 + $0x50] sm:$0xff]  }
   0x6   :  { %1821 = vmatprep.subr.bf16.mxu1 %v2080_v5  ;;  %v2088_v13 = vld [vmem:[%s2912_s1 + $0xe0] sm:$0xff]   ;;  %v2092_v17 = vld [vmem:[%s2912_s1 + $0xd8] sm:$0xff]   ;;  %v2096_v21 = vld [vmem:[%s2912_s1 + $0xd0] sm:$0xff]  }
   0x7   :  { %v2089_v14 = vld [vmem:[%s2912_s1 + $0x20] sm:$0xff]   ;;  %v2093_v18 = vld [vmem:[%s2912_s1 + $0x18] sm:$0xff]   ;;  %v2097_v22 = vld [vmem:[%s2912_s1 + $0x10] sm:$0xff]  }
   0x8   :  { %1758 = vmatpush3.bf16.msra.mxu0 %v2081_v6  ;;  %v2090_v15 = vld [vmem:[%s2912_s1 + $0xa0] sm:$0xff]   ;;  %v2094_v19 = vld [vmem:[%s2912_s1 + $0x98] sm:$0xff]   ;;  %v2098_v23 = vld [vmem:[%s2912_s1 + $0x90] sm:$0xff]  }
   0x9   :  { %1822 = vmatpush3.bf16.msra.mxu1 %v2082_v7  ;;  %1759 = vmatprep.subr.bf16.mxu0 %v2083_v8  ;;  %v2099_v24 = vld [vmem:[%s2912_s1 + $0x48] sm:$0xff]   ;;  %v2103_v28 = vld [vmem:[%s2912_s1 + $0x40] sm:$0xff]   ;;  %v2113_v36 = vld [vmem:[%s2912_s1 + $0x178] sm:$0xff]  }
   0xa   :  { %1823 = vmatprep.subr.bf16.mxu1 %v2084_v9  ;;  %v2100_v25 = vld [vmem:[%s2912_s1 + $0xc8] sm:$0xff]   ;;  %v2104_v29 = vld [vmem:[%s2912_s1 + $0xc0] sm:$0xff]   ;;  %v2114_v37 = vld [vmem:[%s2912_s1 + $0x1f8] sm:$0xff]  }
   0xb   :  { %v2101_v26 = vld [vmem:[%s2912_s1 + $0x8] sm:$0xff]   ;;  %v2105_v30 = vld [vmem:[%s2912_s1] sm:$0xff]   ;;  %v2115_v38 = vld [vmem:[%s2912_s1 + $0x138] sm:$0xff]  }
   0xc   :  { %1760 = vmatpush3.bf16.msra.mxu0 %v2085_v10  ;;  %v2102_v27 = vld [vmem:[%s2912_s1 + $0x88] sm:$0xff]   ;;  %v2106_v31 = vld [vmem:[%s2912_s1 + $0x80] sm:$0xff]   ;;  %v2116_v39 = vld [vmem:[%s2912_s1 + $0x1b8] sm:$0xff]  }
   0xd   :  { %1824 = vmatpush3.bf16.msra.mxu1 %v2086_v11  ;;  %1761 = vmatprep.subr.bf16.mxu0 %v2087_v12  ;;  %v2107_v32 = vld [vmem:[%s2913_s0] ss:$36 sps:$4 sm:$0xff]   ;;  %v2110_v34 = vld [vmem:[%s2913_s0 + $0x8] ss:$36 sps:$4 sm:$0xff]   ;;  %v2119_v41 = vld [vmem:[%s2913_s0 + $0x54] ss:$36 sps:$4 sm:$0xff]  }
   0xe   :  { %1825 = vmatprep.subr.bf16.mxu1 %v2088_v13  ;;  %v2109_v33 = vld [vmem:[%s2913_s0 + $0x4] ss:$36 sps:$4 sm:$0xff]   ;;  %v2112_v35 = vld [vmem:[%s2913_s0 + $0xc] ss:$36 sps:$4 sm:$0xff]   ;;  %v2127_v48 = vld [vmem:[%s2913_s0 + $0x94] ss:$36 sps:$4 sm:$0xff]  }
   0xf   :  { %1074 = vmatprep.mubr.bf16.mxu0 %v2109_v33  ;;  %1171 = vmatprep.mubr.bf16.mxu1 %v2112_v35  ;;  %v2117_v40 = vld [vmem:[%s2913_s0 + $0x4c] ss:$36 sps:$4 sm:$0xff]   ;;  %v2129_v49 = vld [vmem:[%s2913_s0 + $0x9c] ss:$36 sps:$4 sm:$0xff]   ;;  %v2139_v57 = vld [vmem:[%s2913_s0 + $0xe4] ss:$36 sps:$4 sm:$0xff]  }
  0x10   :  { %1762 = vmatpush3.bf16.msra.mxu0 %v2089_v14  ;;  %v2121_v42 = vld [vmem:[%s2913_s0 + $0x48] ss:$36 sps:$4 sm:$0xff]   ;;  %v2122_v43 = vld [vmem:[%s2913_s0 + $0x50] ss:$36 sps:$4 sm:$0xff]   ;;  %v2132_v51 = vld [vmem:[%s2913_s0 + $0x98] ss:$36 sps:$4 sm:$0xff]  }
  0x11   :  { %1826 = vmatpush3.bf16.msra.mxu1 %v2090_v15  ;;  %1763 = vmatprep.subr.bf16.mxu0 %v2091_v16  ;;  %v2123_v44 = vld [vmem:[%s2912_s1 + $0x170] sm:$0xff]   ;;  %v2133_v52 = vld [vmem:[%s2912_s1 + $0x168] sm:$0xff]   ;;  %v2137_v56 = vld [vmem:[%s2913_s0 + $0xdc] ss:$36 sps:$4 sm:$0xff]  }
  0x12   :  { %1827 = vmatprep.subr.bf16.mxu1 %v2092_v17  ;;  %v2124_v45 = vld [vmem:[%s2912_s1 + $0x1f0] sm:$0xff]   ;;  %v2134_v53 = vld [vmem:[%s2912_s1 + $0x1e8] sm:$0xff]   ;;  %v2141_v58 = vld [vmem:[%s2913_s0 + $0xd8] ss:$36 sps:$4 sm:$0xff]  }
  0x13   :  { %v2125_v46 = vld [vmem:[%s2912_s1 + $0x130] sm:$0xff]   ;;  %v2135_v54 = vld [vmem:[%s2912_s1 + $0x128] sm:$0xff]   ;;  %v2142_v59 = vld [vmem:[%s2913_s0 + $0xe0] ss:$36 sps:$4 sm:$0xff]  }
  0x14   :  { %1764 = vmatpush3.bf16.msra.mxu0 %v2093_v18  ;;  %v2126_v47 = vld [vmem:[%s2912_s1 + $0x1b0] sm:$0xff]   ;;  %v2136_v55 = vld [vmem:[%s2912_s1 + $0x1a8] sm:$0xff]   ;;  %v2143_v60 = vld [vmem:[%s2912_s1 + $0x160] sm:$0xff]  }
  0x15   :  { %1828 = vmatpush3.bf16.msra.mxu1 %v2094_v19  ;;  %1765 = vmatprep.subr.bf16.mxu0 %v2095_v20  ;;  %v2131_v50 = vld [vmem:[%s2913_s0 + $0x90] ss:$36 sps:$4 sm:$0xff]   ;;  %v2144_v61 = vld [vmem:[%s2912_s1 + $0x1e0] sm:$0xff]   ;;  %v2153_v3 = vld [vmem:[%s2912_s1 + $0x158] sm:$0xff]  }
  0x16   :  { %1829 = vmatprep.subr.bf16.mxu1 %v2096_v21  ;;  %v2145_v62 = vld [vmem:[%s2912_s1 + $0x120] sm:$0xff]   ;;  %v2149_v1 = vld [vmem:[%s2913_s0 + $0x12c] ss:$36 sps:$4 sm:$0xff]   ;;  %v2154_v5 = vld [vmem:[%s2912_s1 + $0x1d8] sm:$0xff]  }
  0x17   :  { %v2146_v63 = vld [vmem:[%s2912_s1 + $0x1a0] sm:$0xff]   ;;  %v2152_v4 = vld [vmem:[%s2913_s0 + $0x128] ss:$36 sps:$4 sm:$0xff]   ;;  %v2155_v6 = vld [vmem:[%s2912_s1 + $0x118] sm:$0xff]  }
  0x18   :  { %1766 = vmatpush3.bf16.msra.mxu0 %v2097_v22  ;;  %v2147_v0 = vld [vmem:[%s2913_s0 + $0x124] ss:$36 sps:$4 sm:$0xff]   ;;  %v2156_v7 = vld [vmem:[%s2912_s1 + $0x198] sm:$0xff]   ;;  %v2157_v8 = vld [vmem:[%s2913_s0 + $0x16c] ss:$36 sps:$4 sm:$0xff]  }
  0x19   :  { %1830 = vmatpush3.bf16.msra.mxu1 %v2098_v23  ;;  %1767 = vmatprep.subr.bf16.mxu0 %v2099_v24  ;;  %v2151_v2 = vld [vmem:[%s2913_s0 + $0x120] ss:$36 sps:$4 sm:$0xff]   ;;  %v2159_v9 = vld [vmem:[%s2913_s0 + $0x174] ss:$36 sps:$4 sm:$0xff]   ;;  %v2161_v12 = vld [vmem:[%s2913_s0 + $0x168] ss:$36 sps:$4 sm:$0xff]  }
  0x1a   :  { %1831 = vmatprep.subr.bf16.mxu1 %v2100_v25  ;;  %v2163_v10 = vld [vmem:[%s2912_s1 + $0x150] sm:$0xff]   ;;  %v2169_v17 = vld [vmem:[%s2913_s0 + $0x1bc] ss:$36 sps:$4 sm:$0xff]   ;;  %v2173_v18 = vld [vmem:[%s2912_s1 + $0x148] sm:$0xff]  }
  0x1b   :  { %v2164_v11 = vld [vmem:[%s2912_s1 + $0x1d0] sm:$0xff]   ;;  %v2174_v19 = vld [vmem:[%s2912_s1 + $0x1c8] sm:$0xff]   ;;  %v2172_v23 = vld [vmem:[%s2913_s0 + $0x1b8] ss:$36 sps:$4 sm:$0xff]  }
  0x1c   :  { %1768 = vmatpush3.bf16.msra.mxu0 %v2101_v26  ;;  %v2165_v13 = vld [vmem:[%s2912_s1 + $0x110] sm:$0xff]   ;;  %v2175_v20 = vld [vmem:[%s2912_s1 + $0x108] sm:$0xff]   ;;  %v2177_v24 = vld [vmem:[%s2913_s0 + $0x1fc] ss:$36 sps:$4 sm:$0xff]  }
  0x1d   :  { %1832 = vmatpush3.bf16.msra.mxu1 %v2102_v27  ;;  %1769 = vmatprep.subr.bf16.mxu0 %v2103_v28  ;;  %v2166_v14 = vld [vmem:[%s2912_s1 + $0x190] sm:$0xff]   ;;  %v2176_v21 = vld [vmem:[%s2912_s1 + $0x188] sm:$0xff]   ;;  %v2183_v26 = vld [vmem:[%s2912_s1 + $0x140] sm:$0xff]  }
  0x1e   :  { %1833 = vmatprep.subr.bf16.mxu1 %v2104_v29  ;;  %v2162_v15 = vld [vmem:[%s2913_s0 + $0x170] ss:$36 sps:$4 sm:$0xff]   ;;  %v2179_v25 = vld [vmem:[%s2913_s0 + $0x204] ss:$36 sps:$4 sm:$0xff]  }
  0x1f   :  { %v2167_v16 = vld [vmem:[%s2913_s0 + $0x1b4] ss:$36 sps:$4 sm:$0xff]   ;;  %v2184_v27 = vld [vmem:[%s2912_s1 + $0x1c0] sm:$0xff]  }
  0x20   :  { %1770 = vmatpush3.bf16.msra.mxu0 %v2105_v30  ;;  %v2171_v22 = vld [vmem:[%s2913_s0 + $0x1b0] ss:$36 sps:$4 sm:$0xff]   ;;  %v2185_v28 = vld [vmem:[%s2912_s1 + $0x100] sm:$0xff]   ;;  %v2181_v30 = vld [vmem:[%s2913_s0 + $0x1f8] ss:$36 sps:$4 sm:$0xff]  }
  0x21   :  { %1834 = vmatpush3.bf16.msra.mxu1 %v2106_v31  ;;  %1883 = vmatprep.subr.bf16.mxu0 %v2113_v36  ;;  %v2186_v29 = vld [vmem:[%s2912_s1 + $0x180] sm:$0xff]   ;;  %v2189_v33 = vld [vmem:[%s2913_s0 + $0x14] ss:$36 sps:$4 sm:$0xff]  }
  0x22   :  { %1947 = vmatprep.subr.bf16.mxu1 %v2114_v37  ;;  %v2182_v31 = vld [vmem:[%s2913_s0 + $0x200] ss:$36 sps:$4 sm:$0xff]   ;;  %v2187_v35 = vld [vmem:[%s2913_s0 + $0x10] ss:$36 sps:$4 sm:$0xff]   ;;  %v2190_v36 = vld [vmem:[%s2913_s0 + $0x18] ss:$36 sps:$4 sm:$0xff]  }
  0x23   :  { %1075 = vmatmul.mubr.bf16.vlgmr.msra.gmra.mxu0 %v2107_v32  ;;  %v2193_v32 = vld [vmem:[%s2912_s1 + $0x238] sm:$0xff]  }
  0x24   :  { %1172 = vmatmul.mubr.bf16.vlgmr.msra.gmra.mxu1 %v2110_v34  ;;  %1884 = vmatpush3.bf16.msra.mxu0 %v2115_v38  ;;  %v2192_v34 = vld [vmem:[%s2913_s0 + $0x1c] ss:$36 sps:$4 sm:$0xff]   ;;  %v2196_v38 = vld [vmem:[%s2913_s0 + $0x64] ss:$36 sps:$4 sm:$0xff]  }
  0x25   :  { %1948 = vmatpush3.bf16.msra.mxu1 %v2116_v39  ;;  %1082 = vmatprep.mubr.bf16.mxu0 %v2117_v40  ;;  %v2194_v37 = vld [vmem:[%s2913_s0 + $0x5c] ss:$36 sps:$4 sm:$0xff]   ;;  %v2200_v39 = vld [vmem:[%s2912_s1 + $0x230] sm:$0xff]   ;;  %v2207_v40 = vld [vmem:[%s2912_s1 + $0x228] sm:$0xff]  }
  0x26   :  { %1179 = vmatprep.mubr.bf16.mxu1 %v2119_v41  ;;  %1885 = vmatprep.subr.bf16.mxu0 %v2123_v44  ;;  %v2198_v41 = vld [vmem:[%s2913_s0 + $0x58] ss:$36 sps:$4 sm:$0xff]   ;;  %v2203_v44 = vld [vmem:[%s2913_s0 + $0xac] ss:$36 sps:$4 sm:$0xff]  }
  0x27   :  { %1949 = vmatprep.subr.bf16.mxu1 %v2124_v45  ;;  %v2214_v45 = vld [vmem:[%s2912_s1 + $0x220] sm:$0xff]  }
  0x28   :  { %1886 = vmatpush3.bf16.msra.mxu0 %v2125_v46  ;;  %v2221_v46 = vld [vmem:[%s2912_s1 + $0x218] sm:$0xff]  }
  0x29   :  { %1950 = vmatpush3.bf16.msra.mxu1 %v2126_v47  ;;  %1887 = vmatprep.subr.bf16.mxu0 %v2133_v52  ;;  %v2205_v47 = vld [vmem:[%s2913_s0 + $0xa0] ss:$36 sps:$4 sm:$0xff]   ;;  %v2212_v52 = vld [vmem:[%s2913_s0 + $0xe8] ss:$36 sps:$4 sm:$0xff]  }
  0x2a   :  { %1951 = vmatprep.subr.bf16.mxu1 %v2134_v53  ;;  %v2235_v53 = vld [vmem:[%s2912_s1 + $0x208] sm:$0xff]  }
  0x2b   :  { %1083 = vmatmul.mubr.bf16.gmra.mxu0 %v2121_v42  ;;  %v2199_v42 = vld [vmem:[%s2913_s0 + $0x60] ss:$36 sps:$4 sm:$0xff]  }
  0x2c   :  { %1180 = vmatmul.mubr.bf16.gmra.mxu1 %v2122_v43  ;;  %1090 = vmatprep.mubr.bf16.mxu0 %v2127_v48  ;;  %v2201_v43 = vld [vmem:[%s2913_s0 + $0xa4] ss:$36 sps:$4 sm:$0xff]  }
  0x2d   :  { %1187 = vmatprep.mubr.bf16.mxu1 %v2129_v49  ;;  %1888 = vmatpush3.bf16.msra.mxu0 %v2135_v54  ;;  %v2206_v48 = vld [vmem:[%s2913_s0 + $0xa8] ss:$36 sps:$4 sm:$0xff]   ;;  %v2213_v54 = vld [vmem:[%s2913_s0 + $0xf0] ss:$36 sps:$4 sm:$0xff]  }
  0x2e   :  { %1952 = vmatpush3.bf16.msra.mxu1 %v2136_v55  ;;  %1889 = vmatprep.subr.bf16.mxu0 %v2143_v60  ;;  %v2208_v49 = vld [vmem:[%s2913_s0 + $0xec] ss:$36 sps:$4 sm:$0xff]   ;;  %v2215_v55 = vld [vmem:[%s2913_s0 + $0x134] ss:$36 sps:$4 sm:$0xff]   ;;  %v2222_v60 = vld [vmem:[%s2913_s0 + $0x17c] ss:$36 sps:$4 sm:$0xff]  }
  0x2f   :  { %1953 = vmatprep.subr.bf16.mxu1 %v2144_v61  ;;  %v2224_v61 = vld [vmem:[%s2913_s0 + $0x184] ss:$36 sps:$4 sm:$0xff]  }
  0x31   :  { %1890 = vmatpush3.bf16.msra.mxu0 %v2145_v62  ;;  %v2226_v62 = vld [vmem:[%s2913_s0 + $0x178] ss:$36 sps:$4 sm:$0xff]  }
  0x32   :  { %1954 = vmatpush3.bf16.msra.mxu1 %v2146_v63  ;;  %1891 = vmatprep.subr.bf16.mxu0 %v2153_v3  ;;  %v2227_v63 = vld [vmem:[%s2913_s0 + $0x180] ss:$36 sps:$4 sm:$0xff]   ;;  %v2234_v3 = vld [vmem:[%s2913_s0 + $0x1c8] ss:$36 sps:$4 sm:$0xff]  }
  0x33   :  { %1091 = vmatmul.mubr.bf16.gmra.mxu0 %v2131_v50  ;;  %1955 = vmatprep.subr.bf16.mxu1 %v2154_v5  ;;  %v2210_v50 = vld [vmem:[%s2913_s0 + $0xf4] ss:$36 sps:$4 sm:$0xff]  }
  0x34   :  { %1188 = vmatmul.mubr.bf16.gmra.mxu1 %v2132_v51  ;;  %1098 = vmatprep.mubr.bf16.mxu0 %v2137_v56  ;;  %v2228_v51 = vld [vmem:[%s2912_s1 + $0x210] sm:$0xff]   ;;  %v2217_v56 = vld [vmem:[%s2913_s0 + $0x13c] ss:$36 sps:$4 sm:$0xff]  }
  0x35   :  { %1195 = vmatprep.mubr.bf16.mxu1 %v2139_v57  ;;  %1892 = vmatpush3.bf16.msra.mxu0 %v2155_v6  ;;  %v2242_v57 = vld [vmem:[%s2912_s1 + $0x200] sm:$0xff]   ;;  %v2238_v5 = vld [vmem:[%s2913_s0 + $0x214] ss:$36 sps:$4 sm:$0xff]   ;;  %v2240_v6 = vld [vmem:[%s2913_s0 + $0x208] ss:$36 sps:$4 sm:$0xff]  }
  0x36   :  { %1956 = vmatpush3.bf16.msra.mxu1 %v2156_v7  ;;  %1893 = vmatprep.subr.bf16.mxu0 %v2163_v10  ;;  %v2241_v7 = vld [vmem:[%s2913_s0 + $0x210] ss:$36 sps:$4 sm:$0xff]   ;;  %v2245_v10 = vld [vmem:[%s2913_s0 + $0x68] ss:$36 sps:$4 sm:$0xff]  }
  0x37   :  { %1957 = vmatprep.subr.bf16.mxu1 %v2164_v11  ;;  %v2246_v11 = vld [vmem:[%s2913_s0 + $0x188] ss:$36 sps:$4 sm:$0xff]  }
  0x39   :  { %1894 = vmatpush3.bf16.msra.mxu0 %v2165_v13  ;;  %v2248_v13 = vld [vmem:[%s2913_s0 + $0x1d0] ss:$36 sps:$4 sm:$0xff]  }
  0x3a   :  { %1958 = vmatpush3.bf16.msra.mxu1 %v2166_v14  ;;  %1895 = vmatprep.subr.bf16.mxu0 %v2173_v18  ;;  %v2249_v14 = vld [vmem:[%s2913_s0 + $0xf8] ss:$36 sps:$4 sm:$0xff]  }
  0x3b   :  { %1099 = vmatmul.mubr.bf16.gmra.mxu0 %v2141_v58  ;;  %1959 = vmatprep.subr.bf16.mxu1 %v2174_v19  ;;  %v2219_v58 = vld [vmem:[%s2913_s0 + $0x130] ss:$36 sps:$4 sm:$0xff]  }
  0x3c   :  { %1196 = vmatmul.mubr.bf16.gmra.mxu1 %v2142_v59  ;;  %1106 = vmatprep.mubr.bf16.mxu0 %v2147_v0  ;;  %v2220_v59 = vld [vmem:[%s2913_s0 + $0x138] ss:$36 sps:$4 sm:$0xff]   ;;  %v2229_v0 = vld [vmem:[%s2913_s0 + $0x1c4] ss:$36 sps:$4 sm:$0xff]  }
  0x3d   :  { %1203 = vmatprep.mubr.bf16.mxu1 %v2149_v1  ;;  %1896 = vmatpush3.bf16.msra.mxu0 %v2175_v20  ;;  %v2231_v1 = vld [vmem:[%s2913_s0 + $0x1cc] ss:$36 sps:$4 sm:$0xff]  }
  0x3e   :  { %1960 = vmatpush3.bf16.msra.mxu1 %v2176_v21  ;;  %1897 = vmatprep.subr.bf16.mxu0 %v2183_v26 }
  0x3f   :  { %1961 = vmatprep.subr.bf16.mxu1 %v2184_v27 }
  0x41   :  { %1898 = vmatpush3.bf16.msra.mxu0 %v2185_v28 }
  0x42   :  { %1962 = vmatpush3.bf16.msra.mxu1 %v2186_v29  ;;  %2027 = vmatprep.subr.bf16.mxu0 %v2193_v32 }
  0x43   :  { %1107 = vmatmul.mubr.bf16.gmra.mxu0 %v2151_v2  ;;  %2059 = vmatprep.subr.bf16.mxu1 %v2193_v32  ;;  %v2233_v2 = vld [vmem:[%s2913_s0 + $0x1c0] ss:$36 sps:$4 sm:$0xff]  }
  0x44   :  { %1204 = vmatmul.mubr.bf16.gmra.mxu1 %v2152_v4  ;;  %1114 = vmatprep.mubr.bf16.mxu0 %v2157_v8  ;;  %v2236_v4 = vld [vmem:[%s2913_s0 + $0x20c] ss:$36 sps:$4 sm:$0xff]   ;;  %v2243_v8 = vld [vmem:[%s2913_s0 + $0x20] ss:$36 sps:$4 sm:$0xff]  }
  0x45   :  { %1211 = vmatprep.mubr.bf16.mxu1 %v2159_v9  ;;  %v2244_v9 = vld [vmem:[%s2913_s0 + $0x140] ss:$36 sps:$4 sm:$0xff]  }
  0x4b   :  { %1115 = vmatmul.mubr.bf16.gmra.mxu0 %v2161_v12  ;;  %v2247_v12 = vld [vmem:[%s2913_s0 + $0xb0] ss:$36 sps:$4 sm:$0xff]  }
  0x4c   :  { %1212 = vmatmul.mubr.bf16.gmra.mxu1 %v2162_v15  ;;  %1122 = vmatprep.mubr.bf16.mxu0 %v2167_v16  ;;  %v2250_v15 = vld [vmem:[%s2913_s0 + $0x218] ss:$36 sps:$4 sm:$0xff]  }
  0x4d   :  { %1219 = vmatprep.mubr.bf16.mxu1 %v2169_v17 }
  0x53   :  { %1123 = vmatmul.mubr.bf16.gmra.mxu0 %v2171_v22 }
  0x54   :  { %1220 = vmatmul.mubr.bf16.gmra.mxu1 %v2172_v23  ;;  %1130 = vmatprep.mubr.bf16.mxu0 %v2177_v24 }
  0x55   :  { %1227 = vmatprep.mubr.bf16.mxu1 %v2179_v25 }
  0x5b   :  { %1131 = vmatmul.mubr.bf16.gmra.mxu0 %v2181_v30 }
  0x5c   :  { %1228 = vmatmul.mubr.bf16.gmra.mxu1 %v2182_v31  ;;  %1268 = vmatprep.mubr.bf16.mxu0 %v2189_v33 }
  0x5d   :  { %1365 = vmatprep.mubr.bf16.mxu1 %v2192_v34 }
  0x63   :  { %1269 = vmatmul.mubr.bf16.vlgmr.msra.gmra.mxu0 %v2187_v35 }
  0x64   :  { %1366 = vmatmul.mubr.bf16.vlgmr.msra.gmra.mxu1 %v2190_v36  ;;  %2028 = vmatpush3.bf16.msra.mxu0 %v2193_v32 }
  0x65   :  { %2067 = vmatpush3.bf16.msra.mxu1 %v2193_v32  ;;  %1276 = vmatprep.mubr.bf16.mxu0 %v2194_v37 }
  0x66   :  { %1373 = vmatprep.mubr.bf16.mxu1 %v2196_v38  ;;  %2029 = vmatprep.subr.bf16.mxu0 %v2200_v39 }
  0x67   :  { %2060 = vmatprep.subr.bf16.mxu1 %v2200_v39 }
  0x68   :  { %2030 = vmatpush3.bf16.msra.mxu0 %v2200_v39 }
  0x69   :  { %2068 = vmatpush3.bf16.msra.mxu1 %v2200_v39  ;;  %2031 = vmatprep.subr.bf16.mxu0 %v2207_v40 }
  0x6a   :  { %2061 = vmatprep.subr.bf16.mxu1 %v2207_v40 }
  0x6b   :  { %1277 = vmatmul.mubr.bf16.gmra.mxu0 %v2198_v41 }
  0x6c   :  { %1374 = vmatmul.mubr.bf16.gmra.mxu1 %v2199_v42  ;;  %1284 = vmatprep.mubr.bf16.mxu0 %v2201_v43 }
  0x6d   :  { %1381 = vmatprep.mubr.bf16.mxu1 %v2203_v44  ;;  %2032 = vmatpush3.bf16.msra.mxu0 %v2207_v40 }
  0x6e   :  { %2069 = vmatpush3.bf16.msra.mxu1 %v2207_v40  ;;  %2033 = vmatprep.subr.bf16.mxu0 %v2214_v45 }
  0x6f   :  { %2062 = vmatprep.subr.bf16.mxu1 %v2214_v45 }
  0x71   :  { %2034 = vmatpush3.bf16.msra.mxu0 %v2214_v45 }
  0x72   :  { %2070 = vmatpush3.bf16.msra.mxu1 %v2214_v45  ;;  %2035 = vmatprep.subr.bf16.mxu0 %v2221_v46 }
  0x73   :  { %1285 = vmatmul.mubr.bf16.gmra.mxu0 %v2205_v47  ;;  %2063 = vmatprep.subr.bf16.mxu1 %v2221_v46 }
  0x74   :  { %1382 = vmatmul.mubr.bf16.gmra.mxu1 %v2206_v48  ;;  %1292 = vmatprep.mubr.bf16.mxu0 %v2208_v49 }
  0x75   :  { %1389 = vmatprep.mubr.bf16.mxu1 %v2210_v50  ;;  %2036 = vmatpush3.bf16.msra.mxu0 %v2221_v46 }
  0x76   :  { %2071 = vmatpush3.bf16.msra.mxu1 %v2221_v46  ;;  %2037 = vmatprep.subr.bf16.mxu0 %v2228_v51 }
  0x77   :  { %2064 = vmatprep.subr.bf16.mxu1 %v2228_v51 }
  0x79   :  { %2038 = vmatpush3.bf16.msra.mxu0 %v2228_v51 }
  0x7a   :  { %2072 = vmatpush3.bf16.msra.mxu1 %v2228_v51  ;;  %2039 = vmatprep.subr.bf16.mxu0 %v2235_v53 }
  0x7b   :  { %1293 = vmatmul.mubr.bf16.gmra.mxu0 %v2212_v52  ;;  %2065 = vmatprep.subr.bf16.mxu1 %v2235_v53 }
  0x7c   :  { %1390 = vmatmul.mubr.bf16.gmra.mxu1 %v2213_v54  ;;  %1300 = vmatprep.mubr.bf16.mxu0 %v2215_v55 }
  0x7d   :  { %1397 = vmatprep.mubr.bf16.mxu1 %v2217_v56  ;;  %2040 = vmatpush3.bf16.msra.mxu0 %v2235_v53 }
  0x7e   :  { %2073 = vmatpush3.bf16.msra.mxu1 %v2235_v53  ;;  %2041 = vmatprep.subr.bf16.mxu0 %v2242_v57 }
  0x7f   :  { %2066 = vmatprep.subr.bf16.mxu1 %v2242_v57 }
  0x81   :  { %2042 = vmatpush3.bf16.msra.mxu0 %v2242_v57 }
  0x82   :  { %2074 = vmatpush3.bf16.msra.mxu1 %v2242_v57 }
  0x83   :  { %1301 = vmatmul.mubr.bf16.gmra.mxu0 %v2219_v58 }
  0x84   :  { %1398 = vmatmul.mubr.bf16.gmra.mxu1 %v2220_v59  ;;  %1308 = vmatprep.mubr.bf16.mxu0 %v2222_v60 }
  0x85   :  { %1405 = vmatprep.mubr.bf16.mxu1 %v2224_v61 }
  0x8b   :  { %1309 = vmatmul.mubr.bf16.gmra.mxu0 %v2226_v62 }
  0x8c   :  { %1406 = vmatmul.mubr.bf16.gmra.mxu1 %v2227_v63  ;;  %1316 = vmatprep.mubr.bf16.mxu0 %v2229_v0 }
  0x8d   :  { %1413 = vmatprep.mubr.bf16.mxu1 %v2231_v1 }
  0x93   :  { %1317 = vmatmul.mubr.bf16.gmra.mxu0 %v2233_v2 }
  0x94   :  { %1414 = vmatmul.mubr.bf16.gmra.mxu1 %v2234_v3  ;;  %1324 = vmatprep.mubr.bf16.mxu0 %v2236_v4 }
  0x95   :  { %1421 = vmatprep.mubr.bf16.mxu1 %v2238_v5 }
  0x9b   :  { %1325 = vmatmul.mubr.bf16.gmra.mxu0 %v2240_v6 }
  0x9c   :  { %1422 = vmatmul.mubr.bf16.gmra.mxu1 %v2241_v7  ;;  %2043 = vmatprep.mubr.bf16.mxu0 %v2243_v8 }
  0x9d   :  { %2051 = vmatprep.mubr.bf16.mxu1 %v2244_v9 }
  0xa3   :  { %2044 = vmatmul.mubr.bf16.vlgmr.msra.gmra.mxu0 %v2245_v10 }
  0xa4   :  { %2052 = vmatmul.mubr.bf16.vlgmr.msra.gmra.mxu1 %v2246_v11  ;;  %2047 = vmatprep.mubr.bf16.mxu0 %v2247_v12 }
  0xa5   :  { %2055 = vmatprep.mubr.bf16.mxu1 %v2248_v13 }
  0xab   :  { %2048 = vmatmul.mubr.bf16.gmra.mxu0 %v2249_v14 }
  0xac   :  { %2056 = vmatmul.mubr.bf16.gmra.mxu1 %v2250_v15 }
  0xe3   :  { %v1771_v16 = vpop.f32.mrf.mxu0 }
  0xe4   :  { %v1835_v17 = vpop.f32.mrf.mxu1 }
  0xe5   :  { %v1772_v18 = vpop.f32.mrf.mxu0 }
  0xe6   :  { %v1773_v19 = vadd.f32 %v1772_v18, %v1771_v16  ;;  %v1836_v20 = vpop.f32.mrf.mxu1 }
  0xe7   :  { %v1837_v21 = vadd.f32 %v1836_v20, %v1835_v17  ;;  %v1774_v22 = vpop.f32.mrf.mxu0 }
  0xe8   :  { %v1838_v23 = vpop.f32.mrf.mxu1 }
  0xe9   :  { %v2708_v24 = vadd.f32 %v1837_v21, %v1773_v19  ;;  %v1775_v25 = vpop.f32.mrf.mxu0 }
  0xea   :  { %v1776_v26 = vadd.f32 %v1775_v25, %v1774_v22  ;;  %v1839_v27 = vpop.f32.mrf.mxu1 }
  0xeb   :  { %v1840_v28 = vadd.f32 %v1839_v27, %v1838_v23  ;;  %v1777_v29 = vpop.f32.mrf.mxu0 }
  0xec   :  { %v1841_v30 = vpop.f32.mrf.mxu1 }
  0xed   :  { %v2710_v31 = vadd.f32 %v1840_v28, %v1776_v26  ;;  %v1778_v32 = vpop.f32.mrf.mxu0 }
  0xee   :  { %v1779_v33 = vadd.f32 %v1778_v32, %v1777_v29  ;;  %v1842_v34 = vpop.f32.mrf.mxu1 }
  0xef   :  { %v1843_v35 = vadd.f32 %v1842_v34, %v1841_v30  ;;  %v1780_v36 = vpop.f32.mrf.mxu0 }
  0xf0   :  { %v1844_v37 = vpop.f32.mrf.mxu1 }
  0xf1   :  { %v2712_v38 = vadd.f32 %v1843_v35, %v1779_v33  ;;  %v1781_v39 = vpop.f32.mrf.mxu0 }
  0xf2   :  { %v1782_v40 = vadd.f32 %v1781_v39, %v1780_v36  ;;  %v1845_v41 = vpop.f32.mrf.mxu1 }
  0xf3   :  { %v1846_v42 = vadd.f32 %v1845_v41, %v1844_v37  ;;  %v1783_v43 = vpop.f32.mrf.mxu0 }
  0xf4   :  { %v1847_v44 = vpop.f32.mrf.mxu1 }
  0xf5   :  { %v2714_v45 = vadd.f32 %v1846_v42, %v1782_v40  ;;  %v1784_v46 = vpop.f32.mrf.mxu0 }
  0xf6   :  { %v1785_v47 = vadd.f32 %v1784_v46, %v1783_v43  ;;  %v1848_v48 = vpop.f32.mrf.mxu1 }
  0xf7   :  { %v1849_v49 = vadd.f32 %v1848_v48, %v1847_v44  ;;  %v1786_v50 = vpop.f32.mrf.mxu0 }
  0xf8   :  { %v1850_v51 = vpop.f32.mrf.mxu1 }
  0xf9   :  { %v2716_v52 = vadd.f32 %v1849_v49, %v1785_v47  ;;  %v1787_v53 = vpop.f32.mrf.mxu0 }
  0xfa   :  { %v1788_v54 = vadd.f32 %v1787_v53, %v1786_v50  ;;  %v1851_v55 = vpop.f32.mrf.mxu1 }
  0xfb   :  { %v1852_v56 = vadd.f32 %v1851_v55, %v1850_v51  ;;  %v1789_v57 = vpop.f32.mrf.mxu0 }
  0xfc   :  { %v1853_v58 = vpop.f32.mrf.mxu1 }
  0xfd   :  { %v2718_v59 = vadd.f32 %v1852_v56, %v1788_v54  ;;  %v1790_v60 = vpop.f32.mrf.mxu0 }
  0xfe   :  { %v1791_v61 = vadd.f32 %v1790_v60, %v1789_v57  ;;  %v1854_v62 = vpop.f32.mrf.mxu1 }
  0xff   :  { %v1855_v63 = vadd.f32 %v1854_v62, %v1853_v58  ;;  %v1792_v0 = vpop.f32.mrf.mxu0 }
 0x100   :  { %v1856_v1 = vpop.f32.mrf.mxu1 }
 0x101   :  { %v2720_v2 = vadd.f32 %v1855_v63, %v1791_v61  ;;  %v1793_v3 = vpop.f32.mrf.mxu0 }
 0x102   :  { %v1794_v4 = vadd.f32 %v1793_v3, %v1792_v0  ;;  %v1857_v5 = vpop.f32.mrf.mxu1 }
 0x103   :  { %v1858_v6 = vadd.f32 %v1857_v5, %v1856_v1  ;;  %v1795_v7 = vpop.f32.mrf.mxu0 }
 0x104   :  { %v1859_v8 = vpop.f32.mrf.mxu1 }
 0x105   :  { %v2722_v9 = vadd.f32 %v1858_v6, %v1794_v4  ;;  %v1796_v10 = vpop.f32.mrf.mxu0 }
 0x106   :  { %v1797_v11 = vadd.f32 %v1796_v10, %v1795_v7  ;;  %v1860_v12 = vpop.f32.mrf.mxu1 }
 0x107   :  { %v1861_v13 = vadd.f32 %v1860_v12, %v1859_v8  ;;  %v1798_v14 = vpop.f32.mrf.mxu0 }
 0x108   :  { %v1862_v15 = vpop.f32.mrf.mxu1 }
 0x109   :  { %v2724_v16 = vadd.f32 %v1861_v13, %v1797_v11  ;;  %v1799_v17 = vpop.f32.mrf.mxu0 }
 0x10a   :  { %v1800_v18 = vadd.f32 %v1799_v17, %v1798_v14  ;;  %v1863_v19 = vpop.f32.mrf.mxu1 }
 0x10b   :  { %v1864_v20 = vadd.f32 %v1863_v19, %v1862_v15  ;;  %v1801_v21 = vpop.f32.mrf.mxu0 }
 0x10c   :  { %v1865_v22 = vpop.f32.mrf.mxu1 }
 0x10d   :  { %v2726_v23 = vadd.f32 %v1864_v20, %v1800_v18  ;;  %v1802_v25 = vpop.f32.mrf.mxu0 }
 0x10e   :  { %v1803_v26 = vadd.f32 %v1802_v25, %v1801_v21  ;;  %v1866_v27 = vpop.f32.mrf.mxu1 }
 0x10f   :  { %2917 = vst [vmem:[#allocation2_spill] sm:$0xff] %v2726_v23  ;;  %v1867_v28 = vadd.f32 %v1866_v27, %v1865_v22  ;;  %v1804_v29 = vpop.f32.mrf.mxu0 }
 0x110   :  { %v1868_v30 = vpop.f32.mrf.mxu1 }
 0x111   :  { %v2728_v32 = vadd.f32 %v1867_v28, %v1803_v26  ;;  %v1805_v33 = vpop.f32.mrf.mxu0 }
 0x112   :  { %v1806_v34 = vadd.f32 %v1805_v33, %v1804_v29  ;;  %v1869_v35 = vpop.f32.mrf.mxu1 }
 0x113   :  { %v1870_v36 = vadd.f32 %v1869_v35, %v1868_v30  ;;  %v1807_v37 = vpop.f32.mrf.mxu0 }
 0x114   :  { %v1871_v39 = vpop.f32.mrf.mxu1 }
 0x115   :  { %v2730_v40 = vadd.f32 %v1870_v36, %v1806_v34  ;;  %v1808_v41 = vpop.f32.mrf.mxu0 }
 0x116   :  { %v1809_v42 = vadd.f32 %v1808_v41, %v1807_v37  ;;  %v1872_v43 = vpop.f32.mrf.mxu1 }
 0x117   :  { %2918 = vst [vmem:[#allocation3_spill] sm:$0xff] %v2730_v40  ;;  %v1873_v44 = vadd.f32 %v1872_v43, %v1871_v39  ;;  %v1810_v46 = vpop.f32.mrf.mxu0 }
 0x118   :  { %v1874_v47 = vpop.f32.mrf.mxu1 }
 0x119   :  { %v2732_v48 = vadd.f32 %v1873_v44, %v1809_v42  ;;  %v1811_v49 = vpop.f32.mrf.mxu0 }
 0x11a   :  { %v1812_v50 = vadd.f32 %v1811_v49, %v1810_v46  ;;  %v1875_v51 = vpop.f32.mrf.mxu1 }
 0x11b   :  { %2919 = vst [vmem:[#allocation4_spill] sm:$0xff] %v2732_v48  ;;  %v1876_v53 = vadd.f32 %v1875_v51, %v1874_v47  ;;  %v1813_v54 = vpop.f32.mrf.mxu0 }
 0x11c   :  { %v1877_v55 = vpop.f32.mrf.mxu1 }
 0x11d   :  { %v2734_v56 = vadd.f32 %v1876_v53, %v1812_v50  ;;  %v1814_v57 = vpop.f32.mrf.mxu0 }
 0x11e   :  { %v1815_v58 = vadd.f32 %v1814_v57, %v1813_v54  ;;  %v1878_v60 = vpop.f32.mrf.mxu1 }
 0x11f   :  { %2920 = vst [vmem:[#allocation5_spill] sm:$0xff] %v2734_v56  ;;  %v1879_v61 = vadd.f32 %v1878_v60, %v1877_v55  ;;  %v1816_v62 = vpop.f32.mrf.mxu0 }
 0x120   :  { %v1880_v63 = vpop.f32.mrf.mxu1 }
 0x121   :  { %v2736_v0 = vadd.f32 %v1879_v61, %v1815_v58  ;;  %v1817_v1 = vpop.f32.mrf.mxu0 }
 0x122   :  { %v1818_v3 = vadd.f32 %v1817_v1, %v1816_v62  ;;  %v1881_v4 = vpop.f32.mrf.mxu1 }
 0x123   :  { %2921 = vst [vmem:[#allocation6_spill] sm:$0xff] %v2736_v0  ;;  %v1882_v5 = vadd.f32 %v1881_v4, %v1880_v63  ;;  %v1899_v6 = vpop.f32.mrf.mxu0 }
 0x124   :  { %v1963_v7 = vpop.f32.mrf.mxu1 }
 0x125   :  { %v2738_v8 = vadd.f32 %v1882_v5, %v1818_v3  ;;  %v1900_v10 = vpop.f32.mrf.mxu0 }
 0x126   :  { %v1964_v11 = vpop.f32.mrf.mxu1  ;;  %v1901_v5 = vadd.f32 %v1900_v10, %v1899_v6 }
 0x127   :  { %2922 = vst [vmem:[#allocation7_spill] sm:$0xff] %v2738_v8  ;;  %v1902_v12 = vpop.f32.mrf.mxu0 }
 0x128   :  { %v1966_v13 = vpop.f32.mrf.mxu1 }
 0x129   :  { %v1903_v14 = vpop.f32.mrf.mxu0 }
 0x12a   :  { %v1967_v15 = vpop.f32.mrf.mxu1  ;;  %v1904_v56 = vadd.f32 %v1903_v14, %v1902_v12 }
 0x12b   :  { %v1905_v17 = vpop.f32.mrf.mxu0 }
 0x12c   :  { %v2740_v18 = vpop.f32.mrf.mxu1 }
 0x12d   :  { %v1906_v19 = vpop.f32.mrf.mxu0 }
 0x12e   :  { %v1970_v20 = vpop.f32.mrf.mxu1 }
 0x12f   :  { %v1908_v21 = vpop.f32.mrf.mxu0 }
 0x130   :  { %v1972_v22 = vpop.f32.mrf.mxu1 }
 0x131   :  { %v1909_v25 = vpop.f32.mrf.mxu0 }
 0x132   :  { %v1973_v26 = vpop.f32.mrf.mxu1  ;;  %v1910_v40 = vadd.f32 %v1909_v25, %v1908_v21 }
 0x133   :  { %v1911_v27 = vpop.f32.mrf.mxu0 }
 0x134   :  { %v1975_v28 = vpop.f32.mrf.mxu1  ;;  %v1282_v12 = vadd.f32 %v1910_v40, %v2714_v45 }
 0x135   :  { %v1912_v29 = vpop.f32.mrf.mxu0 }
 0x136   :  { %v1976_v30 = vpop.f32.mrf.mxu1 }
 0x137   :  { %v1914_v33 = vpop.f32.mrf.mxu0 }
 0x138   :  { %v2742_v34 = vpop.f32.mrf.mxu1 }
 0x139   :  { %v1915_v35 = vpop.f32.mrf.mxu0 }
 0x13a   :  { %v2744_v36 = vpop.f32.mrf.mxu1 }
 0x13b   :  { %v1917_v37 = vpop.f32.mrf.mxu0 }
 0x13c   :  { %v2746_v39 = vpop.f32.mrf.mxu1 }
 0x13d   :  { %v1918_v41 = vpop.f32.mrf.mxu0 }
 0x13e   :  { %v2748_v42 = vpop.f32.mrf.mxu1  ;;  %v1919_v14 = vadd.f32 %v1918_v41, %v1917_v37 }
 0x13f   :  { %v1920_v43 = vpop.f32.mrf.mxu0 }
 0x140   :  { %v2750_v44 = vpop.f32.mrf.mxu1  ;;  %v1295_v40 = vadd.f32 %v1919_v14, %v2720_v2  ;;  %v2942_v14 = vld [vmem:[#allocation5_spill] sm:$0xff] }
 0x141   :  { %2923 = vst [vmem:[#allocation8_spill] sm:$0xff] %v2750_v44  ;;  %v1921_v46 = vpop.f32.mrf.mxu0  ;;  %v1916_v44 = vadd.f32 %v1915_v35, %v1914_v33  ;;  %v1977_v33 = vadd.f32 %v1976_v30, %v1975_v28 }
 0x142   :  { %v2752_v47 = vpop.f32.mrf.mxu1 }
 0x143   :  { %2924 = vst [vmem:[#allocation9_spill] sm:$0xff] %v2752_v47  ;;  %v1923_v49 = vpop.f32.mrf.mxu0  ;;  %v1965_v47 = vadd.f32 %v1964_v11, %v1963_v7  ;;  %v1974_v7 = vadd.f32 %v1973_v26, %v1972_v22  ;;  %v1290_v35 = vadd.f32 %v1916_v44, %v2718_v59  ;;  %v1983_v59 = vadd.f32 %v2748_v42, %v2746_v39  ;;  %v2937_v42 = vld [vmem:[#allocation3_spill] sm:$0xff] }
 0x144   :  { %v2754_v50 = vpop.f32.mrf.mxu1 }
 0x145   :  { %2925 = vst [vmem:[#allocation10_spill] sm:$0xff] %v2754_v50  ;;  %v1924_v51 = vpop.f32.mrf.mxu0  ;;  %v1913_v50 = vadd.f32 %v1912_v29, %v1911_v27  ;;  %v1971_v29 = vadd.f32 %v1970_v20, %v2740_v18  ;;  %v1379_v37 = vadd.f32 %v1974_v7, %v1282_v12  ;;  %v1980_v18 = vadd.f32 %v2744_v36, %v2742_v34  ;;  %v2943_v7 = vld [vmem:[#allocation6_spill] sm:$0xff] }
 0x146   :  { %v2756_v53 = vpop.f32.mrf.mxu1  ;;  %v1925_v11 = vadd.f32 %v1924_v51, %v1923_v49  ;;  %v2933_v49 = vld [vmem:[#allocation2_spill] sm:$0xff] }
 0x147   :  { %2926 = vst [vmem:[#allocation11_spill] sm:$0xff] %v2756_v53  ;;  %v1926_v54 = vpop.f32.mrf.mxu0  ;;  %v1287_v21 = vadd.f32 %v1913_v50, %v2716_v52 }
 0x148   :  { %v2758_v55 = vpop.f32.mrf.mxu1  ;;  %v1303_v30 = vadd.f32 %v1925_v11, %v2724_v16  ;;  %v2931_v44 = vld [vmem:[#allocation8_spill] sm:$0xff] }
 0x149   :  { %2927 = vst [vmem:[#allocation12_spill] sm:$0xff] %v2758_v55  ;;  %v1927_v57 = vpop.f32.mrf.mxu0  ;;  %v1907_v55 = vadd.f32 %v1906_v19, %v1905_v17  ;;  %v1968_v19 = vadd.f32 %v1967_v15, %v1966_v13  ;;  %v2787_v28 = vadd.f32 %v1977_v33, %v1287_v21 }
 0x14a   :  { %v2760_v58 = vpop.f32.mrf.mxu1 }
 0x14b   :  { %2928 = vst [vmem:[#allocation13_spill] sm:$0xff] %v2760_v58  ;;  %v1929_v60 = vpop.f32.mrf.mxu0  ;;  %v1271_v58 = vadd.f32 %v1901_v5, %v2708_v24  ;;  %v1279_v10 = vadd.f32 %v1907_v55, %v2712_v38  ;;  %v1922_v24 = vadd.f32 %v1921_v46, %v1920_v43  ;;  %v1928_v38 = vadd.f32 %v1927_v57, %v1926_v54  ;;  %v2932_v46 = vld [vmem:[#allocation9_spill] sm:$0xff] }
 0x14c   :  { %v2762_v61 = vpop.f32.mrf.mxu1  ;;  %v2934_v50 = vld [vmem:[#allocation10_spill] sm:$0xff] }
 0x14d   :  { %2929 = vst [vmem:[#allocation14_spill] sm:$0xff] %v2762_v61  ;;  %v1930_v62 = vpop.f32.mrf.mxu0  ;;  %v1368_v27 = vadd.f32 %v1965_v47, %v1271_v58  ;;  %v1376_v15 = vadd.f32 %v1971_v29, %v1279_v10  ;;  %v1298_v20 = vadd.f32 %v1922_v24, %v2722_v9  ;;  %v1986_v47 = vadd.f32 %v2932_v46, %v2931_v44 }
 0x14e   :  { %v1994_v63 = vpop.f32.mrf.mxu1  ;;  %v1306_v34 = vadd.f32 %v1928_v38, %v2933_v49  ;;  %v2935_v51 = vld [vmem:[#allocation11_spill] sm:$0xff] }
 0x14f   :  { %v1932_v1 = vpop.f32.mrf.mxu0  ;;  %v2805_v5 = vadd.f32 %v1986_v47, %v1298_v20 }
 0x150   :  { %v2764_v3 = vpop.f32.mrf.mxu1 }
 0x151   :  { %2930 = vst [vmem:[#allocation15_spill] sm:$0xff] %v2764_v3  ;;  %v1933_v4 = vpop.f32.mrf.mxu0  ;;  %v1274_v3 = vadd.f32 %v1904_v56, %v2710_v31  ;;  %v1931_v31 = vadd.f32 %v1930_v62, %v1929_v60  ;;  %v2940_v62 = vld [vmem:[#allocation4_spill] sm:$0xff] }
 0x152   :  { %v2766_v8 = vpop.f32.mrf.mxu1  ;;  %v1934_v13 = vadd.f32 %v1933_v4, %v1932_v1  ;;  %v2939_v58 = vld [vmem:[#allocation13_spill] sm:$0xff] }
 0x153   :  { %v1935_v0 = vpop.f32.mrf.mxu0  ;;  %v2781_v45 = vadd.f32 %v1968_v19, %v1274_v3  ;;  %v1311_v2 = vadd.f32 %v1931_v31, %v2728_v32  ;;  %v1392_v32 = vadd.f32 %v1983_v59, %v1295_v40  ;;  %v2823_v40 = vld [vmem:[%s2915_s3] ss:$0 sm:$0xff] }
 0x154   :  { %v2768_v48 = vpop.f32.mrf.mxu1  ;;  %v2936_v54 = vld [vmem:[#allocation14_spill] sm:$0xff]  ;;  %v1314_v16 = vadd.f32 %v1934_v13, %v2937_v42 }
 0x155   :  { %v1936_v53 = vpop.f32.mrf.mxu0  ;;  %v1995_v39 = vadd.f32 %v1994_v63, %v2936_v54  ;;  %v2813_v63 = vld [vmem:[%s2914_s2] ss:$0 sm:$0xff] }
 0x156   :  { %v2771_v61 = vpop.f32.mrf.mxu1  ;;  %v1937_v22 = vadd.f32 %v1936_v53, %v1935_v0  ;;  %v2796_v0 = vadd.f32 %v1980_v18, %v1290_v35  ;;  %v1989_v53 = vadd.f32 %v2935_v51, %v2934_v50  ;;  %v2944_v35 = vld [vmem:[#allocation7_spill] sm:$0xff] }
 0x157   :  { %v1938_v23 = vpop.f32.mrf.mxu0  ;;  %v1408_v21 = vadd.f32 %v1995_v39, %v1311_v2  ;;  %v2001_v29 = vadd.f32 %v2771_v61, %v2768_v48 }
 0x158   :  { %v2774_v6 = vpop.f32.mrf.mxu1  ;;  %v1319_v1 = vadd.f32 %v1937_v22, %v2940_v62  ;;  %v2941_v10 = vld [vmem:[#allocation15_spill] sm:$0xff]  ;;  %v1400_v24 = vadd.f32 %v1989_v53, %v1303_v30 }
 0x159   :  { %v1939_v17 = vpop.f32.mrf.mxu0  ;;  %v1998_v12 = vadd.f32 %v2766_v8, %v2941_v10 }
 0x15a   :  { %v2003_v25 = vpop.f32.mrf.mxu1  ;;  %v1940_v41 = vadd.f32 %v1939_v17, %v1938_v23  ;;  %v2938_v23 = vld [vmem:[#allocation12_spill] sm:$0xff] }
 0x15b   :  { %v1941_v56 = vpop.f32.mrf.mxu0  ;;  %v1992_v60 = vadd.f32 %v2939_v58, %v2938_v23  ;;  %v2004_v8 = vadd.f32 %v2003_v25, %v2774_v6  ;;  %v1411_v18 = vadd.f32 %v1998_v12, %v1314_v16 }
 0x15c   :  { %v2005_v55 = vpop.f32.mrf.mxu1  ;;  %v1322_v17 = vadd.f32 %v1940_v41, %v2942_v14 }
 0x15d   :  { %v1942_v52 = vpop.f32.mrf.mxu0  ;;  %v1403_v33 = vadd.f32 %v1992_v60, %v1306_v34 }
 0x15e   :  { %v2006_v26 = vpop.f32.mrf.mxu1  ;;  %v1943_v36 = vadd.f32 %v1942_v52, %v1941_v56  ;;  %v2827_v2 = vadd.f32 %v2004_v8, %v1322_v17 }
 0x15f   :  { %v1944_v43 = vpop.f32.mrf.mxu0  ;;  %v2007_v20 = vadd.f32 %v2006_v26, %v2005_v55 }
 0x160   :  { %v2008_v9 = vpop.f32.mrf.mxu1  ;;  %v1327_v11 = vadd.f32 %v1943_v36, %v2943_v7 }
 0x161   :  { %v1945_v57 = vpop.f32.mrf.mxu0 }
 0x162   :  { %v1946_v3 = vadd.f32 %v1945_v57, %v1944_v43  ;;  %v2009_v4 = vpop.f32.mrf.mxu1  ;;  %v1424_v47 = vadd.f32 %v2007_v20, %v1327_v11 }
 0x163   :  { %v2045_v19 = vpop.f32.mrf.mxu0  ;;  %v2010_v59 = vadd.f32 %v2009_v4, %v2008_v9 }
 0x164   :  { %v1473_v31 = vadd.f32 %v2045_v19, %v1376_v15  ;;  %v2053_v56 = vpop.f32.mrf.mxu1  ;;  %v1330_v38 = vadd.f32 %v1946_v3, %v2944_v35  ;;  %v1416_v15 = vadd.f32 %v2001_v29, %v1319_v1 }
 0x165   :  { %v1505_v13 = vadd.f32 %v2053_v56, %v1408_v21  ;;  %v1464_v52 = vpop.f32.mrf.mxu0 }
 0x166   :  { %v1536_v48 = vmul.f32 %v2813_v63, %v1473_v31  ;;  %v1465_v61 = vadd.f32 %v1464_v52, %v1368_v27  ;;  %v1496_v22 = vpop.f32.mrf.mxu1  ;;  %v1427_v34 = vadd.f32 %v2010_v59, %v1330_v38 }
 0x167   :  { %v1544_v30 = vmul.f32 %v2813_v63, %v1505_v13  ;;  %v1497_v6 = vadd.f32 %v1496_v22, %v1400_v24  ;;  %v2046_v25 = vpop.f32.mrf.mxu0 }
 0x168   :  { %v1559_v41 = vadd.f32 %v2823_v40, %v1536_v48  ;;  %v1534_v43 = vmul.f32 %v2813_v63, %v1465_v61  ;;  %v1476_v44 = vadd.f32 %v2046_v25, %v1379_v37  ;;  %v2054_v46 = vpop.f32.mrf.mxu1 }
 0x169   :  { %v1567_v55 = vadd.f32 %v2823_v40, %v1544_v30  ;;  %v1542_v27 = vmul.f32 %v2813_v63, %v1497_v6  ;;  %v1508_v26 = vadd.f32 %v2054_v46, %v1411_v18  ;;  %v1467_v49 = vpop.f32.mrf.mxu0 }
 0x16a   :  { %v1575_v36 = vmax.f32 %v1559_v41, 0.0  ;;  %v1557_v9 = vadd.f32 %v2823_v40, %v1534_v43  ;;  %v1537_v50 = vmul.f32 %v2813_v63, %v1476_v44  ;;  %v1468_v51 = vadd.f32 %v1467_v49, %v2781_v45  ;;  %v1499_v53 = vpop.f32.mrf.mxu1 }
 0x16b   :  { %v1583_v54 = vmax.f32 %v1567_v55, 0.0  ;;  %v1565_v37 = vadd.f32 %v2823_v40, %v1542_v27  ;;  %v1545_v39 = vmul.f32 %v2813_v63, %v1508_v26  ;;  %v1500_v42 = vadd.f32 %v1499_v53, %v1403_v33  ;;  %v2049_v16 = vpop.f32.mrf.mxu0 }
 0x16c   :  { %1591 = vst [vmem:[%s2916_s4 + $0x10] sm:$0xff] %v1575_v36  ;;  %v1573_v57 = vmax.f32 %v1557_v9, 0.0  ;;  %v1560_v23 = vadd.f32 %v2823_v40, %v1537_v50  ;;  %v1535_v58 = vmul.f32 %v2813_v63, %v1468_v51  ;;  %v1489_v60 = vadd.f32 %v2049_v16, %v1392_v32  ;;  %v2057_v62 = vpop.f32.mrf.mxu1 }
 0x16d   :  { %1599 = vst [vmem:[%s2916_s4 + $0x50] sm:$0xff] %v1583_v54  ;;  %v1581_v45 = vmax.f32 %v1565_v37, 0.0  ;;  %v1568_v1 = vadd.f32 %v2823_v40, %v1545_v39  ;;  %v1543_v3 = vmul.f32 %v2813_v63, %v1500_v42  ;;  %v1521_v4 = vadd.f32 %v2057_v62, %v1424_v47  ;;  %v1480_v10 = vpop.f32.mrf.mxu0 }
 0x16e   :  { %1589 = vst [vmem:[%s2916_s4] sm:$0xff] %v1573_v57  ;;  %v1576_v12 = vmax.f32 %v1560_v23, 0.0  ;;  %v1558_v14 = vadd.f32 %v2823_v40, %v1535_v58  ;;  %v1540_v32 = vmul.f32 %v2813_v63, %v1489_v60  ;;  %v1481_v17 = vadd.f32 %v1480_v10, %v2787_v28  ;;  %v1512_v19 = vpop.f32.mrf.mxu1 }
 0x16f   :  { %1597 = vst [vmem:[%s2916_s4 + $0x40] sm:$0xff] %v1581_v45  ;;  %v1584_v21 = vmax.f32 %v1568_v1, 0.0  ;;  %v1566_v24 = vadd.f32 %v2823_v40, %v1543_v3  ;;  %v1548_v29 = vmul.f32 %v2813_v63, %v1521_v4  ;;  %v1513_v7 = vadd.f32 %v1512_v19, %v1416_v15  ;;  %v2050_v11 = vpop.f32.mrf.mxu0 }
 0x170   :  { %1592 = vst [vmem:[%s2916_s4 + $0x18] sm:$0xff] %v1576_v12  ;;  %v1574_v31 = vmax.f32 %v1558_v14, 0.0  ;;  %v1563_v56 = vadd.f32 %v2823_v40, %v1540_v32  ;;  %v1538_v28 = vmul.f32 %v2813_v63, %v1481_v17  ;;  %v1492_v33 = vadd.f32 %v2050_v11, %v2805_v5  ;;  %v2058_v8 = vpop.f32.mrf.mxu1 }
 0x171   :  { %1600 = vst [vmem:[%s2916_s4 + $0x58] sm:$0xff] %v1584_v21  ;;  %v1582_v35 = vmax.f32 %v1566_v24, 0.0  ;;  %v1571_v38 = vadd.f32 %v2823_v40, %v1548_v29  ;;  %v1546_v13 = vmul.f32 %v2813_v63, %v1513_v7  ;;  %v1524_v52 = vadd.f32 %v2058_v8, %v1427_v34  ;;  %v1483_v18 = vpop.f32.mrf.mxu0 }
 0x172   :  { %1590 = vst [vmem:[%s2916_s4 + $0x8] sm:$0xff] %v1574_v31  ;;  %v1579_v20 = vmax.f32 %v1563_v56, 0.0  ;;  %v1561_v48 = vadd.f32 %v2823_v40, %v1538_v28  ;;  %v1541_v5 = vmul.f32 %v2813_v63, %v1492_v33  ;;  %v1484_v61 = vadd.f32 %v1483_v18, %v2796_v0  ;;  %v1515_v22 = vpop.f32.mrf.mxu1 }
 0x173   :  { %1598 = vst [vmem:[%s2916_s4 + $0x48] sm:$0xff] %v1582_v35  ;;  %v1587_v15 = vmax.f32 %v1571_v38, 0.0  ;;  %v1569_v59 = vadd.f32 %v2823_v40, %v1546_v13  ;;  %v1549_v30 = vmul.f32 %v2813_v63, %v1524_v52  ;;  %v1516_v6 = vadd.f32 %v1515_v22, %v2827_v2 }
 0x174   :  { %1595 = vst [vmem:[%s2916_s4 + $0x30] sm:$0xff] %v1579_v20  ;;  %v1577_v25 = vmax.f32 %v1561_v48, 0.0  ;;  %v1564_v41 = vadd.f32 %v2823_v40, %v1541_v5  ;;  %v1539_v0 = vmul.f32 %v2813_v63, %v1484_v61 }
 0x175   :  { %1603 = vst [vmem:[%s2916_s4 + $0x70] sm:$0xff] %v1587_v15  ;;  %v1585_v43 = vmax.f32 %v1569_v59, 0.0  ;;  %v1572_v44 = vadd.f32 %v2823_v40, %v1549_v30  ;;  %v1547_v46 = vmul.f32 %v2813_v63, %v1516_v6 }
 0x176   :  { %1593 = vst [vmem:[%s2916_s4 + $0x20] sm:$0xff] %v1577_v25  ;;  %v1580_v2 = vmax.f32 %v1564_v41, 0.0  ;;  %v1562_v47 = vadd.f32 %v2823_v40, %v1539_v0 }
 0x177   :  { %1601 = vst [vmem:[%s2916_s4 + $0x60] sm:$0xff] %v1585_v43  ;;  %v1588_v55 = vmax.f32 %v1572_v44, 0.0  ;;  %v1570_v27 = vadd.f32 %v2823_v40, %v1547_v46 }
 0x178   :  { %1596 = vst [vmem:[%s2916_s4 + $0x38] sm:$0xff] %v1580_v2  ;;  %v1578_v26 = vmax.f32 %v1562_v47, 0.0 }
 0x179   :  { %1604 = vst [vmem:[%s2916_s4 + $0x78] sm:$0xff] %v1588_v55  ;;  %v1586_v63 = vmax.f32 %v1570_v27, 0.0 }
 0x17a   :  { %1594 = vst [vmem:[%s2916_s4 + $0x28] sm:$0xff] %v1578_v26 }
 0x17b   :  { %1602 = vst [vmem:[%s2916_s4 + $0x68] sm:$0xff] %v1586_v63 }

// kernel: conv_group_forward.7
= control target key start
LH: loop header
LB: loop body
LE: loop exit
PB: predicated region body
PF: predicated region fallthrough
CT: control target
= control target key end

     0   :  { %s2729_s27 = smov 0   ;;  %s3276_s0 = inlined_call_operand.vmem [shape: f32[2,8,8,128], index: 0, kind: input, shape index: {}]   ;;  %s3277_s1 = inlined_call_operand.vmem [shape: f32[1,1,128], index: 1, kind: input, shape index: {}, may-alias: {1,5}]   ;;  %s3278_s2 = inlined_call_operand.vmem [shape: f32[1,1,128], index: 2, kind: input, shape index: {}, may-alias: {2,6}]   ;;  %s3279_s3 = inlined_call_operand.vmem [shape: bf16[9,128,128], index: 3, kind: input, shape index: {}]   ;;  %s3280_s4 = inlined_call_operand.vmem [shape: f32[2,8,8,128], index: 4, kind: input, shape index: {}]   ;;  %s3281_s5 = inlined_call_operand.vmem [shape: f32[1,1,128], index: 5, kind: input, shape index: {}, may-alias: {1,5}]   ;;  %s3282_s6 = inlined_call_operand.vmem [shape: f32[1,1,128], index: 6, kind: input, shape index: {}, may-alias: {2,6}]   ;;  %s3283_s7 = inlined_call_operand.vmem [shape: bf16[128,128], index: 7, kind: input, shape index: {}]   ;;  %s3284_s8 = inlined_call_operand.vmem [shape: f32[2,8,8,128], index: 8, kind: output, shape index: {}]  }
   0x1 LB: > { %s1998_s28 = sadd.s32 4294967295, %s2681_s27   ;;  %p2002_p0 = scmp.ge.s32.totalorder %s2681_s27, 1  ;;  %s2681_s27 = sphi %s2729_s27, %s18_s27  }
   0x2   : > { %p272_p1 = scmp.lt.s32.totalorder %s2681_s27, 3 }
   0x4   : > { %p273_p2 = pnand %p2002_p0, %p272_p1 }
   0x6   : > { %276 = sbr.rel (%p273_p2) target bundleno = 384 (0x180), region = 52 }
   0xb   : > { %v2595_v0 = vld [vmem:[%s3279_s3 + $0x78] sm:$0xff]   ;;  %v2597_v2 = vld [vmem:[%s3279_s3 + $0x70] sm:$0xff]   ;;  %p2748_p3 = scmp.lt.s32.totalorder %s1998_s28, 1  ;;  %v2683_v3 = vmov 0.0   ;;  %v2599_v5 = vld [vmem:[%s3279_s3 + $0x68] sm:$0xff]  }
   0xc   : > { %v2596_v1 = vld [vmem:[%s3279_s3 + $0x38] sm:$0xff]   ;;  %2346 = vmatprep.subr.bf16.mxu0 %v2595_v0  ;;  %327 = vst [vmem:[#allocation2] sm:$0xff] %v2683_v3  ;;  %328 = vst [vmem:[#allocation2 + $0x8] sm:$0x3] %v2683_v3  ;;  %v2598_v4 = vld [vmem:[%s3279_s3 + $0x30] sm:$0xff]  }
   0xd   : > { %329 = vst [vmem:[#allocation2 + $0x10] sm:$0xff] %v2683_v3  ;;  %330 = vst [vmem:[#allocation2 + $0x18] sm:$0x3] %v2683_v3  ;;  %2370 = vmatprep.subr.bf16.mxu1 %v2596_v1  ;;  %2347 = vmatpush3.bf16.msra.mxu0 %v2595_v0  ;;  %v2600_v6 = vld [vmem:[%s3279_s3 + $0x28] sm:$0xff]   ;;  %s3305_s28 = smov (!%p2748_p3, %s1998_s28), 1  ;;  %v2601_v7 = vld [vmem:[%s3279_s3 + $0x60] sm:$0xff]  }
   0xe   : > { %331 = vst [vmem:[#allocation2 + $0x20] sm:$0xff] %v2683_v3  ;;  %332 = vst [vmem:[#allocation2 + $0x28] sm:$0x3] %v2683_v3  ;;  %2371 = vmatpush3.bf16.msra.mxu1 %v2596_v1  ;;  %2348 = vmatprep.subr.bf16.mxu0 %v2597_v2  ;;  %v2602_v8 = vld [vmem:[%s3279_s3 + $0x20] sm:$0xff]   ;;  %s2791_s24 = sshll.u32 %s3305_s28, 6  ;;  %v2603_v9 = vld [vmem:[%s3279_s3 + $0x58] sm:$0xff]  }
   0xf   : > { %333 = vst [vmem:[#allocation2 + $0x30] sm:$0xff] %v2683_v3  ;;  %334 = vst [vmem:[#allocation2 + $0x38] sm:$0x3] %v2683_v3  ;;  %2372 = vmatprep.subr.bf16.mxu1 %v2598_v4  ;;  %v2604_v10 = vld [vmem:[%s3279_s3 + $0x18] sm:$0xff]   ;;  %s2803_s11 = scalar_lea.vmem %s3276_s0, %s2791_s24  ;;  %v2605_v11 = vld [vmem:[%s3279_s3 + $0x50] sm:$0xff]   ;;  %s3128_s25 = scalar_lea.vmem %s3280_s4, %s2791_s24 }
  0x10   : > { %335 = vst [vmem:[#allocation2 + $0x40] sm:$0xff] %v2683_v3  ;;  %336 = vst [vmem:[#allocation2 + $0x48] sm:$0x3] %v2683_v3  ;;  %v347_v12 = vld [vmem:[%s2803_s11] sm:$0xff]  ;;  %v2606_v15 = vld [vmem:[%s3279_s3 + $0x10] sm:$0xff]   ;;  %s3260_s29 = scalar_lea.vmem %s3284_s8, %s2791_s24 }
  0x11   : > { %337 = vst [vmem:[#allocation2 + $0x50] sm:$0xff] %v2683_v3  ;;  %338 = vst [vmem:[#allocation2 + $0x58] sm:$0x3] %v2683_v3  ;;  %2349 = vmatpush3.bf16.msra.mxu0 %v2597_v2  ;;  %v2812_v13 = vld [vmem:[%s3277_s1] ss:$0 sm:$0xff]  ;;  %v348_v17 = vld [vmem:[%s2803_s11 + $0x8] sm:$0xff] }
  0x12   : > { %339 = vst [vmem:[#allocation2 + $0x60] sm:$0xff] %v2683_v3  ;;  %340 = vst [vmem:[#allocation2 + $0x68] sm:$0x3] %v2683_v3  ;;  %2373 = vmatpush3.bf16.msra.mxu1 %v2598_v4  ;;  %2350 = vmatprep.subr.bf16.mxu0 %v2599_v5  ;;  %v2817_v14 = vld [vmem:[%s3278_s2] ss:$0 sm:$0xff]  ;;  %v362_v16 = vmul.f32 %v2812_v13, %v347_v12  ;;  %v349_v18 = vld [vmem:[%s2803_s11 + $0x10] sm:$0xff]  ;;  %v363_v19 = vmul.f32 %v2812_v13, %v348_v17 }
  0x13   : > { %341 = vst [vmem:[#allocation2 + $0x70] sm:$0xff] %v2683_v3  ;;  %342 = vst [vmem:[#allocation2 + $0x78] sm:$0x3] %v2683_v3  ;;  %2374 = vmatprep.subr.bf16.mxu1 %v2600_v6  ;;  %v364_v20 = vmul.f32 %v2812_v13, %v349_v18  ;;  %v2607_v21 = vld [vmem:[%s3279_s3 + $0x48] sm:$0xff]   ;;  %v2609_v31 = vld [vmem:[%s3279_s3 + $0x40] sm:$0xff]  }
  0x14   : > { %343 = vst [vmem:[#allocation2 + $0x80] sm:$0xff] %v2683_v3  ;;  %344 = vst [vmem:[#allocation2 + $0x88] sm:$0x3] %v2683_v3  ;;  %v377_v22 = vadd.f32 %v2817_v14, %v362_v16  ;;  %v430_v23 = vld [vmem:[#allocation2 + $0x1] sm:$0xff]  ;;  %v378_v24 = vadd.f32 %v2817_v14, %v363_v19  ;;  %v2611_v33 = vld [vmem:[%s3279_s3 + $0xb8] sm:$0xff]  }
  0x15   : > { %345 = vst [vmem:[#allocation2 + $0x90] sm:$0xff] %v2683_v3  ;;  %346 = vst [vmem:[#allocation2 + $0x98] sm:$0x3] %v2683_v3  ;;  %2351 = vmatpush3.bf16.msra.mxu0 %v2599_v5  ;;  %v379_v25 = vadd.f32 %v2817_v14, %v364_v20  ;;  %v2608_v26 = vld [vmem:[%s3279_s3 + $0x8] sm:$0xff]   ;;  %v2610_v32 = vld [vmem:[%s3279_s3] sm:$0xff]  }
  0x16   : > { %2375 = vmatpush3.bf16.msra.mxu1 %v2600_v6  ;;  %2352 = vmatprep.subr.bf16.mxu0 %v2601_v7  ;;  %v2836_v27 = vmax.f32 %v377_v22, 0.0  ;;  %v2838_v28 = vmax.f32 %v378_v24, 0.0  ;;  %v2612_v34 = vld [vmem:[%s3279_s3 + $0xf8] sm:$0xff]   ;;  %v351_v36 = vld [vmem:[%s2803_s11 + $0x20] sm:$0xff]  ;;  %v352_v39 = vld [vmem:[%s2803_s11 + $0x28] sm:$0xff] }
  0x17   : > { %2376 = vmatprep.subr.bf16.mxu1 %v2602_v8  ;;  %v2840_v29 = vmax.f32 %v379_v25, 0.0  ;;  %v350_v35 = vld [vmem:[%s2803_s11 + $0x18] sm:$0xff]  ;;  %v366_v38 = vmul.f32 %v2812_v13, %v351_v36  ;;  %v353_v40 = vld [vmem:[%s2803_s11 + $0x30] sm:$0xff]  ;;  %v367_v43 = vmul.f32 %v2812_v13, %v352_v39  ;;  %v2615_v60 = vld [vmem:[%s3279_s3 + $0xa8] sm:$0xff]  }
  0x18   : > { %394 = vst [vmem:[#allocation2 + $0x11] sm:$0xff] %v2836_v27  ;;  %v438_v30 = vpack.c.bf16 %v2836_v27, %v430_v23  ;;  %395 = vst [vmem:[#allocation2 + $0x21] sm:$0xff] %v2838_v28  ;;  %v365_v37 = vmul.f32 %v2812_v13, %v350_v35  ;;  %v368_v44 = vmul.f32 %v2812_v13, %v353_v40  ;;  %v2613_v51 = vld [vmem:[%s3279_s3 + $0xb0] sm:$0xff]   ;;  %v2616_v62 = vld [vmem:[%s3279_s3 + $0xe8] sm:$0xff]  }
  0x19   : > { %2353 = vmatpush3.bf16.msra.mxu0 %v2601_v7  ;;  %396 = vst [vmem:[#allocation2 + $0x31] sm:$0xff] %v2840_v29  ;;  %v2868_v42 = vpack.c.bf16 %v2840_v29, %v2838_v28  ;;  %v381_v49 = vadd.f32 %v2817_v14, %v366_v38  ;;  %v382_v52 = vadd.f32 %v2817_v14, %v367_v43  ;;  %v2614_v54 = vld [vmem:[%s3279_s3 + $0xf0] sm:$0xff]   ;;  %v685_v63 = vld [vmem:[#allocation2 + $0x2] sm:$0xff]  ;;  %v2619_v12 = vld [vmem:[%s3279_s3 + $0x98] sm:$0xff]  }
  0x1a   : > { %2377 = vmatpush3.bf16.msra.mxu1 %v2602_v8  ;;  %2354 = vmatprep.subr.bf16.mxu0 %v2603_v9  ;;  %v380_v48 = vadd.f32 %v2817_v14, %v365_v37  ;;  %v383_v53 = vadd.f32 %v2817_v14, %v368_v44  ;;  %v2617_v4 = vld [vmem:[%s3279_s3 + $0xa0] sm:$0xff]   ;;  %v2620_v16 = vld [vmem:[%s3279_s3 + $0xd8] sm:$0xff]   ;;  %v2621_v18 = vld [vmem:[%s3279_s3 + $0x90] sm:$0xff]  }
  0x1b   : > { %2378 = vmatprep.subr.bf16.mxu1 %v2604_v10  ;;  %2362 = vmatprep.mubr.bf16.mxu0 %v438_v30  ;;  %v2891_v56 = vmax.f32 %v381_v49, 0.0  ;;  %v2894_v57 = vmax.f32 %v382_v52, 0.0  ;;  %v2618_v5 = vld [vmem:[%s3279_s3 + $0xe0] sm:$0xff]   ;;  %v354_v17 = vld [vmem:[%s2803_s11 + $0x38] sm:$0xff]  ;;  %v2622_v20 = vld [vmem:[%s3279_s3 + $0xd0] sm:$0xff]  }
  0x1c   : > { %v2889_v55 = vmax.f32 %v380_v48, 0.0  ;;  %v2896_v58 = vmax.f32 %v383_v53, 0.0  ;;  %v369_v19 = vmul.f32 %v2812_v13, %v354_v17  ;;  %v2623_v22 = vld [vmem:[%s3279_s3 + $0x88] sm:$0xff]   ;;  %v2626_v24 = vld [vmem:[%s3279_s3 + $0xc0] sm:$0xff]   ;;  %v2627_v30 = vld [vmem:[%s3279_s3 + $0x138] sm:$0xff]  }
  0x1d   : > { %2355 = vmatpush3.bf16.msra.mxu0 %v2603_v9  ;;  %398 = vst [vmem:[#allocation2 + $0x51] sm:$0xff] %v2891_v56  ;;  %399 = vst [vmem:[#allocation2 + $0x61] sm:$0xff] %v2894_v57  ;;  %v995_v61 = vpack.c.bf16 %v2894_v57, %v2891_v56  ;;  %v2624_v13 = vld [vmem:[%s3279_s3 + $0xc8] sm:$0xff]   ;;  %v2629_v36 = vld [vmem:[%s3279_s3 + $0x130] sm:$0xff]  }
  0x1e   : > { %2379 = vmatpush3.bf16.msra.mxu1 %v2604_v10  ;;  %2356 = vmatprep.subr.bf16.mxu0 %v2605_v11  ;;  %397 = vst [vmem:[#allocation2 + $0x41] sm:$0xff] %v2889_v55  ;;  %v2903_v59 = vpack.c.bf16 %v2891_v56, %v2889_v55  ;;  %400 = vst [vmem:[#allocation2 + $0x71] sm:$0xff] %v2896_v58  ;;  %v2920_v1 = vpack.c.bf16 %v2896_v58, %v2894_v57  ;;  %v2630_v37 = vld [vmem:[%s3279_s3 + $0x170] sm:$0xff]   ;;  %v2631_v43 = vld [vmem:[%s3279_s3 + $0x128] sm:$0xff]  }
  0x1f   : > { %2380 = vmatprep.subr.bf16.mxu1 %v2606_v15  ;;  %v2864_v41 = vld [vmem:[#allocation2 + $0x10] sm:$0xff]  ;;  %v404_v46 = vld [vmem:[#allocation2 + $0x20] sm:$0xff]  ;;  %v2635_v53 = vld [vmem:[%s3279_s3 + $0x118] sm:$0xff]  }
  0x20   : > { %v410_v45 = vpack.c.bf16 %v2864_v41, %v2683_v3  ;;  %v2874_v47 = vld [vmem:[#allocation2 + $0x30] sm:$0xff]  ;;  %v687_v25 = vld [vmem:[#allocation2 + $0x22] sm:$0xff]  ;;  %v2651_v57 = vld [vmem:[%s3279_s3 + $0x198] sm:$0xff]  }
  0x21   : > { %2357 = vmatpush3.bf16.msra.mxu0 %v2605_v11  ;;  %v2879_v50 = vpack.c.bf16 %v2874_v47, %v404_v46  ;;  %v2916_v0 = vld [vmem:[#allocation2 + $0x12] sm:$0xff]  ;;  %v843_v11 = vpack.c.bf16 %v404_v46, %v2864_v41  ;;  %v2633_v48 = vld [vmem:[%s3279_s3 + $0x120] sm:$0xff]  }
  0x22   : > { %2381 = vmatpush3.bf16.msra.mxu1 %v2606_v15  ;;  %2358 = vmatprep.subr.bf16.mxu0 %v2607_v21  ;;  %v693_v2 = vpack.c.bf16 %v2916_v0, %v685_v63  ;;  %v2634_v49 = vld [vmem:[%s3279_s3 + $0x160] sm:$0xff]   ;;  %v1143_v52 = vpack.c.bf16 %v687_v25, %v2916_v0 }
  0x23   : > { %2382 = vmatprep.subr.bf16.mxu1 %v2608_v26  ;;  %2386 = vmatprep.mubr.bf16.mxu1 %v410_v45  ;;  %v2632_v45 = vld [vmem:[%s3279_s3 + $0x168] sm:$0xff]   ;;  %v2641_v63 = vld [vmem:[%s3279_s3 + $0x100] sm:$0xff]  }
  0x24   : > { %v2931_v7 = vld [vmem:[#allocation2 + $0x50] sm:$0xff]  ;;  %v2938_v9 = vld [vmem:[#allocation2 + $0x60] sm:$0xff] }
  0x25   : > { %2359 = vmatpush3.bf16.msra.mxu0 %v2607_v21  ;;  %v2929_v6 = vld [vmem:[#allocation2 + $0x40] sm:$0xff]  ;;  %v2940_v10 = vld [vmem:[#allocation2 + $0x70] sm:$0xff]  ;;  %v384_v21 = vadd.f32 %v2817_v14, %v369_v19  ;;  %v845_v41 = vpack.c.bf16 %v2938_v9, %v2931_v7 }
  0x26   : > { %2383 = vmatpush3.bf16.msra.mxu1 %v2608_v26  ;;  %2360 = vmatprep.subr.bf16.mxu0 %v2609_v31  ;;  %v2936_v8 = vpack.c.bf16 %v2931_v7, %v2929_v6  ;;  %v2948_v15 = vpack.c.bf16 %v2940_v10, %v2938_v9  ;;  %v2625_v14 = vld [vmem:[%s3279_s3 + $0x80] sm:$0xff]   ;;  %v2979_v26 = vld [vmem:[#allocation2 + $0x32] sm:$0xff]  ;;  %v844_v35 = vpack.c.bf16 %v2929_v6, %v2874_v47 }
  0x27   : > { %2384 = vmatprep.subr.bf16.mxu1 %v2610_v32  ;;  %v2967_v23 = vmax.f32 %v384_v21, 0.0  ;;  %v3006_v39 = vld [vmem:[#allocation2 + $0x62] sm:$0xff]  ;;  %v3009_v40 = vld [vmem:[#allocation2 + $0x72] sm:$0xff] }
  0x28   : > { %v3024_v46 = vpack.c.bf16 %v3009_v40, %v3006_v39  ;;  %v2642_v0 = vld [vmem:[%s3279_s3 + $0x140] sm:$0xff]   ;;  %v2645_v7 = vld [vmem:[%s3279_s3 + $0x1b0] sm:$0xff]  }
  0x29   : > { %2361 = vmatpush3.bf16.msra.mxu0 %v2609_v31  ;;  %401 = vst [vmem:[#allocation2 + $0x81] sm:$0xff] %v2967_v23  ;;  %v2628_v31 = vld [vmem:[%s3279_s3 + $0x178] sm:$0xff]   ;;  %v2646_v9 = vld [vmem:[%s3279_s3 + $0x1f0] sm:$0xff]   ;;  %v2649_v17 = vld [vmem:[%s3279_s3 + $0x1a0] sm:$0xff]  }
  0x2a   : > { %2385 = vmatpush3.bf16.msra.mxu1 %v2610_v32  ;;  %2394 = vmatprep.subr.bf16.mxu0 %v2611_v33  ;;  %v2987_v32 = vld [vmem:[#allocation2 + $0x42] sm:$0xff] }
  0x2b   : > { %2418 = vmatprep.subr.bf16.mxu1 %v2612_v34  ;;  %v1144_v6 = vpack.c.bf16 %v2987_v32, %v2979_v26  ;;  %v2650_v56 = vld [vmem:[%s3279_s3 + $0x1e0] sm:$0xff]  }
  0x2c   : > { %2363 = vmatmul.mubr.bf16.vlgmr.msra.gmra.mxu0 %v2868_v42  ;;  %v2657_v19 = vld [vmem:[%s3279_s3 + $0x180] sm:$0xff]  }
  0x2d   : > { %2387 = vmatmul.mubr.bf16.vlgmr.msra.gmra.mxu1 %v2879_v50  ;;  %2395 = vmatpush3.bf16.msra.mxu0 %v2611_v33  ;;  %v2990_v33 = vpack.c.bf16 %v2979_v26, %v687_v25  ;;  %v1736_v21 = vld [vmem:[%s3128_s25] sm:$0xff] }
  0x2e   : > { %2419 = vmatpush3.bf16.msra.mxu1 %v2612_v34  ;;  %2396 = vmatprep.subr.bf16.mxu0 %v2613_v51  ;;  %v2992_v34 = vld [vmem:[#allocation2 + $0x52] sm:$0xff] }
  0x2f   : > { %2420 = vmatprep.subr.bf16.mxu1 %v2614_v54  ;;  %2366 = vmatprep.mubr.bf16.mxu0 %v2903_v59  ;;  %v3004_v38 = vpack.c.bf16 %v2992_v34, %v2987_v32  ;;  %v2662_v32 = vld [vmem:[%s3283_s7 + $0x30] sm:$0xff]  }
  0x30   : > { %2390 = vmatprep.mubr.bf16.mxu1 %v2936_v8  ;;  %v3016_v44 = vld [vmem:[#allocation2 + $0x80] sm:$0xff] }
  0x31   : > { %2397 = vmatpush3.bf16.msra.mxu0 %v2613_v51  ;;  %v846_v47 = vpack.c.bf16 %v3016_v44, %v2940_v10  ;;  %v993_v51 = vpack.c.bf16 %v2838_v28, %v2836_v27  ;;  %v2637_v27 = vld [vmem:[%s3279_s3 + $0x110] sm:$0xff]   ;;  %v1145_v10 = vpack.c.bf16 %v3006_v39, %v2992_v34  ;;  %v1297_v39 = vpack.c.bf16 %v2683_v3, %v3016_v44 }
  0x32   : > { %2421 = vmatpush3.bf16.msra.mxu1 %v2614_v54  ;;  %2398 = vmatprep.subr.bf16.mxu0 %v2615_v60  ;;  %v2636_v54 = vld [vmem:[%s3279_s3 + $0x158] sm:$0xff]   ;;  %v2638_v28 = vld [vmem:[%s3279_s3 + $0x150] sm:$0xff]  }
  0x33   : > { %2422 = vmatprep.subr.bf16.mxu1 %v2616_v62  ;;  %v2669_v44 = vld [vmem:[%s3279_s3 + $0x210] sm:$0xff]  }
  0x34   : > { %2367 = vmatmul.mubr.bf16.gmra.mxu0 %v2920_v1 }
  0x35   : > { %2399 = vmatpush3.bf16.msra.mxu0 %v2615_v60  ;;  %2410 = vmatprep.mubr.bf16.mxu0 %v693_v2  ;;  %v2639_v60 = vld [vmem:[%s3279_s3 + $0x108] sm:$0xff]   ;;  %v2643_v2 = vld [vmem:[%s3279_s3 + $0x1b8] sm:$0xff]  }
  0x36   : > { %2423 = vmatpush3.bf16.msra.mxu1 %v2616_v62  ;;  %2400 = vmatprep.subr.bf16.mxu0 %v2617_v4  ;;  %v2640_v62 = vld [vmem:[%s3279_s3 + $0x148] sm:$0xff]  }
  0x37   : > { %2424 = vmatprep.subr.bf16.mxu1 %v2618_v5  ;;  %2391 = vmatmul.mubr.bf16.gmra.mxu1 %v2948_v15 }
  0x38   : > { %2434 = vmatprep.mubr.bf16.mxu1 %v843_v11  ;;  %v2648_v11 = vld [vmem:[%s3279_s3 + $0x1e8] sm:$0xff]  }
  0x39   : > { %2401 = vmatpush3.bf16.msra.mxu0 %v2617_v4  ;;  %v2644_v4 = vld [vmem:[%s3279_s3 + $0x1f8] sm:$0xff]  }
  0x3a   : > { %2425 = vmatpush3.bf16.msra.mxu1 %v2618_v5  ;;  %2402 = vmatprep.subr.bf16.mxu0 %v2619_v12  ;;  %v994_v5 = vpack.c.bf16 %v2889_v55, %v2840_v29  ;;  %v2647_v29 = vld [vmem:[%s3279_s3 + $0x1a8] sm:$0xff]  }
  0x3b   : > { %2426 = vmatprep.subr.bf16.mxu1 %v2620_v16  ;;  %v3083_v55 = vld [vmem:[#allocation2 + $0x82] sm:$0xff] }
  0x3d   : > { %2403 = vmatpush3.bf16.msra.mxu0 %v2619_v12  ;;  %v996_v12 = vpack.c.bf16 %v2967_v23, %v2896_v58  ;;  %v2652_v58 = vld [vmem:[%s3279_s3 + $0x1d8] sm:$0xff]  }
  0x3e   : > { %2427 = vmatpush3.bf16.msra.mxu1 %v2620_v16  ;;  %2404 = vmatprep.subr.bf16.mxu0 %v2621_v18  ;;  %v1146_v16 = vpack.c.bf16 %v3083_v55, %v3009_v40 }
  0x3f   : > { %2428 = vmatprep.subr.bf16.mxu1 %v2622_v20 }
  0x41   : > { %2405 = vmatpush3.bf16.msra.mxu0 %v2621_v18  ;;  %v2654_v18 = vld [vmem:[%s3279_s3 + $0x1d0] sm:$0xff]  }
  0x42   : > { %2429 = vmatpush3.bf16.msra.mxu1 %v2622_v20  ;;  %2406 = vmatprep.subr.bf16.mxu0 %v2623_v22  ;;  %v2658_v20 = vld [vmem:[%s3279_s3 + $0x1c0] sm:$0xff]  }
  0x43   : > { %2430 = vmatprep.subr.bf16.mxu1 %v2624_v13 }
  0x45   : > { %2407 = vmatpush3.bf16.msra.mxu0 %v2623_v22  ;;  %v1737_v22 = vld [vmem:[%s3128_s25 + $0x8] sm:$0xff] }
  0x46   : > { %2431 = vmatpush3.bf16.msra.mxu1 %v2624_v13  ;;  %2408 = vmatprep.subr.bf16.mxu0 %v2625_v14  ;;  %v3138_v13 = vld [vmem:[%s3281_s5] ss:$0 sm:$0xff] }
  0x47   : > { %2432 = vmatprep.subr.bf16.mxu1 %v2626_v24  ;;  %v1751_v25 = vmul.f32 %v3138_v13, %v1736_v21  ;;  %v1752_v26 = vmul.f32 %v3138_v13, %v1737_v22 }
  0x49   : > { %2409 = vmatpush3.bf16.msra.mxu0 %v2625_v14  ;;  %v2659_v14 = vld [vmem:[%s3279_s3 + $0x238] sm:$0xff]  }
  0x4a   : > { %2433 = vmatpush3.bf16.msra.mxu1 %v2626_v24  ;;  %2442 = vmatprep.subr.bf16.mxu0 %v2627_v30  ;;  %v2660_v24 = vld [vmem:[%s3283_s7 + $0x38] sm:$0xff]  }
  0x4b   : > { %2466 = vmatprep.subr.bf16.mxu1 %v2628_v31 }
  0x4c   : > { %2411 = vmatmul.mubr.bf16.vlgmr.msra.gmra.mxu0 %v2990_v33 }
  0x4d   : > { %2435 = vmatmul.mubr.bf16.vlgmr.msra.gmra.mxu1 %v844_v35  ;;  %2443 = vmatpush3.bf16.msra.mxu0 %v2627_v30  ;;  %v3151_v30 = vld [vmem:[%s3282_s6] ss:$0 sm:$0xff] }
  0x4e   : > { %2467 = vmatpush3.bf16.msra.mxu1 %v2628_v31  ;;  %2444 = vmatprep.subr.bf16.mxu0 %v2629_v36  ;;  %v2661_v31 = vld [vmem:[%s3279_s3 + $0x230] sm:$0xff]   ;;  %v1766_v34 = vadd.f32 %v3151_v30, %v1751_v25  ;;  %v1767_v35 = vadd.f32 %v3151_v30, %v1752_v26 }
  0x4f   : > { %2468 = vmatprep.subr.bf16.mxu1 %v2630_v37  ;;  %2414 = vmatprep.mubr.bf16.mxu0 %v3004_v38 }
  0x50   : > { %2438 = vmatprep.mubr.bf16.mxu1 %v845_v41  ;;  %v1775_v40 = vmax.f32 %v1767_v35, 0.0 }
  0x51   : > { %2445 = vmatpush3.bf16.msra.mxu0 %v2629_v36  ;;  %v2663_v36 = vld [vmem:[%s3279_s3 + $0x228] sm:$0xff]  }
  0x52   : > { %2469 = vmatpush3.bf16.msra.mxu1 %v2630_v37  ;;  %2446 = vmatprep.subr.bf16.mxu0 %v2631_v43  ;;  %v1443_v37 = vld [vmem:[#allocation2 + $0x91] sm:$0xff] }
  0x53   : > { %2470 = vmatprep.subr.bf16.mxu1 %v2632_v45  ;;  %v1447_v41 = vpack.c.bf16 %v1443_v37, %v2967_v23  ;;  %v2668_v23 = vld [vmem:[%s3283_s7 + $0x18] sm:$0xff]  }
  0x54   : > { %2415 = vmatmul.mubr.bf16.gmra.mxu0 %v3024_v46 }
  0x55   : > { %2447 = vmatpush3.bf16.msra.mxu0 %v2631_v43  ;;  %2439 = vmatmul.mubr.bf16.gmra.mxu1 %v846_v47  ;;  %v2666_v43 = vld [vmem:[%s3283_s7 + $0x20] sm:$0xff]   ;;  %v1739_v47 = vld [vmem:[%s3128_s25 + $0x18] sm:$0xff] }
  0x56   : > { %2471 = vmatpush3.bf16.msra.mxu1 %v2632_v45  ;;  %2448 = vmatprep.subr.bf16.mxu0 %v2633_v48  ;;  %v1738_v45 = vld [vmem:[%s3128_s25 + $0x10] sm:$0xff] }
  0x57   : > { %2472 = vmatprep.subr.bf16.mxu1 %v2634_v49  ;;  %2458 = vmatprep.mubr.bf16.mxu0 %v993_v51  ;;  %v1741_v51 = vld [vmem:[%s3128_s25 + $0x28] sm:$0xff] }
  0x58   : > { %2482 = vmatprep.mubr.bf16.mxu1 %v1143_v52  ;;  %v1754_v52 = vmul.f32 %v3138_v13, %v1739_v47 }
  0x59   : > { %2449 = vmatpush3.bf16.msra.mxu0 %v2633_v48  ;;  %v2670_v48 = vld [vmem:[%s3283_s7 + $0x10] sm:$0xff]  }
  0x5a   : > { %2473 = vmatpush3.bf16.msra.mxu1 %v2634_v49  ;;  %2450 = vmatprep.subr.bf16.mxu0 %v2635_v53  ;;  %v1740_v49 = vld [vmem:[%s3128_s25 + $0x20] sm:$0xff] }
  0x5b   : > { %2474 = vmatprep.subr.bf16.mxu1 %v2636_v54 }
  0x5d   : > { %2451 = vmatpush3.bf16.msra.mxu0 %v2635_v53  ;;  %v2671_v53 = vld [vmem:[%s3279_s3 + $0x208] sm:$0xff]  }
  0x5e   : > { %2475 = vmatpush3.bf16.msra.mxu1 %v2636_v54  ;;  %2452 = vmatprep.subr.bf16.mxu0 %v2637_v27  ;;  %v1755_v54 = vmul.f32 %v3138_v13, %v1740_v49 }
  0x5f   : > { %2476 = vmatprep.subr.bf16.mxu1 %v2638_v28 }
  0x61   : > { %2453 = vmatpush3.bf16.msra.mxu0 %v2637_v27  ;;  %v1756_v27 = vmul.f32 %v3138_v13, %v1741_v51 }
  0x62   : > { %2477 = vmatpush3.bf16.msra.mxu1 %v2638_v28  ;;  %2454 = vmatprep.subr.bf16.mxu0 %v2639_v60  ;;  %v2672_v28 = vld [vmem:[%s3283_s7 + $0x8] sm:$0xff]  }
  0x63   : > { %2478 = vmatprep.subr.bf16.mxu1 %v2640_v62 }
  0x65   : > { %2455 = vmatpush3.bf16.msra.mxu0 %v2639_v60 }
  0x66   : > { %2479 = vmatpush3.bf16.msra.mxu1 %v2640_v62  ;;  %2456 = vmatprep.subr.bf16.mxu0 %v2641_v63  ;;  %v1769_v62 = vadd.f32 %v3151_v30, %v1754_v52 }
  0x67   : > { %2480 = vmatprep.subr.bf16.mxu1 %v2642_v0 }
  0x69   : > { %2457 = vmatpush3.bf16.msra.mxu0 %v2641_v63  ;;  %v2673_v63 = vld [vmem:[%s3279_s3 + $0x200] sm:$0xff]  }
  0x6a   : > { %2481 = vmatpush3.bf16.msra.mxu1 %v2642_v0  ;;  %2490 = vmatprep.subr.bf16.mxu0 %v2643_v2  ;;  %v1770_v0 = vadd.f32 %v3151_v30, %v1755_v54 }
  0x6b   : > { %2514 = vmatprep.subr.bf16.mxu1 %v2644_v4 }
  0x6c   : > { %2459 = vmatmul.mubr.bf16.vlgmr.msra.gmra.mxu0 %v994_v5  ;;  %v1743_v5 = vld [vmem:[%s3128_s25 + $0x38] sm:$0xff] }
  0x6d   : > { %2483 = vmatmul.mubr.bf16.vlgmr.msra.gmra.mxu1 %v1144_v6  ;;  %2491 = vmatpush3.bf16.msra.mxu0 %v2643_v2  ;;  %v1771_v2 = vadd.f32 %v3151_v30, %v1756_v27  ;;  %v2674_v6 = vld [vmem:[%s3283_s7] sm:$0xff]  }
  0x6e   : > { %2515 = vmatpush3.bf16.msra.mxu1 %v2644_v4  ;;  %2492 = vmatprep.subr.bf16.mxu0 %v2645_v7  ;;  %v1742_v4 = vld [vmem:[%s3128_s25 + $0x30] sm:$0xff] }
  0x6f   : > { %2516 = vmatprep.subr.bf16.mxu1 %v2646_v9  ;;  %2462 = vmatprep.mubr.bf16.mxu0 %v995_v61  ;;  %v2653_v61 = vld [vmem:[%s3279_s3 + $0x190] sm:$0xff]  }
  0x70   : > { %2486 = vmatprep.mubr.bf16.mxu1 %v1145_v10  ;;  %v1757_v10 = vmul.f32 %v3138_v13, %v1742_v4 }
  0x71   : > { %2493 = vmatpush3.bf16.msra.mxu0 %v2645_v7 }
  0x72   : > { %2517 = vmatpush3.bf16.msra.mxu1 %v2646_v9  ;;  %2494 = vmatprep.subr.bf16.mxu0 %v2647_v29  ;;  %v1777_v9 = vmax.f32 %v1769_v62, 0.0 }
  0x73   : > { %2518 = vmatprep.subr.bf16.mxu1 %v2648_v11 }
  0x74   : > { %2463 = vmatmul.mubr.bf16.gmra.mxu0 %v996_v12  ;;  %v1779_v12 = vmax.f32 %v1771_v2, 0.0 }
  0x75   : > { %2495 = vmatpush3.bf16.msra.mxu0 %v2647_v29  ;;  %2487 = vmatmul.mubr.bf16.gmra.mxu1 %v1146_v16  ;;  %v1758_v29 = vmul.f32 %v3138_v13, %v1743_v5 }
  0x76   : > { %2519 = vmatpush3.bf16.msra.mxu1 %v2648_v11  ;;  %2496 = vmatprep.subr.bf16.mxu0 %v2649_v17  ;;  %v1778_v11 = vmax.f32 %v1770_v0, 0.0 }
  0x77   : > { %2520 = vmatprep.subr.bf16.mxu1 %v2650_v56  ;;  %2506 = vmatprep.mubr.bf16.mxu0 %v2879_v50  ;;  %v2656_v50 = vld [vmem:[%s3279_s3 + $0x1c8] sm:$0xff]  }
  0x78   : > { %2530 = vmatprep.mubr.bf16.mxu1 %v2868_v42  ;;  %v2655_v42 = vld [vmem:[%s3279_s3 + $0x188] sm:$0xff]  }
  0x79   : > { %2497 = vmatpush3.bf16.msra.mxu0 %v2649_v17  ;;  %v1772_v17 = vadd.f32 %v3151_v30, %v1757_v10 }
  0x7a   : > { %2521 = vmatpush3.bf16.msra.mxu1 %v2650_v56  ;;  %2498 = vmatprep.subr.bf16.mxu0 %v2651_v57  ;;  %v1773_v56 = vadd.f32 %v3151_v30, %v1758_v29 }
  0x7b   : > { %2522 = vmatprep.subr.bf16.mxu1 %v2652_v58 }
  0x7d   : > { %2499 = vmatpush3.bf16.msra.mxu0 %v2651_v57  ;;  %v1784_v57 = vpack.c.bf16 %v1779_v12, %v1778_v11 }
  0x7e   : > { %2523 = vmatpush3.bf16.msra.mxu1 %v2652_v58  ;;  %2500 = vmatprep.subr.bf16.mxu0 %v2653_v61  ;;  %v1593_v58 = vld [vmem:[#allocation2 + $0x92] sm:$0xff] }
  0x7f   : > { %2524 = vmatprep.subr.bf16.mxu1 %v2654_v18 }
  0x81   : > { %2501 = vmatpush3.bf16.msra.mxu0 %v2653_v61  ;;  %v1780_v61 = vmax.f32 %v1772_v17, 0.0 }
  0x82   : > { %2525 = vmatpush3.bf16.msra.mxu1 %v2654_v18  ;;  %2502 = vmatprep.subr.bf16.mxu0 %v2655_v42  ;;  %v1781_v18 = vmax.f32 %v1773_v56, 0.0 }
  0x83   : > { %2526 = vmatprep.subr.bf16.mxu1 %v2656_v50 }
  0x85   : > { %2503 = vmatpush3.bf16.msra.mxu0 %v2655_v42  ;;  %v1597_v42 = vpack.c.bf16 %v1593_v58, %v3083_v55 }
  0x86   : > { %2527 = vmatpush3.bf16.msra.mxu1 %v2656_v50  ;;  %2504 = vmatprep.subr.bf16.mxu0 %v2657_v19  ;;  %v1785_v50 = vpack.c.bf16 %v1781_v18, %v1780_v61 }
  0x87   : > { %2528 = vmatprep.subr.bf16.mxu1 %v2658_v20 }
  0x89   : > { %2505 = vmatpush3.bf16.msra.mxu0 %v2657_v19 }
  0x8a   : > { %2529 = vmatpush3.bf16.msra.mxu1 %v2658_v20  ;;  %2538 = vmatprep.subr.bf16.mxu0 %v2659_v14 }
  0x8b   : > { %2562 = vmatprep.subr.bf16.mxu1 %v2660_v24 }
  0x8c   : > { %2507 = vmatmul.mubr.bf16.vlgmr.msra.gmra.mxu0 %v2936_v8  ;;  %v2664_v8 = vld [vmem:[%s3283_s7 + $0x28] sm:$0xff]  }
  0x8d   : > { %2531 = vmatmul.mubr.bf16.vlgmr.msra.gmra.mxu1 %v2903_v59  ;;  %2539 = vmatpush3.bf16.msra.mxu0 %v2659_v14  ;;  %v1774_v59 = vmax.f32 %v1766_v34, 0.0 }
  0x8e   : > { %2563 = vmatpush3.bf16.msra.mxu1 %v2660_v24  ;;  %2540 = vmatprep.subr.bf16.mxu0 %v2661_v31 }
  0x8f   : > { %2564 = vmatprep.subr.bf16.mxu1 %v2662_v32  ;;  %2510 = vmatprep.mubr.bf16.mxu0 %v2948_v15  ;;  %v2665_v15 = vld [vmem:[%s3279_s3 + $0x220] sm:$0xff]   ;;  %v1782_v3 = vpack.c.bf16 %v1775_v40, %v1774_v59 }
  0x90   : > { %2534 = vmatprep.mubr.bf16.mxu1 %v2920_v1  ;;  %v2667_v1 = vld [vmem:[%s3279_s3 + $0x218] sm:$0xff]  }
  0x91   : > { %2541 = vmatpush3.bf16.msra.mxu0 %v2661_v31 }
  0x92   : > { %2565 = vmatpush3.bf16.msra.mxu1 %v2662_v32  ;;  %2542 = vmatprep.subr.bf16.mxu0 %v2663_v36 }
  0x93   : > { %2566 = vmatprep.subr.bf16.mxu1 %v2664_v8 }
  0x94   : > { %2511 = vmatmul.mubr.bf16.gmra.mxu0 %v1297_v39 }
  0x95   : > { %2543 = vmatpush3.bf16.msra.mxu0 %v2663_v36  ;;  %2535 = vmatmul.mubr.bf16.gmra.mxu1 %v1447_v41 }
  0x96   : > { %2567 = vmatpush3.bf16.msra.mxu1 %v2664_v8  ;;  %2544 = vmatprep.subr.bf16.mxu0 %v2665_v15 }
  0x97   : > { %2568 = vmatprep.subr.bf16.mxu1 %v2666_v43  ;;  %2554 = vmatprep.mubr.bf16.mxu0 %v2990_v33  ;;  %v1753_v33 = vmul.f32 %v3138_v13, %v1738_v45 }
  0x98   : > { %2578 = vmatprep.mubr.bf16.mxu1 %v1782_v3 }
  0x99   : > { %2545 = vmatpush3.bf16.msra.mxu0 %v2665_v15  ;;  %v1768_v60 = vadd.f32 %v3151_v30, %v1753_v33 }
  0x9a   : > { %2569 = vmatpush3.bf16.msra.mxu1 %v2666_v43  ;;  %2546 = vmatprep.subr.bf16.mxu0 %v2667_v1 }
  0x9b   : > { %2570 = vmatprep.subr.bf16.mxu1 %v2668_v23  ;;  %v1776_v7 = vmax.f32 %v1768_v60, 0.0 }
  0x9d   : > { %2547 = vmatpush3.bf16.msra.mxu0 %v2667_v1  ;;  %v1783_v16 = vpack.c.bf16 %v1777_v9, %v1776_v7 }
  0x9e   : > { %2571 = vmatpush3.bf16.msra.mxu1 %v2668_v23  ;;  %2548 = vmatprep.subr.bf16.mxu0 %v2669_v44 }
  0x9f   : > { %2572 = vmatprep.subr.bf16.mxu1 %v2670_v48 }
  0xa1   : > { %2549 = vmatpush3.bf16.msra.mxu0 %v2669_v44 }
  0xa2   : > { %2573 = vmatpush3.bf16.msra.mxu1 %v2670_v48  ;;  %2550 = vmatprep.subr.bf16.mxu0 %v2671_v53 }
  0xa3   : > { %2574 = vmatprep.subr.bf16.mxu1 %v2672_v28 }
  0xa5   : > { %2551 = vmatpush3.bf16.msra.mxu0 %v2671_v53 }
  0xa6   : > { %2575 = vmatpush3.bf16.msra.mxu1 %v2672_v28  ;;  %2552 = vmatprep.subr.bf16.mxu0 %v2673_v63 }
  0xa7   : > { %2576 = vmatprep.subr.bf16.mxu1 %v2674_v6 }
  0xa9   : > { %2553 = vmatpush3.bf16.msra.mxu0 %v2673_v63 }
  0xaa   : > { %2577 = vmatpush3.bf16.msra.mxu1 %v2674_v6 }
  0xac   : > { %2555 = vmatmul.mubr.bf16.vlgmr.msra.gmra.mxu0 %v3004_v38 }
  0xad   : > { %2579 = vmatmul.mubr.bf16.vlgmr.msra.gmra.mxu1 %v1783_v16  ;;  %2558 = vmatprep.mubr.bf16.mxu0 %v3024_v46 }
  0xae   : > { %2582 = vmatprep.mubr.bf16.mxu1 %v1784_v57 }
  0xb4   : > { %2559 = vmatmul.mubr.bf16.gmra.mxu0 %v1597_v42 }
  0xb5   : > { %2583 = vmatmul.mubr.bf16.gmra.mxu1 %v1785_v50 }
  0xec   : > { %v2364_v19 = vpop.f32.mrf.mxu0 }
  0xed   : > { %v2388_v21 = vpop.f32.mrf.mxu1 }
  0xee   : > { %v541_v20 = vpop.f32.mrf.mxu0  ;;  %v663_v11 = vadd.f32 %v2388_v21, %v2364_v19 }
  0xef   : > { %v654_v13 = vpop.f32.mrf.mxu1 }
  0xf0   : > { %v2365_v22 = vpop.f32.mrf.mxu0  ;;  %v655_v17 = vadd.f32 %v654_v13, %v541_v20 }
  0xf1   : > { %v2389_v38 = vpop.f32.mrf.mxu1 }
  0xf2   : > { %v544_v14 = vpop.f32.mrf.mxu0  ;;  %v666_v57 = vadd.f32 %v2389_v38, %v2365_v22 }
  0xf3   : > { %v657_v26 = vpop.f32.mrf.mxu1 }
  0xf4   : > { %v2368_v24 = vpop.f32.mrf.mxu0  ;;  %v658_v42 = vadd.f32 %v657_v26, %v544_v14 }
  0xf6   : > { %v557_v25 = vpop.f32.mrf.mxu0 }
  0xf7   : > { %v2392_v46 = vpop.f32.mrf.mxu1 }
  0xf8   : > { %v3226_v30 = vpop.f32.mrf.mxu0 }
  0xf9   : > { %v670_v31 = vpop.f32.mrf.mxu1 }
  0xfa   : > { %v3228_v32 = vpop.f32.mrf.mxu0 }
  0xfb   : > { %3286 = vst [vmem:[#allocation3_spill] sm:$0xff] %v3228_v32  ;;  %v2393_v34 = vpop.f32.mrf.mxu1 }
  0xfc   : > { %v682_v22 = vadd.f32 %v2393_v34, %v3226_v30 }
  0xfd   : > { %v3230_v36 = vpop.f32.mrf.mxu1 }
  0xfe   : > { %3287 = vst [vmem:[#allocation4_spill] sm:$0xff] %v3230_v36 }
 0x102   : > { %v3295_v26 = vld [vmem:[#allocation3_spill] sm:$0xff] }
 0x10c   : > { %v2412_v55 = vpop.f32.mrf.mxu0 }
 0x10d   : > { %v2436_v37 = vpop.f32.mrf.mxu1  ;;  %v829_v56 = vadd.f32 %v2412_v55, %v663_v11 }
 0x10e   : > { %v796_v35 = vpop.f32.mrf.mxu0 }
 0x10f   : > { %v946_v39 = vpop.f32.mrf.mxu1  ;;  %v827_v58 = vadd.f32 %v796_v35, %v655_v17  ;;  %v979_v50 = vadd.f32 %v2436_v37, %v829_v56  ;;  %v3296_v35 = vld [vmem:[#allocation4_spill] sm:$0xff] }
 0x110   : > { %v2413_v8 = vpop.f32.mrf.mxu0  ;;  %v674_v37 = vadd.f32 %v3296_v35, %v3295_v26 }
 0x111   : > { %v2437_v40 = vpop.f32.mrf.mxu1 }
 0x112   : > { %v799_v59 = vpop.f32.mrf.mxu0 }
 0x113   : > { %v949_v15 = vpop.f32.mrf.mxu1 }
 0x114   : > { %v2416_v41 = vpop.f32.mrf.mxu0 }
 0x115   : > { %v2440_v3 = vpop.f32.mrf.mxu1 }
 0x116   : > { %v812_v43 = vpop.f32.mrf.mxu0 }
 0x117   : > { %v962_v23 = vpop.f32.mrf.mxu1 }
 0x118   : > { %v2417_v1 = vpop.f32.mrf.mxu0 }
 0x119   : > { %v3232_v45 = vpop.f32.mrf.mxu1 }
 0x11a   : > { %v815_v44 = vpop.f32.mrf.mxu0  ;;  %3288 = vst [vmem:[#allocation5_spill] sm:$0xff] %v3232_v45  ;;  %v671_v45 = vadd.f32 %v670_v31, %v557_v25 }
 0x11b   : > { %v3234_v48 = vpop.f32.mrf.mxu1 }
 0x11c   : > { %3289 = vst [vmem:[#allocation6_spill] sm:$0xff] %v3234_v48  ;;  %v831_v13 = vadd.f32 %v812_v43, %v671_v45 }
 0x121   : > { %v3297_v30 = vld [vmem:[#allocation5_spill] sm:$0xff] }
 0x12c   : > { %v2460_v47 = vpop.f32.mrf.mxu0 }
 0x12d   : > { %v2484_v51 = vpop.f32.mrf.mxu1  ;;  %v1129_v48 = vadd.f32 %v2460_v47, %v979_v50 }
 0x12e   : > { %v1096_v49 = vpop.f32.mrf.mxu0 }
 0x12f   : > { %v1246_v52 = vpop.f32.mrf.mxu1  ;;  %v1279_v55 = vadd.f32 %v2484_v51, %v1129_v48 }
 0x130   : > { %v2461_v33 = vpop.f32.mrf.mxu0 }
 0x131   : > { %v2485_v54 = vpop.f32.mrf.mxu1 }
 0x132   : > { %v1099_v53 = vpop.f32.mrf.mxu0 }
 0x133   : > { %v1249_v28 = vpop.f32.mrf.mxu1 }
 0x134   : > { %v2464_v27 = vpop.f32.mrf.mxu0 }
 0x135   : > { %v3236_v60 = vpop.f32.mrf.mxu1 }
 0x136   : > { %3290 = vst [vmem:[#allocation7_spill] sm:$0xff] %v3236_v60  ;;  %v1112_v62 = vpop.f32.mrf.mxu0  ;;  %v828_v60 = vadd.f32 %v799_v59, %v658_v42 }
 0x137   : > { %v3238_v63 = vpop.f32.mrf.mxu1 }
 0x138   : > { %3291 = vst [vmem:[#allocation8_spill] sm:$0xff] %v3238_v63  ;;  %v2465_v0 = vpop.f32.mrf.mxu0  ;;  %v679_v63 = vadd.f32 %v2392_v46, %v2368_v24  ;;  %v978_v38 = vadd.f32 %v949_v15, %v828_v60 }
 0x139   : > { %v3240_v2 = vpop.f32.mrf.mxu1 }
 0x13a   : > { %3292 = vst [vmem:[#allocation9_spill] sm:$0xff] %v3240_v2  ;;  %v3242_v4 = vpop.f32.mrf.mxu0  ;;  %v830_v2 = vadd.f32 %v2413_v8, %v666_v57  ;;  %v833_v21 = vadd.f32 %v2416_v41, %v679_v63  ;;  %v834_v8 = vadd.f32 %v2417_v1, %v682_v22  ;;  %v1128_v59 = vadd.f32 %v1099_v53, %v978_v38 }
 0x13b   : > { %3293 = vst [vmem:[#allocation10_spill] sm:$0xff] %v3242_v4  ;;  %v3244_v6 = vpop.f32.mrf.mxu1  ;;  %v832_v41 = vadd.f32 %v815_v44, %v674_v37 }
 0x13c   : > { %3294 = vst [vmem:[#allocation11_spill] sm:$0xff] %v3244_v6  ;;  %v977_v6 = vadd.f32 %v946_v39, %v827_v58  ;;  %v980_v19 = vadd.f32 %v2437_v40, %v830_v2  ;;  %v983_v46 = vadd.f32 %v2440_v3, %v833_v21  ;;  %v981_v40 = vadd.f32 %v962_v23, %v831_v13 }
 0x13d   : > { %v984_v34 = vadd.f32 %v3297_v30, %v834_v8  ;;  %v1278_v45 = vadd.f32 %v1249_v28, %v1128_v59  ;;  %v3299_v53 = vld [vmem:[#allocation7_spill] sm:$0xff] }
 0x13e   : > { %v1127_v32 = vadd.f32 %v1096_v49, %v977_v6  ;;  %v1130_v14 = vadd.f32 %v2461_v33, %v980_v19  ;;  %v1133_v49 = vadd.f32 %v2464_v27, %v983_v46  ;;  %v1131_v15 = vadd.f32 %v1112_v62, %v981_v40  ;;  %v3298_v33 = vld [vmem:[#allocation6_spill] sm:$0xff] }
 0x13f   : > { %v982_v3 = vadd.f32 %v3298_v33, %v832_v41  ;;  %v3300_v2 = vld [vmem:[#allocation8_spill] sm:$0xff] }
 0x140   : > { %v1277_v39 = vadd.f32 %v1246_v52, %v1127_v32  ;;  %v1280_v47 = vadd.f32 %v2485_v54, %v1130_v14  ;;  %v1134_v32 = vadd.f32 %v2465_v0, %v984_v34  ;;  %v1283_v60 = vadd.f32 %v3299_v53, %v1133_v49 }
 0x141   : > { %v3302_v11 = vld [vmem:[#allocation9_spill] sm:$0xff] }
 0x142   : > { %v3301_v6 = vld [vmem:[#allocation10_spill] sm:$0xff] }
 0x143   : > { %v1132_v62 = vadd.f32 %v3301_v6, %v982_v3  ;;  %v3303_v19 = vld [vmem:[#allocation11_spill] sm:$0xff] }
 0x145   : > { %v1282_v21 = vadd.f32 %v3303_v19, %v1132_v62 }
 0x14c   : > { %v2508_v5 = vpop.f32.mrf.mxu0 }
 0x14d   : > { %v2532_v7 = vpop.f32.mrf.mxu1  ;;  %v1430_v25 = vadd.f32 %v2508_v5, %v1279_v55  ;;  %v1281_v5 = vadd.f32 %v3300_v2, %v1131_v15 }
 0x14e   : > { %v1397_v9 = vpop.f32.mrf.mxu0 }
 0x14f   : > { %v1547_v10 = vpop.f32.mrf.mxu1  ;;  %v1428_v63 = vadd.f32 %v1397_v9, %v1277_v39  ;;  %v1580_v48 = vadd.f32 %v2532_v7, %v1430_v25 }
 0x150   : > { %v2509_v29 = vpop.f32.mrf.mxu0 }
 0x151   : > { %v2533_v12 = vpop.f32.mrf.mxu1  ;;  %v1431_v51 = vadd.f32 %v2509_v29, %v1280_v47  ;;  %v1578_v23 = vadd.f32 %v1547_v10, %v1428_v63 }
 0x152   : > { %v1400_v16 = vpop.f32.mrf.mxu0 }
 0x153   : > { %v1550_v61 = vpop.f32.mrf.mxu1  ;;  %v1429_v44 = vadd.f32 %v1400_v16, %v1278_v45  ;;  %v1581_v7 = vadd.f32 %v2533_v12, %v1431_v51  ;;  %v1284_v16 = vadd.f32 %v3302_v11, %v1134_v32 }
 0x154   : > { %v2512_v18 = vpop.f32.mrf.mxu0 }
 0x155   : > { %v3246_v4 = vpop.f32.mrf.mxu1  ;;  %v1434_v0 = vadd.f32 %v2512_v18, %v1283_v60  ;;  %v1579_v56 = vadd.f32 %v1550_v61, %v1429_v44 }
 0x156   : > { %v1413_v36 = vpop.f32.mrf.mxu0 }
 0x157   : > { %v1563_v20 = vpop.f32.mrf.mxu1  ;;  %v1432_v57 = vadd.f32 %v1413_v36, %v1281_v5  ;;  %v1584_v12 = vadd.f32 %v3246_v4, %v1434_v0 }
 0x158   : > { %v2513_v24 = vpop.f32.mrf.mxu0 }
 0x159   : > { %v2537_v31 = vpop.f32.mrf.mxu1  ;;  %v1435_v18 = vadd.f32 %v2513_v24, %v1284_v16  ;;  %v1582_v61 = vadd.f32 %v1563_v20, %v1432_v57 }
 0x15a   : > { %v1416_v43 = vpop.f32.mrf.mxu0 }
 0x15b   : > { %v1566_v1 = vpop.f32.mrf.mxu1  ;;  %v1433_v36 = vadd.f32 %v1416_v43, %v1282_v21  ;;  %v1585_v46 = vadd.f32 %v2537_v31, %v1435_v18 }
 0x15d   : > { %v1583_v25 = vadd.f32 %v1566_v1, %v1433_v36 }
 0x16c   : > { %v2556_v52 = vpop.f32.mrf.mxu0 }
 0x16d   : > { %v1730_v54 = vadd.f32 %v2556_v52, %v1580_v48  ;;  %v2580_v27 = vpop.f32.mrf.mxu1 }
 0x16e   : > { %v1697_v28 = vpop.f32.mrf.mxu0 }
 0x16f   : > { %v1917_v9 = vadd.f32 %v2580_v27, %v1730_v54  ;;  %v1728_v29 = vadd.f32 %v1697_v28, %v1578_v23  ;;  %v1884_v10 = vpop.f32.mrf.mxu1 }
 0x170   : > { %v2557_v17 = vpop.f32.mrf.mxu0 }
 0x171   : > { %1925 = vst [vmem:[%s3260_s29 + $0x10] sm:$0xff] %v1917_v9  ;;  %v1915_v58 = vadd.f32 %v1884_v10, %v1728_v29  ;;  %v1731_v42 = vadd.f32 %v2557_v17, %v1581_v7  ;;  %v2581_v50 = vpop.f32.mrf.mxu1 }
 0x172   : > { %v1700_v22 = vpop.f32.mrf.mxu0 }
 0x173   : > { %1923 = vst [vmem:[%s3260_s29] sm:$0xff] %v1915_v58  ;;  %v1918_v13 = vadd.f32 %v2581_v50, %v1731_v42  ;;  %v1729_v38 = vadd.f32 %v1700_v22, %v1579_v56  ;;  %v1887_v55 = vpop.f32.mrf.mxu1 }
 0x174   : > { %v2560_v14 = vpop.f32.mrf.mxu0 }
 0x175   : > { %1926 = vst [vmem:[%s3260_s29 + $0x18] sm:$0xff] %v1918_v13  ;;  %v1916_v26 = vadd.f32 %v1887_v55, %v1729_v38  ;;  %v1734_v35 = vadd.f32 %v2560_v14, %v1584_v12  ;;  %v2584_v37 = vpop.f32.mrf.mxu1 }
 0x176   : > { %v1713_v8 = vpop.f32.mrf.mxu0 }
 0x177   : > { %1924 = vst [vmem:[%s3260_s29 + $0x8] sm:$0xff] %v1916_v26  ;;  %v1921_v39 = vadd.f32 %v2584_v37, %v1734_v35  ;;  %v1732_v4 = vadd.f32 %v1713_v8, %v1582_v61  ;;  %v1900_v24 = vpop.f32.mrf.mxu1 }
 0x178   : > { %v2561_v59 = vpop.f32.mrf.mxu0 }
 0x179   : > { %1929 = vst [vmem:[%s3260_s29 + $0x30] sm:$0xff] %v1921_v39  ;;  %v1919_v40 = vadd.f32 %v1900_v24, %v1732_v4  ;;  %v1735_v41 = vadd.f32 %v2561_v59, %v1585_v46  ;;  %v2585_v20 = vpop.f32.mrf.mxu1 }
 0x17a   : > { %v1716_v47 = vpop.f32.mrf.mxu0 }
 0x17b   : > { %1927 = vst [vmem:[%s3260_s29 + $0x20] sm:$0xff] %v1919_v40  ;;  %v1922_v49 = vadd.f32 %v2585_v20, %v1735_v41  ;;  %v1733_v63 = vadd.f32 %v1716_v47, %v1583_v25  ;;  %v1903_v30 = vpop.f32.mrf.mxu1 }
 0x17d   : > { %1930 = vst [vmem:[%s3260_s29 + $0x38] sm:$0xff] %v1922_v49  ;;  %v1920_v34 = vadd.f32 %v1903_v30, %v1733_v63 }
 0x17f   : > { %1928 = vst [vmem:[%s3260_s29 + $0x28] sm:$0xff] %v1920_v34 }
 0x180 PF: > { %s18_s27 = sadd.s32 1, %s2681_s27  }
 0x181   : > { %p15_p4 = scmp.ge.s32.totalorder %s18_s27, 4  }
 0x183   :  { %17 = sbr.rel (!%p15_p4) target bundleno = 1 (0x1), region = 95 }

// kernel: conv_group_forward.8
= control target key start
LH: loop header
LB: loop body
LE: loop exit
PB: predicated region body
PF: predicated region fallthrough
CT: control target
= control target key end

     0   :  { %s2445_s21 = smov 0   ;;  %s2916_s0 = inlined_call_operand.vmem [shape: f32[2,8,8,128], index: 0, kind: input, shape index: {}]   ;;  %s2917_s1 = inlined_call_operand.vmem [shape: f32[1,1,128], index: 1, kind: input, shape index: {}]   ;;  %s2918_s2 = inlined_call_operand.vmem [shape: f32[1,1,128], index: 2, kind: input, shape index: {}]   ;;  %s2919_s3 = inlined_call_operand.vmem [shape: bf16[9,128,128], index: 3, kind: input, shape index: {}]   ;;  %s2920_s4 = inlined_call_operand.vmem [shape: f32[1,1,128], index: 4, kind: input, shape index: {}]   ;;  %s2921_s5 = inlined_call_operand.vmem [shape: f32[1,1,128], index: 5, kind: input, shape index: {}]   ;;  %s2922_s6 = inlined_call_operand.vmem [shape: f32[2,8,8,128], index: 6, kind: output, shape index: {}]  }
   0x1 LB: > { %s1763_s22 = sadd.s32 4294967295, %s2407_s21   ;;  %p1767_p0 = scmp.ge.s32.totalorder %s2407_s21, 1  ;;  %s2407_s21 = sphi %s2445_s21, %s16_s21  }
   0x2   : > { %p212_p1 = scmp.lt.s32.totalorder %s2407_s21, 3 }
   0x4   : > { %p213_p2 = pnand %p1767_p0, %p212_p1 }
   0x6   : > { %216 = sbr.rel (%p213_p2) target bundleno = 381 (0x17d), region = 44 }
   0xb   : > { %v2329_v0 = vld [vmem:[%s2919_s3 + $0x78] sm:$0xff]   ;;  %v2331_v2 = vld [vmem:[%s2919_s3 + $0x70] sm:$0xff]   ;;  %p2464_p3 = scmp.lt.s32.totalorder %s1763_s22, 1  ;;  %v2409_v3 = vmov 0.0   ;;  %v2333_v5 = vld [vmem:[%s2919_s3 + $0x68] sm:$0xff]  }
   0xc   : > { %v2330_v1 = vld [vmem:[%s2919_s3 + $0x38] sm:$0xff]   ;;  %2088 = vmatprep.subr.bf16.mxu0 %v2329_v0  ;;  %253 = vst [vmem:[#allocation2] sm:$0xff] %v2409_v3  ;;  %254 = vst [vmem:[#allocation2 + $0x8] sm:$0x3] %v2409_v3  ;;  %v2332_v4 = vld [vmem:[%s2919_s3 + $0x30] sm:$0xff]  }
   0xd   : > { %255 = vst [vmem:[#allocation2 + $0x10] sm:$0xff] %v2409_v3  ;;  %256 = vst [vmem:[#allocation2 + $0x18] sm:$0x3] %v2409_v3  ;;  %2112 = vmatprep.subr.bf16.mxu1 %v2330_v1  ;;  %2089 = vmatpush3.bf16.msra.mxu0 %v2329_v0  ;;  %v2334_v6 = vld [vmem:[%s2919_s3 + $0x28] sm:$0xff]   ;;  %s2933_s22 = smov (!%p2464_p3, %s1763_s22), 1  ;;  %v2335_v7 = vld [vmem:[%s2919_s3 + $0x60] sm:$0xff]  }
   0xe   : > { %257 = vst [vmem:[#allocation2 + $0x20] sm:$0xff] %v2409_v3  ;;  %258 = vst [vmem:[#allocation2 + $0x28] sm:$0x3] %v2409_v3  ;;  %2113 = vmatpush3.bf16.msra.mxu1 %v2330_v1  ;;  %2090 = vmatprep.subr.bf16.mxu0 %v2331_v2  ;;  %v2336_v8 = vld [vmem:[%s2919_s3 + $0x20] sm:$0xff]   ;;  %s1978_s16 = sshll.u32 %s2933_s22, 6  ;;  %v2337_v9 = vld [vmem:[%s2919_s3 + $0x58] sm:$0xff]  }
   0xf   : > { %259 = vst [vmem:[#allocation2 + $0x30] sm:$0xff] %v2409_v3  ;;  %260 = vst [vmem:[#allocation2 + $0x38] sm:$0x3] %v2409_v3  ;;  %2114 = vmatprep.subr.bf16.mxu1 %v2332_v4  ;;  %v2338_v10 = vld [vmem:[%s2919_s3 + $0x18] sm:$0xff]   ;;  %s2521_s25 = scalar_lea.vmem %s2916_s0, %s1978_s16  ;;  %v2339_v11 = vld [vmem:[%s2919_s3 + $0x50] sm:$0xff]   ;;  %s2903_s11 = scalar_lea.vmem %s2922_s6, %s1978_s16 }
  0x10   : > { %261 = vst [vmem:[#allocation2 + $0x40] sm:$0xff] %v2409_v3  ;;  %262 = vst [vmem:[#allocation2 + $0x48] sm:$0x3] %v2409_v3  ;;  %v273_v12 = vld [vmem:[%s2521_s25] sm:$0xff]  ;;  %v2340_v15 = vld [vmem:[%s2919_s3 + $0x10] sm:$0xff]  }
  0x11   : > { %263 = vst [vmem:[#allocation2 + $0x50] sm:$0xff] %v2409_v3  ;;  %264 = vst [vmem:[#allocation2 + $0x58] sm:$0x3] %v2409_v3  ;;  %2091 = vmatpush3.bf16.msra.mxu0 %v2331_v2  ;;  %v2530_v13 = vld [vmem:[%s2917_s1] ss:$0 sm:$0xff]  ;;  %v274_v17 = vld [vmem:[%s2521_s25 + $0x8] sm:$0xff] }
  0x12   : > { %265 = vst [vmem:[#allocation2 + $0x60] sm:$0xff] %v2409_v3  ;;  %266 = vst [vmem:[#allocation2 + $0x68] sm:$0x3] %v2409_v3  ;;  %2115 = vmatpush3.bf16.msra.mxu1 %v2332_v4  ;;  %2092 = vmatprep.subr.bf16.mxu0 %v2333_v5  ;;  %v2535_v14 = vld [vmem:[%s2918_s2] ss:$0 sm:$0xff]  ;;  %v288_v16 = vmul.f32 %v2530_v13, %v273_v12  ;;  %v275_v18 = vld [vmem:[%s2521_s25 + $0x10] sm:$0xff]  ;;  %v289_v19 = vmul.f32 %v2530_v13, %v274_v17 }
  0x13   : > { %267 = vst [vmem:[#allocation2 + $0x70] sm:$0xff] %v2409_v3  ;;  %268 = vst [vmem:[#allocation2 + $0x78] sm:$0x3] %v2409_v3  ;;  %2116 = vmatprep.subr.bf16.mxu1 %v2334_v6  ;;  %v290_v20 = vmul.f32 %v2530_v13, %v275_v18  ;;  %v2341_v21 = vld [vmem:[%s2919_s3 + $0x48] sm:$0xff]   ;;  %v2343_v31 = vld [vmem:[%s2919_s3 + $0x40] sm:$0xff]  }
  0x14   : > { %269 = vst [vmem:[#allocation2 + $0x80] sm:$0xff] %v2409_v3  ;;  %270 = vst [vmem:[#allocation2 + $0x88] sm:$0x3] %v2409_v3  ;;  %v303_v22 = vadd.f32 %v2535_v14, %v288_v16  ;;  %v356_v23 = vld [vmem:[#allocation2 + $0x1] sm:$0xff]  ;;  %v304_v24 = vadd.f32 %v2535_v14, %v289_v19  ;;  %v2345_v33 = vld [vmem:[%s2919_s3 + $0xb8] sm:$0xff]  }
  0x15   : > { %271 = vst [vmem:[#allocation2 + $0x90] sm:$0xff] %v2409_v3  ;;  %272 = vst [vmem:[#allocation2 + $0x98] sm:$0x3] %v2409_v3  ;;  %2093 = vmatpush3.bf16.msra.mxu0 %v2333_v5  ;;  %v305_v25 = vadd.f32 %v2535_v14, %v290_v20  ;;  %v2342_v26 = vld [vmem:[%s2919_s3 + $0x8] sm:$0xff]   ;;  %v2344_v32 = vld [vmem:[%s2919_s3] sm:$0xff]  }
  0x16   : > { %2117 = vmatpush3.bf16.msra.mxu1 %v2334_v6  ;;  %2094 = vmatprep.subr.bf16.mxu0 %v2335_v7  ;;  %v2554_v27 = vmax.f32 %v303_v22, 0.0  ;;  %v2556_v28 = vmax.f32 %v304_v24, 0.0  ;;  %v2346_v34 = vld [vmem:[%s2919_s3 + $0xf8] sm:$0xff]   ;;  %v277_v36 = vld [vmem:[%s2521_s25 + $0x20] sm:$0xff]  ;;  %v278_v39 = vld [vmem:[%s2521_s25 + $0x28] sm:$0xff] }
  0x17   : > { %2118 = vmatprep.subr.bf16.mxu1 %v2336_v8  ;;  %v2558_v29 = vmax.f32 %v305_v25, 0.0  ;;  %v276_v35 = vld [vmem:[%s2521_s25 + $0x18] sm:$0xff]  ;;  %v292_v38 = vmul.f32 %v2530_v13, %v277_v36  ;;  %v279_v40 = vld [vmem:[%s2521_s25 + $0x30] sm:$0xff]  ;;  %v293_v43 = vmul.f32 %v2530_v13, %v278_v39  ;;  %v2349_v60 = vld [vmem:[%s2919_s3 + $0xa8] sm:$0xff]  }
  0x18   : > { %320 = vst [vmem:[#allocation2 + $0x11] sm:$0xff] %v2554_v27  ;;  %v364_v30 = vpack.c.bf16 %v2554_v27, %v356_v23  ;;  %321 = vst [vmem:[#allocation2 + $0x21] sm:$0xff] %v2556_v28  ;;  %v291_v37 = vmul.f32 %v2530_v13, %v276_v35  ;;  %v294_v44 = vmul.f32 %v2530_v13, %v279_v40  ;;  %v2347_v51 = vld [vmem:[%s2919_s3 + $0xb0] sm:$0xff]   ;;  %v2350_v62 = vld [vmem:[%s2919_s3 + $0xe8] sm:$0xff]  }
  0x19   : > { %2095 = vmatpush3.bf16.msra.mxu0 %v2335_v7  ;;  %322 = vst [vmem:[#allocation2 + $0x31] sm:$0xff] %v2558_v29  ;;  %v2586_v42 = vpack.c.bf16 %v2558_v29, %v2556_v28  ;;  %v307_v49 = vadd.f32 %v2535_v14, %v292_v38  ;;  %v308_v52 = vadd.f32 %v2535_v14, %v293_v43  ;;  %v2348_v54 = vld [vmem:[%s2919_s3 + $0xf0] sm:$0xff]   ;;  %v611_v63 = vld [vmem:[#allocation2 + $0x2] sm:$0xff]  ;;  %v2353_v12 = vld [vmem:[%s2919_s3 + $0x98] sm:$0xff]  }
  0x1a   : > { %2119 = vmatpush3.bf16.msra.mxu1 %v2336_v8  ;;  %2096 = vmatprep.subr.bf16.mxu0 %v2337_v9  ;;  %v306_v48 = vadd.f32 %v2535_v14, %v291_v37  ;;  %v309_v53 = vadd.f32 %v2535_v14, %v294_v44  ;;  %v2351_v4 = vld [vmem:[%s2919_s3 + $0xa0] sm:$0xff]   ;;  %v2354_v16 = vld [vmem:[%s2919_s3 + $0xd8] sm:$0xff]   ;;  %v2355_v18 = vld [vmem:[%s2919_s3 + $0x90] sm:$0xff]  }
  0x1b   : > { %2120 = vmatprep.subr.bf16.mxu1 %v2338_v10  ;;  %2104 = vmatprep.mubr.bf16.mxu0 %v364_v30  ;;  %v2609_v56 = vmax.f32 %v307_v49, 0.0  ;;  %v2612_v57 = vmax.f32 %v308_v52, 0.0  ;;  %v2352_v5 = vld [vmem:[%s2919_s3 + $0xe0] sm:$0xff]   ;;  %v280_v17 = vld [vmem:[%s2521_s25 + $0x38] sm:$0xff]  ;;  %v2356_v20 = vld [vmem:[%s2919_s3 + $0xd0] sm:$0xff]  }
  0x1c   : > { %v2607_v55 = vmax.f32 %v306_v48, 0.0  ;;  %v2614_v58 = vmax.f32 %v309_v53, 0.0  ;;  %v295_v19 = vmul.f32 %v2530_v13, %v280_v17  ;;  %v2357_v22 = vld [vmem:[%s2919_s3 + $0x88] sm:$0xff]   ;;  %v2360_v24 = vld [vmem:[%s2919_s3 + $0xc0] sm:$0xff]   ;;  %v2361_v30 = vld [vmem:[%s2919_s3 + $0x138] sm:$0xff]  }
  0x1d   : > { %2097 = vmatpush3.bf16.msra.mxu0 %v2337_v9  ;;  %324 = vst [vmem:[#allocation2 + $0x51] sm:$0xff] %v2609_v56  ;;  %325 = vst [vmem:[#allocation2 + $0x61] sm:$0xff] %v2612_v57  ;;  %v921_v61 = vpack.c.bf16 %v2612_v57, %v2609_v56  ;;  %v2358_v13 = vld [vmem:[%s2919_s3 + $0xc8] sm:$0xff]   ;;  %v2363_v36 = vld [vmem:[%s2919_s3 + $0x130] sm:$0xff]  }
  0x1e   : > { %2121 = vmatpush3.bf16.msra.mxu1 %v2338_v10  ;;  %2098 = vmatprep.subr.bf16.mxu0 %v2339_v11  ;;  %323 = vst [vmem:[#allocation2 + $0x41] sm:$0xff] %v2607_v55  ;;  %v2621_v59 = vpack.c.bf16 %v2609_v56, %v2607_v55  ;;  %326 = vst [vmem:[#allocation2 + $0x71] sm:$0xff] %v2614_v58  ;;  %v2638_v1 = vpack.c.bf16 %v2614_v58, %v2612_v57  ;;  %v2364_v37 = vld [vmem:[%s2919_s3 + $0x170] sm:$0xff]   ;;  %v2365_v43 = vld [vmem:[%s2919_s3 + $0x128] sm:$0xff]  }
  0x1f   : > { %2122 = vmatprep.subr.bf16.mxu1 %v2340_v15  ;;  %v2582_v41 = vld [vmem:[#allocation2 + $0x10] sm:$0xff]  ;;  %v330_v46 = vld [vmem:[#allocation2 + $0x20] sm:$0xff]  ;;  %v2369_v53 = vld [vmem:[%s2919_s3 + $0x118] sm:$0xff]  }
  0x20   : > { %v336_v45 = vpack.c.bf16 %v2582_v41, %v2409_v3  ;;  %v2592_v47 = vld [vmem:[#allocation2 + $0x30] sm:$0xff]  ;;  %v613_v25 = vld [vmem:[#allocation2 + $0x22] sm:$0xff]  ;;  %v2385_v57 = vld [vmem:[%s2919_s3 + $0x198] sm:$0xff]  }
  0x21   : > { %2099 = vmatpush3.bf16.msra.mxu0 %v2339_v11  ;;  %v2597_v50 = vpack.c.bf16 %v2592_v47, %v330_v46  ;;  %v2634_v0 = vld [vmem:[#allocation2 + $0x12] sm:$0xff]  ;;  %v769_v11 = vpack.c.bf16 %v330_v46, %v2582_v41  ;;  %v2367_v48 = vld [vmem:[%s2919_s3 + $0x120] sm:$0xff]  }
  0x22   : > { %2123 = vmatpush3.bf16.msra.mxu1 %v2340_v15  ;;  %2100 = vmatprep.subr.bf16.mxu0 %v2341_v21  ;;  %v619_v2 = vpack.c.bf16 %v2634_v0, %v611_v63  ;;  %v2368_v49 = vld [vmem:[%s2919_s3 + $0x160] sm:$0xff]   ;;  %v1069_v52 = vpack.c.bf16 %v613_v25, %v2634_v0 }
  0x23   : > { %2124 = vmatprep.subr.bf16.mxu1 %v2342_v26  ;;  %2128 = vmatprep.mubr.bf16.mxu1 %v336_v45  ;;  %v2366_v45 = vld [vmem:[%s2919_s3 + $0x168] sm:$0xff]   ;;  %v2375_v63 = vld [vmem:[%s2919_s3 + $0x100] sm:$0xff]  }
  0x24   : > { %v2649_v7 = vld [vmem:[#allocation2 + $0x50] sm:$0xff]  ;;  %v2656_v9 = vld [vmem:[#allocation2 + $0x60] sm:$0xff] }
  0x25   : > { %2101 = vmatpush3.bf16.msra.mxu0 %v2341_v21  ;;  %v2647_v6 = vld [vmem:[#allocation2 + $0x40] sm:$0xff]  ;;  %v2658_v10 = vld [vmem:[#allocation2 + $0x70] sm:$0xff]  ;;  %v310_v21 = vadd.f32 %v2535_v14, %v295_v19  ;;  %v771_v41 = vpack.c.bf16 %v2656_v9, %v2649_v7 }
  0x26   : > { %2125 = vmatpush3.bf16.msra.mxu1 %v2342_v26  ;;  %2102 = vmatprep.subr.bf16.mxu0 %v2343_v31  ;;  %v2654_v8 = vpack.c.bf16 %v2649_v7, %v2647_v6  ;;  %v2666_v15 = vpack.c.bf16 %v2658_v10, %v2656_v9  ;;  %v2359_v14 = vld [vmem:[%s2919_s3 + $0x80] sm:$0xff]   ;;  %v2697_v26 = vld [vmem:[#allocation2 + $0x32] sm:$0xff]  ;;  %v770_v35 = vpack.c.bf16 %v2647_v6, %v2592_v47 }
  0x27   : > { %2126 = vmatprep.subr.bf16.mxu1 %v2344_v32  ;;  %v2685_v23 = vmax.f32 %v310_v21, 0.0  ;;  %v2724_v39 = vld [vmem:[#allocation2 + $0x62] sm:$0xff]  ;;  %v2727_v40 = vld [vmem:[#allocation2 + $0x72] sm:$0xff] }
  0x28   : > { %v2742_v46 = vpack.c.bf16 %v2727_v40, %v2724_v39  ;;  %v2376_v0 = vld [vmem:[%s2919_s3 + $0x140] sm:$0xff]   ;;  %v2379_v7 = vld [vmem:[%s2919_s3 + $0x1b0] sm:$0xff]   ;;  %v2393_v21 = vld [vmem:[%s2919_s3 + $0x238] sm:$0xff]  }
  0x29   : > { %2103 = vmatpush3.bf16.msra.mxu0 %v2343_v31  ;;  %327 = vst [vmem:[#allocation2 + $0x81] sm:$0xff] %v2685_v23  ;;  %v2362_v31 = vld [vmem:[%s2919_s3 + $0x178] sm:$0xff]   ;;  %v2380_v9 = vld [vmem:[%s2919_s3 + $0x1f0] sm:$0xff]   ;;  %v2383_v17 = vld [vmem:[%s2919_s3 + $0x1a0] sm:$0xff]  }
  0x2a   : > { %2127 = vmatpush3.bf16.msra.mxu1 %v2344_v32  ;;  %2136 = vmatprep.subr.bf16.mxu0 %v2345_v33  ;;  %v2705_v32 = vld [vmem:[#allocation2 + $0x42] sm:$0xff] }
  0x2b   : > { %2160 = vmatprep.subr.bf16.mxu1 %v2346_v34  ;;  %v1070_v6 = vpack.c.bf16 %v2705_v32, %v2697_v26  ;;  %v2384_v56 = vld [vmem:[%s2919_s3 + $0x1e0] sm:$0xff]  }
  0x2c   : > { %2105 = vmatmul.mubr.bf16.vlgmr.msra.gmra.mxu0 %v2586_v42  ;;  %v2391_v19 = vld [vmem:[%s2919_s3 + $0x180] sm:$0xff]  }
  0x2d   : > { %2129 = vmatmul.mubr.bf16.vlgmr.msra.gmra.mxu1 %v2597_v50  ;;  %2137 = vmatpush3.bf16.msra.mxu0 %v2345_v33  ;;  %v2708_v33 = vpack.c.bf16 %v2697_v26, %v613_v25  ;;  %v1519_v25 = vld [vmem:[#allocation2 + $0x92] sm:$0xff] }
  0x2e   : > { %2161 = vmatpush3.bf16.msra.mxu1 %v2346_v34  ;;  %2138 = vmatprep.subr.bf16.mxu0 %v2347_v51  ;;  %v2710_v34 = vld [vmem:[#allocation2 + $0x52] sm:$0xff] }
  0x2f   : > { %2162 = vmatprep.subr.bf16.mxu1 %v2348_v54  ;;  %2108 = vmatprep.mubr.bf16.mxu0 %v2621_v59  ;;  %v2722_v38 = vpack.c.bf16 %v2710_v34, %v2705_v32 }
  0x30   : > { %2132 = vmatprep.mubr.bf16.mxu1 %v2654_v8  ;;  %v2734_v44 = vld [vmem:[#allocation2 + $0x80] sm:$0xff] }
  0x31   : > { %2139 = vmatpush3.bf16.msra.mxu0 %v2347_v51  ;;  %v772_v47 = vpack.c.bf16 %v2734_v44, %v2658_v10  ;;  %v919_v51 = vpack.c.bf16 %v2556_v28, %v2554_v27  ;;  %v2371_v27 = vld [vmem:[%s2919_s3 + $0x110] sm:$0xff]   ;;  %v1071_v10 = vpack.c.bf16 %v2724_v39, %v2710_v34 }
  0x32   : > { %2163 = vmatpush3.bf16.msra.mxu1 %v2348_v54  ;;  %2140 = vmatprep.subr.bf16.mxu0 %v2349_v60  ;;  %v2370_v54 = vld [vmem:[%s2919_s3 + $0x158] sm:$0xff]   ;;  %v2372_v28 = vld [vmem:[%s2919_s3 + $0x150] sm:$0xff]  }
  0x33   : > { %2164 = vmatprep.subr.bf16.mxu1 %v2350_v62 }
  0x34   : > { %2109 = vmatmul.mubr.bf16.gmra.mxu0 %v2638_v1 }
  0x35   : > { %2141 = vmatpush3.bf16.msra.mxu0 %v2349_v60  ;;  %2152 = vmatprep.mubr.bf16.mxu0 %v619_v2  ;;  %v2373_v60 = vld [vmem:[%s2919_s3 + $0x108] sm:$0xff]   ;;  %v2377_v2 = vld [vmem:[%s2919_s3 + $0x1b8] sm:$0xff]  }
  0x36   : > { %2165 = vmatpush3.bf16.msra.mxu1 %v2350_v62  ;;  %2142 = vmatprep.subr.bf16.mxu0 %v2351_v4  ;;  %v2374_v62 = vld [vmem:[%s2919_s3 + $0x148] sm:$0xff]  }
  0x37   : > { %2166 = vmatprep.subr.bf16.mxu1 %v2352_v5  ;;  %2133 = vmatmul.mubr.bf16.gmra.mxu1 %v2666_v15 }
  0x38   : > { %2176 = vmatprep.mubr.bf16.mxu1 %v769_v11  ;;  %v2382_v11 = vld [vmem:[%s2919_s3 + $0x1e8] sm:$0xff]  }
  0x39   : > { %2143 = vmatpush3.bf16.msra.mxu0 %v2351_v4  ;;  %v2378_v4 = vld [vmem:[%s2919_s3 + $0x1f8] sm:$0xff]  }
  0x3a   : > { %2167 = vmatpush3.bf16.msra.mxu1 %v2352_v5  ;;  %2144 = vmatprep.subr.bf16.mxu0 %v2353_v12  ;;  %v920_v5 = vpack.c.bf16 %v2607_v55, %v2558_v29  ;;  %v2381_v29 = vld [vmem:[%s2919_s3 + $0x1a8] sm:$0xff]  }
  0x3b   : > { %2168 = vmatprep.subr.bf16.mxu1 %v2354_v16  ;;  %v2801_v55 = vld [vmem:[#allocation2 + $0x82] sm:$0xff] }
  0x3c   : > { %v1523_v26 = vpack.c.bf16 %v1519_v25, %v2801_v55 }
  0x3d   : > { %2145 = vmatpush3.bf16.msra.mxu0 %v2353_v12  ;;  %v922_v12 = vpack.c.bf16 %v2685_v23, %v2614_v58  ;;  %v2386_v58 = vld [vmem:[%s2919_s3 + $0x1d8] sm:$0xff]  }
  0x3e   : > { %2169 = vmatpush3.bf16.msra.mxu1 %v2354_v16  ;;  %2146 = vmatprep.subr.bf16.mxu0 %v2355_v18  ;;  %v1072_v16 = vpack.c.bf16 %v2801_v55, %v2727_v40 }
  0x3f   : > { %2170 = vmatprep.subr.bf16.mxu1 %v2356_v20 }
  0x41   : > { %2147 = vmatpush3.bf16.msra.mxu0 %v2355_v18  ;;  %v2388_v18 = vld [vmem:[%s2919_s3 + $0x1d0] sm:$0xff]  }
  0x42   : > { %2171 = vmatpush3.bf16.msra.mxu1 %v2356_v20  ;;  %2148 = vmatprep.subr.bf16.mxu0 %v2357_v22  ;;  %v2392_v20 = vld [vmem:[%s2919_s3 + $0x1c0] sm:$0xff]  }
  0x43   : > { %2172 = vmatprep.subr.bf16.mxu1 %v2358_v13 }
  0x45   : > { %2149 = vmatpush3.bf16.msra.mxu0 %v2357_v22  ;;  %v2394_v22 = vld [vmem:[%s2919_s3 + $0x230] sm:$0xff]  }
  0x46   : > { %2173 = vmatpush3.bf16.msra.mxu1 %v2358_v13  ;;  %2150 = vmatprep.subr.bf16.mxu0 %v2359_v14  ;;  %v2395_v13 = vld [vmem:[%s2919_s3 + $0x228] sm:$0xff]  }
  0x47   : > { %2174 = vmatprep.subr.bf16.mxu1 %v2360_v24 }
  0x49   : > { %2151 = vmatpush3.bf16.msra.mxu0 %v2359_v14  ;;  %v1369_v14 = vld [vmem:[#allocation2 + $0x91] sm:$0xff] }
  0x4a   : > { %2175 = vmatpush3.bf16.msra.mxu1 %v2360_v24  ;;  %2184 = vmatprep.subr.bf16.mxu0 %v2361_v30  ;;  %v1223_v24 = vpack.c.bf16 %v2409_v3, %v2734_v44  ;;  %v2397_v3 = vld [vmem:[%s2919_s3 + $0x218] sm:$0xff]  }
  0x4b   : > { %2208 = vmatprep.subr.bf16.mxu1 %v2362_v31 }
  0x4c   : > { %2153 = vmatmul.mubr.bf16.vlgmr.msra.gmra.mxu0 %v2708_v33 }
  0x4d   : > { %2177 = vmatmul.mubr.bf16.vlgmr.msra.gmra.mxu1 %v770_v35  ;;  %2185 = vmatpush3.bf16.msra.mxu0 %v2361_v30 }
  0x4e   : > { %2209 = vmatpush3.bf16.msra.mxu1 %v2362_v31  ;;  %2186 = vmatprep.subr.bf16.mxu0 %v2363_v36 }
  0x4f   : > { %2210 = vmatprep.subr.bf16.mxu1 %v2364_v37  ;;  %2156 = vmatprep.mubr.bf16.mxu0 %v2722_v38 }
  0x50   : > { %2180 = vmatprep.mubr.bf16.mxu1 %v771_v41 }
  0x51   : > { %2187 = vmatpush3.bf16.msra.mxu0 %v2363_v36 }
  0x52   : > { %2211 = vmatpush3.bf16.msra.mxu1 %v2364_v37  ;;  %2188 = vmatprep.subr.bf16.mxu0 %v2365_v43 }
  0x53   : > { %2212 = vmatprep.subr.bf16.mxu1 %v2366_v45 }
  0x54   : > { %2157 = vmatmul.mubr.bf16.gmra.mxu0 %v2742_v46 }
  0x55   : > { %2189 = vmatpush3.bf16.msra.mxu0 %v2365_v43  ;;  %2181 = vmatmul.mubr.bf16.gmra.mxu1 %v772_v47 }
  0x56   : > { %2213 = vmatpush3.bf16.msra.mxu1 %v2366_v45  ;;  %2190 = vmatprep.subr.bf16.mxu0 %v2367_v48 }
  0x57   : > { %2214 = vmatprep.subr.bf16.mxu1 %v2368_v49  ;;  %2200 = vmatprep.mubr.bf16.mxu0 %v919_v51 }
  0x58   : > { %2224 = vmatprep.mubr.bf16.mxu1 %v1069_v52 }
  0x59   : > { %2191 = vmatpush3.bf16.msra.mxu0 %v2367_v48 }
  0x5a   : > { %2215 = vmatpush3.bf16.msra.mxu1 %v2368_v49  ;;  %2192 = vmatprep.subr.bf16.mxu0 %v2369_v53 }
  0x5b   : > { %2216 = vmatprep.subr.bf16.mxu1 %v2370_v54 }
  0x5d   : > { %2193 = vmatpush3.bf16.msra.mxu0 %v2369_v53 }
  0x5e   : > { %2217 = vmatpush3.bf16.msra.mxu1 %v2370_v54  ;;  %2194 = vmatprep.subr.bf16.mxu0 %v2371_v27 }
  0x5f   : > { %2218 = vmatprep.subr.bf16.mxu1 %v2372_v28 }
  0x61   : > { %2195 = vmatpush3.bf16.msra.mxu0 %v2371_v27 }
  0x62   : > { %2219 = vmatpush3.bf16.msra.mxu1 %v2372_v28  ;;  %2196 = vmatprep.subr.bf16.mxu0 %v2373_v60 }
  0x63   : > { %2220 = vmatprep.subr.bf16.mxu1 %v2374_v62 }
  0x65   : > { %2197 = vmatpush3.bf16.msra.mxu0 %v2373_v60 }
  0x66   : > { %2221 = vmatpush3.bf16.msra.mxu1 %v2374_v62  ;;  %2198 = vmatprep.subr.bf16.mxu0 %v2375_v63 }
  0x67   : > { %2222 = vmatprep.subr.bf16.mxu1 %v2376_v0 }
  0x69   : > { %2199 = vmatpush3.bf16.msra.mxu0 %v2375_v63 }
  0x6a   : > { %2223 = vmatpush3.bf16.msra.mxu1 %v2376_v0  ;;  %2232 = vmatprep.subr.bf16.mxu0 %v2377_v2 }
  0x6b   : > { %2256 = vmatprep.subr.bf16.mxu1 %v2378_v4 }
  0x6c   : > { %2201 = vmatmul.mubr.bf16.vlgmr.msra.gmra.mxu0 %v920_v5 }
  0x6d   : > { %2225 = vmatmul.mubr.bf16.vlgmr.msra.gmra.mxu1 %v1070_v6  ;;  %2233 = vmatpush3.bf16.msra.mxu0 %v2377_v2 }
  0x6e   : > { %2257 = vmatpush3.bf16.msra.mxu1 %v2378_v4  ;;  %2234 = vmatprep.subr.bf16.mxu0 %v2379_v7 }
  0x6f   : > { %2258 = vmatprep.subr.bf16.mxu1 %v2380_v9  ;;  %2204 = vmatprep.mubr.bf16.mxu0 %v921_v61  ;;  %v2387_v61 = vld [vmem:[%s2919_s3 + $0x190] sm:$0xff]  }
  0x70   : > { %2228 = vmatprep.mubr.bf16.mxu1 %v1071_v10 }
  0x71   : > { %2235 = vmatpush3.bf16.msra.mxu0 %v2379_v7 }
  0x72   : > { %2259 = vmatpush3.bf16.msra.mxu1 %v2380_v9  ;;  %2236 = vmatprep.subr.bf16.mxu0 %v2381_v29 }
  0x73   : > { %2260 = vmatprep.subr.bf16.mxu1 %v2382_v11 }
  0x74   : > { %2205 = vmatmul.mubr.bf16.gmra.mxu0 %v922_v12 }
  0x75   : > { %2237 = vmatpush3.bf16.msra.mxu0 %v2381_v29  ;;  %2229 = vmatmul.mubr.bf16.gmra.mxu1 %v1072_v16 }
  0x76   : > { %2261 = vmatpush3.bf16.msra.mxu1 %v2382_v11  ;;  %2238 = vmatprep.subr.bf16.mxu0 %v2383_v17 }
  0x77   : > { %2262 = vmatprep.subr.bf16.mxu1 %v2384_v56  ;;  %2248 = vmatprep.mubr.bf16.mxu0 %v2597_v50  ;;  %v2389_v50 = vld [vmem:[%s2919_s3 + $0x188] sm:$0xff]  }
  0x78   : > { %2272 = vmatprep.mubr.bf16.mxu1 %v2586_v42  ;;  %v2390_v42 = vld [vmem:[%s2919_s3 + $0x1c8] sm:$0xff]  }
  0x79   : > { %2239 = vmatpush3.bf16.msra.mxu0 %v2383_v17 }
  0x7a   : > { %2263 = vmatpush3.bf16.msra.mxu1 %v2384_v56  ;;  %2240 = vmatprep.subr.bf16.mxu0 %v2385_v57 }
  0x7b   : > { %2264 = vmatprep.subr.bf16.mxu1 %v2386_v58 }
  0x7d   : > { %2241 = vmatpush3.bf16.msra.mxu0 %v2385_v57 }
  0x7e   : > { %2265 = vmatpush3.bf16.msra.mxu1 %v2386_v58  ;;  %2242 = vmatprep.subr.bf16.mxu0 %v2387_v61 }
  0x7f   : > { %2266 = vmatprep.subr.bf16.mxu1 %v2388_v18 }
  0x81   : > { %2243 = vmatpush3.bf16.msra.mxu0 %v2387_v61 }
  0x82   : > { %2267 = vmatpush3.bf16.msra.mxu1 %v2388_v18  ;;  %2244 = vmatprep.subr.bf16.mxu0 %v2389_v50 }
  0x83   : > { %2268 = vmatprep.subr.bf16.mxu1 %v2390_v42 }
  0x85   : > { %2245 = vmatpush3.bf16.msra.mxu0 %v2389_v50 }
  0x86   : > { %2269 = vmatpush3.bf16.msra.mxu1 %v2390_v42  ;;  %2246 = vmatprep.subr.bf16.mxu0 %v2391_v19 }
  0x87   : > { %2270 = vmatprep.subr.bf16.mxu1 %v2392_v20 }
  0x89   : > { %2247 = vmatpush3.bf16.msra.mxu0 %v2391_v19 }
  0x8a   : > { %2271 = vmatpush3.bf16.msra.mxu1 %v2392_v20  ;;  %2280 = vmatprep.subr.bf16.mxu0 %v2393_v21 }
  0x8b   : > { %2304 = vmatprep.subr.bf16.mxu1 %v2393_v21 }
  0x8c   : > { %2249 = vmatmul.mubr.bf16.vlgmr.msra.gmra.mxu0 %v2654_v8  ;;  %v1373_v8 = vpack.c.bf16 %v1369_v14, %v2685_v23  ;;  %v2400_v23 = vld [vmem:[%s2919_s3 + $0x200] sm:$0xff]  }
  0x8d   : > { %2273 = vmatmul.mubr.bf16.vlgmr.msra.gmra.mxu1 %v2621_v59  ;;  %2281 = vmatpush3.bf16.msra.mxu0 %v2393_v21  ;;  %v2396_v59 = vld [vmem:[%s2919_s3 + $0x220] sm:$0xff]  }
  0x8e   : > { %2312 = vmatpush3.bf16.msra.mxu1 %v2393_v21  ;;  %2282 = vmatprep.subr.bf16.mxu0 %v2394_v22 }
  0x8f   : > { %2305 = vmatprep.subr.bf16.mxu1 %v2394_v22  ;;  %2252 = vmatprep.mubr.bf16.mxu0 %v2666_v15  ;;  %v2399_v15 = vld [vmem:[%s2919_s3 + $0x208] sm:$0xff]  }
  0x90   : > { %2276 = vmatprep.mubr.bf16.mxu1 %v2638_v1  ;;  %v2398_v1 = vld [vmem:[%s2919_s3 + $0x210] sm:$0xff]  }
  0x91   : > { %2283 = vmatpush3.bf16.msra.mxu0 %v2394_v22 }
  0x92   : > { %2313 = vmatpush3.bf16.msra.mxu1 %v2394_v22  ;;  %2284 = vmatprep.subr.bf16.mxu0 %v2395_v13 }
  0x93   : > { %2306 = vmatprep.subr.bf16.mxu1 %v2395_v13 }
  0x94   : > { %2253 = vmatmul.mubr.bf16.gmra.mxu0 %v1223_v24 }
  0x95   : > { %2285 = vmatpush3.bf16.msra.mxu0 %v2395_v13  ;;  %2277 = vmatmul.mubr.bf16.gmra.mxu1 %v1373_v8 }
  0x96   : > { %2314 = vmatpush3.bf16.msra.mxu1 %v2395_v13  ;;  %2286 = vmatprep.subr.bf16.mxu0 %v2396_v59 }
  0x97   : > { %2307 = vmatprep.subr.bf16.mxu1 %v2396_v59  ;;  %2296 = vmatprep.mubr.bf16.mxu0 %v2708_v33 }
  0x98   : > { %2300 = vmatprep.mubr.bf16.mxu1 %v2742_v46 }
  0x99   : > { %2287 = vmatpush3.bf16.msra.mxu0 %v2396_v59 }
  0x9a   : > { %2315 = vmatpush3.bf16.msra.mxu1 %v2396_v59  ;;  %2288 = vmatprep.subr.bf16.mxu0 %v2397_v3 }
  0x9b   : > { %2308 = vmatprep.subr.bf16.mxu1 %v2397_v3 }
  0x9d   : > { %2289 = vmatpush3.bf16.msra.mxu0 %v2397_v3 }
  0x9e   : > { %2316 = vmatpush3.bf16.msra.mxu1 %v2397_v3  ;;  %2290 = vmatprep.subr.bf16.mxu0 %v2398_v1 }
  0x9f   : > { %2309 = vmatprep.subr.bf16.mxu1 %v2398_v1 }
  0xa1   : > { %2291 = vmatpush3.bf16.msra.mxu0 %v2398_v1 }
  0xa2   : > { %2317 = vmatpush3.bf16.msra.mxu1 %v2398_v1  ;;  %2292 = vmatprep.subr.bf16.mxu0 %v2399_v15 }
  0xa3   : > { %2310 = vmatprep.subr.bf16.mxu1 %v2399_v15 }
  0xa5   : > { %2293 = vmatpush3.bf16.msra.mxu0 %v2399_v15 }
  0xa6   : > { %2318 = vmatpush3.bf16.msra.mxu1 %v2399_v15  ;;  %2294 = vmatprep.subr.bf16.mxu0 %v2400_v23 }
  0xa7   : > { %2311 = vmatprep.subr.bf16.mxu1 %v2400_v23 }
  0xa9   : > { %2295 = vmatpush3.bf16.msra.mxu0 %v2400_v23 }
  0xaa   : > { %2319 = vmatpush3.bf16.msra.mxu1 %v2400_v23 }
  0xac   : > { %2297 = vmatmul.mubr.bf16.vlgmr.msra.gmra.mxu0 %v2722_v38 }
  0xad   : > { %2301 = vmatmul.mubr.bf16.vlgmr.msra.gmra.mxu1 %v1523_v26 }
  0xec   : > { %v2106_v30 = vpop.f32.mrf.mxu0 }
  0xed   : > { %v2130_v32 = vpop.f32.mrf.mxu1 }
  0xee   : > { %v467_v31 = vpop.f32.mrf.mxu0  ;;  %v589_v13 = vadd.f32 %v2130_v32, %v2106_v30 }
  0xef   : > { %v580_v34 = vpop.f32.mrf.mxu1 }
  0xf0   : > { %v2107_v33 = vpop.f32.mrf.mxu0  ;;  %v581_v59 = vadd.f32 %v580_v34, %v467_v31 }
  0xf1   : > { %v2131_v37 = vpop.f32.mrf.mxu1 }
  0xf2   : > { %v470_v35 = vpop.f32.mrf.mxu0  ;;  %v592_v23 = vadd.f32 %v2131_v37, %v2107_v33 }
  0xf3   : > { %v583_v40 = vpop.f32.mrf.mxu1 }
  0xf4   : > { %v2110_v36 = vpop.f32.mrf.mxu0  ;;  %v584_v32 = vadd.f32 %v583_v40, %v470_v35 }
  0xf6   : > { %v483_v39 = vpop.f32.mrf.mxu0 }
  0xf7   : > { %v2134_v41 = vpop.f32.mrf.mxu1 }
  0xf8   : > { %v2111_v43 = vpop.f32.mrf.mxu0  ;;  %v605_v24 = vadd.f32 %v2134_v41, %v2110_v36 }
  0xf9   : > { %v596_v44 = vpop.f32.mrf.mxu1 }
  0xfa   : > { %v486_v45 = vpop.f32.mrf.mxu0  ;;  %v597_v1 = vadd.f32 %v596_v44, %v483_v39 }
  0xfb   : > { %v2135_v47 = vpop.f32.mrf.mxu1 }
  0xfd   : > { %v599_v49 = vpop.f32.mrf.mxu1 }
  0xfe   : > { %v600_v31 = vadd.f32 %v599_v49, %v486_v45 }
 0x10c   : > { %v2154_v46 = vpop.f32.mrf.mxu0 }
 0x10d   : > { %v2178_v38 = vpop.f32.mrf.mxu1  ;;  %v755_v3 = vadd.f32 %v2154_v46, %v589_v13 }
 0x10e   : > { %v722_v48 = vpop.f32.mrf.mxu0 }
 0x10f   : > { %v872_v52 = vpop.f32.mrf.mxu1  ;;  %v753_v25 = vadd.f32 %v722_v48, %v581_v59 }
 0x110   : > { %v2155_v51 = vpop.f32.mrf.mxu0 }
 0x111   : > { %v2179_v54 = vpop.f32.mrf.mxu1  ;;  %v756_v36 = vadd.f32 %v2155_v51, %v592_v23  ;;  %v903_v46 = vadd.f32 %v872_v52, %v753_v25 }
 0x112   : > { %v725_v53 = vpop.f32.mrf.mxu0 }
 0x113   : > { %v875_v28 = vpop.f32.mrf.mxu1  ;;  %v754_v39 = vadd.f32 %v725_v53, %v584_v32  ;;  %v906_v48 = vadd.f32 %v2179_v54, %v756_v36 }
 0x114   : > { %v2158_v27 = vpop.f32.mrf.mxu0 }
 0x115   : > { %v2182_v62 = vpop.f32.mrf.mxu1  ;;  %v759_v15 = vadd.f32 %v2158_v27, %v605_v24 }
 0x116   : > { %v738_v60 = vpop.f32.mrf.mxu0 }
 0x117   : > { %v888_v0 = vpop.f32.mrf.mxu1  ;;  %v909_v34 = vadd.f32 %v2182_v62, %v759_v15 }
 0x118   : > { %v2159_v63 = vpop.f32.mrf.mxu0 }
 0x119   : > { %v2183_v4 = vpop.f32.mrf.mxu1 }
 0x11a   : > { %v741_v2 = vpop.f32.mrf.mxu0 }
 0x11b   : > { %v891_v6 = vpop.f32.mrf.mxu1  ;;  %v758_v27 = vadd.f32 %v741_v2, %v600_v31 }
 0x12c   : > { %v2202_v5 = vpop.f32.mrf.mxu0 }
 0x12d   : > { %v2226_v9 = vpop.f32.mrf.mxu1 }
 0x12e   : > { %v1022_v7 = vpop.f32.mrf.mxu0 }
 0x12f   : > { %v1172_v29 = vpop.f32.mrf.mxu1  ;;  %v1053_v59 = vadd.f32 %v1022_v7, %v903_v46 }
 0x130   : > { %v2203_v10 = vpop.f32.mrf.mxu0 }
 0x131   : > { %v2227_v11 = vpop.f32.mrf.mxu1  ;;  %v1056_v40 = vadd.f32 %v2203_v10, %v906_v48  ;;  %v1203_v62 = vadd.f32 %v1172_v29, %v1053_v59 }
 0x132   : > { %v1025_v55 = vpop.f32.mrf.mxu0 }
 0x133   : > { %v2880_v16 = vpop.f32.mrf.mxu1 }
 0x134   : > { %v2206_v12 = vpop.f32.mrf.mxu0  ;;  %2924 = vst [vmem:[#allocation3_spill] sm:$0xff] %v2880_v16  ;;  %v608_v16 = vadd.f32 %v2135_v47, %v2111_v43 }
 0x135   : > { %v2230_v17 = vpop.f32.mrf.mxu1  ;;  %v1059_v33 = vadd.f32 %v2206_v12, %v909_v34  ;;  %v1206_v12 = vadd.f32 %v2227_v11, %v1056_v40 }
 0x136   : > { %v1038_v56 = vpop.f32.mrf.mxu0  ;;  %v760_v13 = vadd.f32 %v2159_v63, %v608_v16 }
 0x137   : > { %v1188_v57 = vpop.f32.mrf.mxu1  ;;  %v1209_v51 = vadd.f32 %v2230_v17, %v1059_v33 }
 0x138   : > { %v2207_v58 = vpop.f32.mrf.mxu0  ;;  %v910_v43 = vadd.f32 %v2183_v4, %v760_v13 }
 0x139   : > { %v2231_v61 = vpop.f32.mrf.mxu1 }
 0x13a   : > { %v1041_v18 = vpop.f32.mrf.mxu0  ;;  %v1060_v45 = vadd.f32 %v2207_v58, %v910_v43 }
 0x13b   : > { %v1191_v42 = vpop.f32.mrf.mxu1 }
 0x13c   : > { %v1210_v7 = vadd.f32 %v2231_v61, %v1060_v45 }
 0x14c   : > { %v2250_v50 = vpop.f32.mrf.mxu0 }
 0x14d   : > { %v2274_v19 = vpop.f32.mrf.mxu1 }
 0x14e   : > { %v1323_v20 = vpop.f32.mrf.mxu0 }
 0x14f   : > { %v2882_v21 = vpop.f32.mrf.mxu1  ;;  %v1354_v54 = vadd.f32 %v1323_v20, %v1203_v62 }
 0x150   : > { %2925 = vst [vmem:[#allocation4_spill] sm:$0xff] %v2882_v21  ;;  %v2251_v22 = vpop.f32.mrf.mxu0  ;;  %v757_v21 = vadd.f32 %v738_v60, %v597_v1  ;;  %v904_v60 = vadd.f32 %v875_v28, %v754_v39 }
 0x151   : > { %v2884_v14 = vpop.f32.mrf.mxu1  ;;  %v1357_v10 = vadd.f32 %v2251_v22, %v1206_v12 }
 0x152   : > { %2926 = vst [vmem:[#allocation5_spill] sm:$0xff] %v2884_v14  ;;  %v1326_v8 = vpop.f32.mrf.mxu0  ;;  %v905_v14 = vadd.f32 %v2178_v38, %v755_v3  ;;  %v907_v24 = vadd.f32 %v888_v0, %v757_v21  ;;  %v908_v38 = vadd.f32 %v891_v6, %v758_v27  ;;  %v1054_v52 = vadd.f32 %v1025_v55, %v904_v60  ;;  %v1974_v55 = vld [vmem:[%s2920_s4] ss:$0 sm:$0xff] }
 0x153   : > { %v2886_v26 = vpop.f32.mrf.mxu1 }
 0x154   : > { %2927 = vst [vmem:[#allocation6_spill] sm:$0xff] %v2886_v26  ;;  %v2254_v30 = vpop.f32.mrf.mxu0  ;;  %v1055_v44 = vadd.f32 %v2202_v5, %v905_v14  ;;  %v1057_v47 = vadd.f32 %v1038_v56, %v907_v24  ;;  %v1058_v2 = vadd.f32 %v1041_v18, %v908_v38  ;;  %v2928_v56 = vld [vmem:[#allocation3_spill] sm:$0xff] }
 0x155   : > { %v2278_v41 = vpop.f32.mrf.mxu1  ;;  %v1360_v5 = vadd.f32 %v2254_v30, %v1209_v51  ;;  %v1204_v28 = vadd.f32 %v2928_v56, %v1054_v52 }
 0x156   : > { %v1339_v37 = vpop.f32.mrf.mxu0  ;;  %v1205_v35 = vadd.f32 %v2226_v9, %v1055_v44  ;;  %v1207_v0 = vadd.f32 %v1188_v57, %v1057_v47  ;;  %v1208_v17 = vadd.f32 %v1191_v42, %v1058_v2 }
 0x157   : > { %v1489_v26 = vpop.f32.mrf.mxu1  ;;  %v1510_v58 = vadd.f32 %v2278_v41, %v1360_v5  ;;  %v2929_v57 = vld [vmem:[#allocation4_spill] sm:$0xff]  ;;  %v1355_v11 = vadd.f32 %v1326_v8, %v1204_v28 }
 0x158   : > { %v2255_v49 = vpop.f32.mrf.mxu0  ;;  %v1356_v53 = vadd.f32 %v2250_v50, %v1205_v35  ;;  %v1358_v16 = vadd.f32 %v1339_v37, %v1207_v0  ;;  %v1504_v18 = vadd.f32 %v2929_v57, %v1354_v54 }
 0x159   : > { %v2279_v63 = vpop.f32.mrf.mxu1  ;;  %v1361_v21 = vadd.f32 %v2255_v49, %v1210_v7  ;;  %v2930_v3 = vld [vmem:[#allocation5_spill] sm:$0xff] }
 0x15a   : > { %v1342_v4 = vpop.f32.mrf.mxu0  ;;  %v1506_v9 = vadd.f32 %v2274_v19, %v1356_v53  ;;  %v1508_v20 = vadd.f32 %v1489_v26, %v1358_v16  ;;  %v1975_v19 = vld [vmem:[%s2921_s5] ss:$0 sm:$0xff]  ;;  %v1507_v1 = vadd.f32 %v2930_v3, %v1357_v10 }
 0x15b   : > { %v1492_v6 = vpop.f32.mrf.mxu1  ;;  %v1359_v14 = vadd.f32 %v1342_v4, %v1208_v17  ;;  %v1511_v30 = vadd.f32 %v2279_v63, %v1361_v21  ;;  %v2931_v41 = vld [vmem:[#allocation6_spill] sm:$0xff] }
 0x15c   : > { %v1505_v31 = vadd.f32 %v2931_v41, %v1355_v11 }
 0x15d   : > { %v1509_v39 = vadd.f32 %v1492_v6, %v1359_v14 }
 0x16c   : > { %v2298_v29 = vpop.f32.mrf.mxu0 }
 0x16d   : > { %v1656_v50 = vadd.f32 %v2298_v29, %v1506_v9  ;;  %v2302_v61 = vpop.f32.mrf.mxu1 }
 0x16e   : > { %v1660_v22 = vadd.f32 %v2302_v61, %v1510_v58  ;;  %v1623_v42 = vpop.f32.mrf.mxu0 }
 0x16f   : > { %v1671_v15 = vmul.f32 %v1974_v55, %v1656_v50  ;;  %v1654_v23 = vadd.f32 %v1623_v42, %v1504_v18  ;;  %v1639_v25 = vpop.f32.mrf.mxu1 }
 0x170   : > { %v1675_v32 = vmul.f32 %v1974_v55, %v1660_v22  ;;  %v1658_v36 = vadd.f32 %v1639_v25, %v1508_v20  ;;  %v2299_v8 = vpop.f32.mrf.mxu0 }
 0x171   : > { %v1686_v26 = vadd.f32 %v1975_v19, %v1671_v15  ;;  %v1669_v34 = vmul.f32 %v1974_v55, %v1654_v23  ;;  %v1657_v13 = vadd.f32 %v2299_v8, %v1507_v1  ;;  %v2303_v46 = vpop.f32.mrf.mxu1 }
 0x172   : > { %v1690_v44 = vadd.f32 %v1975_v19, %v1675_v32  ;;  %v1673_v24 = vmul.f32 %v1974_v55, %v1658_v36  ;;  %v1661_v27 = vadd.f32 %v2303_v46, %v1511_v30  ;;  %v1626_v33 = vpop.f32.mrf.mxu0 }
 0x173   : > { %v1694_v37 = vmax.f32 %v1686_v26, 0.0  ;;  %v1684_v48 = vadd.f32 %v1975_v19, %v1669_v34  ;;  %v1672_v59 = vmul.f32 %v1974_v55, %v1657_v13  ;;  %v1655_v43 = vadd.f32 %v1626_v33, %v1505_v31  ;;  %v1642_v47 = vpop.f32.mrf.mxu1 }
 0x174   : > { %v1698_v60 = vmax.f32 %v1690_v44, 0.0  ;;  %v1688_v35 = vadd.f32 %v1975_v19, %v1673_v24  ;;  %v1676_v40 = vmul.f32 %v1974_v55, %v1661_v27  ;;  %v1659_v38 = vadd.f32 %v1642_v47, %v1509_v39 }
 0x175   : > { %1702 = vst [vmem:[%s2903_s11 + $0x10] sm:$0xff] %v1694_v37  ;;  %v1692_v51 = vmax.f32 %v1684_v48, 0.0  ;;  %v1687_v45 = vadd.f32 %v1975_v19, %v1672_v59  ;;  %v1670_v49 = vmul.f32 %v1974_v55, %v1655_v43 }
 0x176   : > { %1706 = vst [vmem:[%s2903_s11 + $0x30] sm:$0xff] %v1698_v60  ;;  %v1696_v62 = vmax.f32 %v1688_v35, 0.0  ;;  %v1691_v52 = vadd.f32 %v1975_v19, %v1676_v40  ;;  %v1674_v53 = vmul.f32 %v1974_v55, %v1659_v38 }
 0x177   : > { %1700 = vst [vmem:[%s2903_s11] sm:$0xff] %v1692_v51  ;;  %v1695_v63 = vmax.f32 %v1687_v45, 0.0  ;;  %v1685_v0 = vadd.f32 %v1975_v19, %v1670_v49 }
 0x178   : > { %1704 = vst [vmem:[%s2903_s11 + $0x20] sm:$0xff] %v1696_v62  ;;  %v1699_v2 = vmax.f32 %v1691_v52, 0.0  ;;  %v1689_v5 = vadd.f32 %v1975_v19, %v1674_v53 }
 0x179   : > { %1703 = vst [vmem:[%s2903_s11 + $0x18] sm:$0xff] %v1695_v63  ;;  %v1693_v12 = vmax.f32 %v1685_v0, 0.0 }
 0x17a   : > { %1707 = vst [vmem:[%s2903_s11 + $0x38] sm:$0xff] %v1699_v2  ;;  %v1697_v54 = vmax.f32 %v1689_v5, 0.0 }
 0x17b   : > { %1701 = vst [vmem:[%s2903_s11 + $0x8] sm:$0xff] %v1693_v12 }
 0x17c   : > { %1705 = vst [vmem:[%s2903_s11 + $0x28] sm:$0xff] %v1697_v54 }
 0x17d PF: > { %s16_s21 = sadd.s32 1, %s2407_s21  }
 0x17e   : > { %p13_p4 = scmp.ge.s32.totalorder %s16_s21, 4  }
 0x180   :  { %15 = sbr.rel (!%p13_p4) target bundleno = 1 (0x1), region = 84 }

// kernel: conv_group_forward.9
= control target key start
LH: loop header
LB: loop body
LE: loop exit
PB: predicated region body
PF: predicated region fallthrough
CT: control target
= control target key end

     0   :  { %s2424_s18 = smov 0   ;;  %s2900_s0 = inlined_call_operand.vmem [shape: f32[2,8,8,128], index: 0, kind: input, shape index: {}]   ;;  %s2901_s1 = inlined_call_operand.vmem [shape: f32[1,1,128], index: 1, kind: input, shape index: {}]   ;;  %s2902_s2 = inlined_call_operand.vmem [shape: f32[1,1,128], index: 2, kind: input, shape index: {}]   ;;  %s2903_s3 = inlined_call_operand.vmem [shape: bf16[9,128,128], index: 3, kind: input, shape index: {}]   ;;  %s2904_s4 = inlined_call_operand.vmem [shape: f32[2,8,8,128], index: 4, kind: input, shape index: {}]   ;;  %s2905_s5 = inlined_call_operand.vmem [shape: f32[2,8,8,128], index: 5, kind: output, shape index: {}]  }
   0x1 LB: > { %s1746_s19 = sadd.s32 4294967295, %s2391_s18   ;;  %p1750_p0 = scmp.ge.s32.totalorder %s2391_s18, 1  ;;  %s2391_s18 = sphi %s2424_s18, %s15_s18  }
   0x2   : > { %p197_p1 = scmp.lt.s32.totalorder %s2391_s18, 3 }
   0x4   : > { %p198_p2 = pnand %p1750_p0, %p197_p1 }
   0x6   : > { %201 = sbr.rel (%p198_p2) target bundleno = 377 (0x179), region = 40 }
   0xb   : > { %v2313_v0 = vld [vmem:[%s2903_s3 + $0x78] sm:$0xff]   ;;  %v2315_v2 = vld [vmem:[%s2903_s3 + $0x70] sm:$0xff]   ;;  %p2443_p3 = scmp.lt.s32.totalorder %s1746_s19, 1  ;;  %v2393_v3 = vmov 0.0   ;;  %v2317_v5 = vld [vmem:[%s2903_s3 + $0x68] sm:$0xff]  }
   0xc   : > { %v2314_v1 = vld [vmem:[%s2903_s3 + $0x38] sm:$0xff]   ;;  %2072 = vmatprep.subr.bf16.mxu0 %v2313_v0  ;;  %246 = vst [vmem:[#allocation2] sm:$0xff] %v2393_v3  ;;  %247 = vst [vmem:[#allocation2 + $0x8] sm:$0x3] %v2393_v3  ;;  %v2316_v4 = vld [vmem:[%s2903_s3 + $0x30] sm:$0xff]  }
   0xd   : > { %248 = vst [vmem:[#allocation2 + $0x10] sm:$0xff] %v2393_v3  ;;  %249 = vst [vmem:[#allocation2 + $0x18] sm:$0x3] %v2393_v3  ;;  %2096 = vmatprep.subr.bf16.mxu1 %v2314_v1  ;;  %2073 = vmatpush3.bf16.msra.mxu0 %v2313_v0  ;;  %v2318_v6 = vld [vmem:[%s2903_s3 + $0x28] sm:$0xff]   ;;  %s2916_s19 = smov (!%p2443_p3, %s1746_s19), 1  ;;  %v2319_v7 = vld [vmem:[%s2903_s3 + $0x60] sm:$0xff]  }
   0xe   : > { %250 = vst [vmem:[#allocation2 + $0x20] sm:$0xff] %v2393_v3  ;;  %251 = vst [vmem:[#allocation2 + $0x28] sm:$0x3] %v2393_v3  ;;  %2097 = vmatpush3.bf16.msra.mxu1 %v2314_v1  ;;  %2074 = vmatprep.subr.bf16.mxu0 %v2315_v2  ;;  %v2320_v8 = vld [vmem:[%s2903_s3 + $0x20] sm:$0xff]   ;;  %s2486_s12 = sshll.u32 %s2916_s19, 6  ;;  %v2321_v9 = vld [vmem:[%s2903_s3 + $0x58] sm:$0xff]  }
   0xf   : > { %252 = vst [vmem:[#allocation2 + $0x30] sm:$0xff] %v2393_v3  ;;  %253 = vst [vmem:[#allocation2 + $0x38] sm:$0x3] %v2393_v3  ;;  %2098 = vmatprep.subr.bf16.mxu1 %v2316_v4  ;;  %v2322_v10 = vld [vmem:[%s2903_s3 + $0x18] sm:$0xff]   ;;  %s2498_s21 = scalar_lea.vmem %s2900_s0, %s2486_s12  ;;  %v2323_v11 = vld [vmem:[%s2903_s3 + $0x50] sm:$0xff]   ;;  %s2869_s13 = scalar_lea.vmem %s2904_s4, %s2486_s12 }
  0x10   : > { %254 = vst [vmem:[#allocation2 + $0x40] sm:$0xff] %v2393_v3  ;;  %255 = vst [vmem:[#allocation2 + $0x48] sm:$0x3] %v2393_v3  ;;  %v266_v12 = vld [vmem:[%s2498_s21] sm:$0xff]  ;;  %v2324_v15 = vld [vmem:[%s2903_s3 + $0x10] sm:$0xff]  }
  0x11   : > { %256 = vst [vmem:[#allocation2 + $0x50] sm:$0xff] %v2393_v3  ;;  %257 = vst [vmem:[#allocation2 + $0x58] sm:$0x3] %v2393_v3  ;;  %2075 = vmatpush3.bf16.msra.mxu0 %v2315_v2  ;;  %v2507_v13 = vld [vmem:[%s2901_s1] ss:$0 sm:$0xff]  ;;  %v267_v17 = vld [vmem:[%s2498_s21 + $0x8] sm:$0xff] }
  0x12   : > { %258 = vst [vmem:[#allocation2 + $0x60] sm:$0xff] %v2393_v3  ;;  %259 = vst [vmem:[#allocation2 + $0x68] sm:$0x3] %v2393_v3  ;;  %2099 = vmatpush3.bf16.msra.mxu1 %v2316_v4  ;;  %2076 = vmatprep.subr.bf16.mxu0 %v2317_v5  ;;  %v2512_v14 = vld [vmem:[%s2902_s2] ss:$0 sm:$0xff]  ;;  %v281_v16 = vmul.f32 %v2507_v13, %v266_v12  ;;  %v268_v18 = vld [vmem:[%s2498_s21 + $0x10] sm:$0xff]  ;;  %v282_v19 = vmul.f32 %v2507_v13, %v267_v17 }
  0x13   : > { %260 = vst [vmem:[#allocation2 + $0x70] sm:$0xff] %v2393_v3  ;;  %261 = vst [vmem:[#allocation2 + $0x78] sm:$0x3] %v2393_v3  ;;  %2100 = vmatprep.subr.bf16.mxu1 %v2318_v6  ;;  %v283_v20 = vmul.f32 %v2507_v13, %v268_v18  ;;  %v2325_v21 = vld [vmem:[%s2903_s3 + $0x48] sm:$0xff]   ;;  %v2327_v31 = vld [vmem:[%s2903_s3 + $0x40] sm:$0xff]  }
  0x14   : > { %262 = vst [vmem:[#allocation2 + $0x80] sm:$0xff] %v2393_v3  ;;  %263 = vst [vmem:[#allocation2 + $0x88] sm:$0x3] %v2393_v3  ;;  %v296_v22 = vadd.f32 %v2512_v14, %v281_v16  ;;  %v349_v23 = vld [vmem:[#allocation2 + $0x1] sm:$0xff]  ;;  %v297_v24 = vadd.f32 %v2512_v14, %v282_v19  ;;  %v2329_v33 = vld [vmem:[%s2903_s3 + $0xb8] sm:$0xff]  }
  0x15   : > { %264 = vst [vmem:[#allocation2 + $0x90] sm:$0xff] %v2393_v3  ;;  %265 = vst [vmem:[#allocation2 + $0x98] sm:$0x3] %v2393_v3  ;;  %2077 = vmatpush3.bf16.msra.mxu0 %v2317_v5  ;;  %v298_v25 = vadd.f32 %v2512_v14, %v283_v20  ;;  %v2326_v26 = vld [vmem:[%s2903_s3 + $0x8] sm:$0xff]   ;;  %v2328_v32 = vld [vmem:[%s2903_s3] sm:$0xff]  }
  0x16   : > { %2101 = vmatpush3.bf16.msra.mxu1 %v2318_v6  ;;  %2078 = vmatprep.subr.bf16.mxu0 %v2319_v7  ;;  %v2531_v27 = vmax.f32 %v296_v22, 0.0  ;;  %v2533_v28 = vmax.f32 %v297_v24, 0.0  ;;  %v2330_v34 = vld [vmem:[%s2903_s3 + $0xf8] sm:$0xff]   ;;  %v270_v36 = vld [vmem:[%s2498_s21 + $0x20] sm:$0xff]  ;;  %v271_v39 = vld [vmem:[%s2498_s21 + $0x28] sm:$0xff] }
  0x17   : > { %2102 = vmatprep.subr.bf16.mxu1 %v2320_v8  ;;  %v2535_v29 = vmax.f32 %v298_v25, 0.0  ;;  %v269_v35 = vld [vmem:[%s2498_s21 + $0x18] sm:$0xff]  ;;  %v285_v38 = vmul.f32 %v2507_v13, %v270_v36  ;;  %v272_v40 = vld [vmem:[%s2498_s21 + $0x30] sm:$0xff]  ;;  %v286_v43 = vmul.f32 %v2507_v13, %v271_v39  ;;  %v2333_v60 = vld [vmem:[%s2903_s3 + $0xa8] sm:$0xff]  }
  0x18   : > { %313 = vst [vmem:[#allocation2 + $0x11] sm:$0xff] %v2531_v27  ;;  %v357_v30 = vpack.c.bf16 %v2531_v27, %v349_v23  ;;  %314 = vst [vmem:[#allocation2 + $0x21] sm:$0xff] %v2533_v28  ;;  %v284_v37 = vmul.f32 %v2507_v13, %v269_v35  ;;  %v287_v44 = vmul.f32 %v2507_v13, %v272_v40  ;;  %v2331_v51 = vld [vmem:[%s2903_s3 + $0xb0] sm:$0xff]   ;;  %v2334_v62 = vld [vmem:[%s2903_s3 + $0xe8] sm:$0xff]  }
  0x19   : > { %2079 = vmatpush3.bf16.msra.mxu0 %v2319_v7  ;;  %315 = vst [vmem:[#allocation2 + $0x31] sm:$0xff] %v2535_v29  ;;  %v2563_v42 = vpack.c.bf16 %v2535_v29, %v2533_v28  ;;  %v300_v49 = vadd.f32 %v2512_v14, %v285_v38  ;;  %v301_v52 = vadd.f32 %v2512_v14, %v286_v43  ;;  %v2332_v54 = vld [vmem:[%s2903_s3 + $0xf0] sm:$0xff]   ;;  %v604_v63 = vld [vmem:[#allocation2 + $0x2] sm:$0xff]  ;;  %v2337_v12 = vld [vmem:[%s2903_s3 + $0x98] sm:$0xff]  }
  0x1a   : > { %2103 = vmatpush3.bf16.msra.mxu1 %v2320_v8  ;;  %2080 = vmatprep.subr.bf16.mxu0 %v2321_v9  ;;  %v299_v48 = vadd.f32 %v2512_v14, %v284_v37  ;;  %v302_v53 = vadd.f32 %v2512_v14, %v287_v44  ;;  %v2335_v4 = vld [vmem:[%s2903_s3 + $0xa0] sm:$0xff]   ;;  %v2338_v16 = vld [vmem:[%s2903_s3 + $0xd8] sm:$0xff]   ;;  %v2339_v18 = vld [vmem:[%s2903_s3 + $0x90] sm:$0xff]  }
  0x1b   : > { %2104 = vmatprep.subr.bf16.mxu1 %v2322_v10  ;;  %2088 = vmatprep.mubr.bf16.mxu0 %v357_v30  ;;  %v2586_v56 = vmax.f32 %v300_v49, 0.0  ;;  %v2589_v57 = vmax.f32 %v301_v52, 0.0  ;;  %v2336_v5 = vld [vmem:[%s2903_s3 + $0xe0] sm:$0xff]   ;;  %v273_v17 = vld [vmem:[%s2498_s21 + $0x38] sm:$0xff]  ;;  %v2340_v20 = vld [vmem:[%s2903_s3 + $0xd0] sm:$0xff]   ;;  %s2879_s21 = scalar_lea.vmem %s2905_s5, %s2486_s12 }
  0x1c   : > { %v2584_v55 = vmax.f32 %v299_v48, 0.0  ;;  %v2591_v58 = vmax.f32 %v302_v53, 0.0  ;;  %v288_v19 = vmul.f32 %v2507_v13, %v273_v17  ;;  %v2341_v22 = vld [vmem:[%s2903_s3 + $0x88] sm:$0xff]   ;;  %v2344_v24 = vld [vmem:[%s2903_s3 + $0xc0] sm:$0xff]   ;;  %v2345_v30 = vld [vmem:[%s2903_s3 + $0x138] sm:$0xff]  }
  0x1d   : > { %2081 = vmatpush3.bf16.msra.mxu0 %v2321_v9  ;;  %317 = vst [vmem:[#allocation2 + $0x51] sm:$0xff] %v2586_v56  ;;  %318 = vst [vmem:[#allocation2 + $0x61] sm:$0xff] %v2589_v57  ;;  %v914_v61 = vpack.c.bf16 %v2589_v57, %v2586_v56  ;;  %v2342_v13 = vld [vmem:[%s2903_s3 + $0xc8] sm:$0xff]   ;;  %v2347_v36 = vld [vmem:[%s2903_s3 + $0x130] sm:$0xff]  }
  0x1e   : > { %2105 = vmatpush3.bf16.msra.mxu1 %v2322_v10  ;;  %2082 = vmatprep.subr.bf16.mxu0 %v2323_v11  ;;  %316 = vst [vmem:[#allocation2 + $0x41] sm:$0xff] %v2584_v55  ;;  %v2598_v59 = vpack.c.bf16 %v2586_v56, %v2584_v55  ;;  %319 = vst [vmem:[#allocation2 + $0x71] sm:$0xff] %v2591_v58  ;;  %v2615_v1 = vpack.c.bf16 %v2591_v58, %v2589_v57  ;;  %v2348_v37 = vld [vmem:[%s2903_s3 + $0x170] sm:$0xff]   ;;  %v2349_v43 = vld [vmem:[%s2903_s3 + $0x128] sm:$0xff]  }
  0x1f   : > { %2106 = vmatprep.subr.bf16.mxu1 %v2324_v15  ;;  %v2559_v41 = vld [vmem:[#allocation2 + $0x10] sm:$0xff]  ;;  %v323_v46 = vld [vmem:[#allocation2 + $0x20] sm:$0xff]  ;;  %v2353_v53 = vld [vmem:[%s2903_s3 + $0x118] sm:$0xff]  }
  0x20   : > { %v329_v45 = vpack.c.bf16 %v2559_v41, %v2393_v3  ;;  %v2569_v47 = vld [vmem:[#allocation2 + $0x30] sm:$0xff]  ;;  %v606_v25 = vld [vmem:[#allocation2 + $0x22] sm:$0xff]  ;;  %v2369_v57 = vld [vmem:[%s2903_s3 + $0x198] sm:$0xff]  }
  0x21   : > { %2083 = vmatpush3.bf16.msra.mxu0 %v2323_v11  ;;  %v2574_v50 = vpack.c.bf16 %v2569_v47, %v323_v46  ;;  %v2611_v0 = vld [vmem:[#allocation2 + $0x12] sm:$0xff]  ;;  %v762_v11 = vpack.c.bf16 %v323_v46, %v2559_v41  ;;  %v2351_v48 = vld [vmem:[%s2903_s3 + $0x120] sm:$0xff]  }
  0x22   : > { %2107 = vmatpush3.bf16.msra.mxu1 %v2324_v15  ;;  %2084 = vmatprep.subr.bf16.mxu0 %v2325_v21  ;;  %v612_v2 = vpack.c.bf16 %v2611_v0, %v604_v63  ;;  %v2352_v49 = vld [vmem:[%s2903_s3 + $0x160] sm:$0xff]   ;;  %v1062_v52 = vpack.c.bf16 %v606_v25, %v2611_v0 }
  0x23   : > { %2108 = vmatprep.subr.bf16.mxu1 %v2326_v26  ;;  %2112 = vmatprep.mubr.bf16.mxu1 %v329_v45  ;;  %v2350_v45 = vld [vmem:[%s2903_s3 + $0x168] sm:$0xff]   ;;  %v2359_v63 = vld [vmem:[%s2903_s3 + $0x100] sm:$0xff]  }
  0x24   : > { %v2626_v7 = vld [vmem:[#allocation2 + $0x50] sm:$0xff]  ;;  %v2633_v9 = vld [vmem:[#allocation2 + $0x60] sm:$0xff] }
  0x25   : > { %2085 = vmatpush3.bf16.msra.mxu0 %v2325_v21  ;;  %v2624_v6 = vld [vmem:[#allocation2 + $0x40] sm:$0xff]  ;;  %v2635_v10 = vld [vmem:[#allocation2 + $0x70] sm:$0xff]  ;;  %v303_v21 = vadd.f32 %v2512_v14, %v288_v19  ;;  %v764_v41 = vpack.c.bf16 %v2633_v9, %v2626_v7 }
  0x26   : > { %2109 = vmatpush3.bf16.msra.mxu1 %v2326_v26  ;;  %2086 = vmatprep.subr.bf16.mxu0 %v2327_v31  ;;  %v2631_v8 = vpack.c.bf16 %v2626_v7, %v2624_v6  ;;  %v2643_v15 = vpack.c.bf16 %v2635_v10, %v2633_v9  ;;  %v2343_v14 = vld [vmem:[%s2903_s3 + $0x80] sm:$0xff]   ;;  %v2674_v26 = vld [vmem:[#allocation2 + $0x32] sm:$0xff]  ;;  %v763_v35 = vpack.c.bf16 %v2624_v6, %v2569_v47 }
  0x27   : > { %2110 = vmatprep.subr.bf16.mxu1 %v2328_v32  ;;  %v2662_v23 = vmax.f32 %v303_v21, 0.0  ;;  %v2701_v39 = vld [vmem:[#allocation2 + $0x62] sm:$0xff]  ;;  %v2704_v40 = vld [vmem:[#allocation2 + $0x72] sm:$0xff] }
  0x28   : > { %v2719_v46 = vpack.c.bf16 %v2704_v40, %v2701_v39  ;;  %v2360_v0 = vld [vmem:[%s2903_s3 + $0x140] sm:$0xff]   ;;  %v2363_v7 = vld [vmem:[%s2903_s3 + $0x1b0] sm:$0xff]   ;;  %v2377_v21 = vld [vmem:[%s2903_s3 + $0x238] sm:$0xff]  }
  0x29   : > { %2087 = vmatpush3.bf16.msra.mxu0 %v2327_v31  ;;  %320 = vst [vmem:[#allocation2 + $0x81] sm:$0xff] %v2662_v23  ;;  %v2346_v31 = vld [vmem:[%s2903_s3 + $0x178] sm:$0xff]   ;;  %v2364_v9 = vld [vmem:[%s2903_s3 + $0x1f0] sm:$0xff]   ;;  %v2367_v17 = vld [vmem:[%s2903_s3 + $0x1a0] sm:$0xff]  }
  0x2a   : > { %2111 = vmatpush3.bf16.msra.mxu1 %v2328_v32  ;;  %2120 = vmatprep.subr.bf16.mxu0 %v2329_v33  ;;  %v2682_v32 = vld [vmem:[#allocation2 + $0x42] sm:$0xff] }
  0x2b   : > { %2144 = vmatprep.subr.bf16.mxu1 %v2330_v34  ;;  %v1063_v6 = vpack.c.bf16 %v2682_v32, %v2674_v26  ;;  %v2368_v56 = vld [vmem:[%s2903_s3 + $0x1e0] sm:$0xff]  }
  0x2c   : > { %2089 = vmatmul.mubr.bf16.vlgmr.msra.gmra.mxu0 %v2563_v42  ;;  %v2375_v19 = vld [vmem:[%s2903_s3 + $0x180] sm:$0xff]  }
  0x2d   : > { %2113 = vmatmul.mubr.bf16.vlgmr.msra.gmra.mxu1 %v2574_v50  ;;  %2121 = vmatpush3.bf16.msra.mxu0 %v2329_v33  ;;  %v2685_v33 = vpack.c.bf16 %v2674_v26, %v606_v25  ;;  %v1512_v25 = vld [vmem:[#allocation2 + $0x92] sm:$0xff] }
  0x2e   : > { %2145 = vmatpush3.bf16.msra.mxu1 %v2330_v34  ;;  %2122 = vmatprep.subr.bf16.mxu0 %v2331_v51  ;;  %v2687_v34 = vld [vmem:[#allocation2 + $0x52] sm:$0xff] }
  0x2f   : > { %2146 = vmatprep.subr.bf16.mxu1 %v2332_v54  ;;  %2092 = vmatprep.mubr.bf16.mxu0 %v2598_v59  ;;  %v2699_v38 = vpack.c.bf16 %v2687_v34, %v2682_v32 }
  0x30   : > { %2116 = vmatprep.mubr.bf16.mxu1 %v2631_v8  ;;  %v2711_v44 = vld [vmem:[#allocation2 + $0x80] sm:$0xff] }
  0x31   : > { %2123 = vmatpush3.bf16.msra.mxu0 %v2331_v51  ;;  %v765_v47 = vpack.c.bf16 %v2711_v44, %v2635_v10  ;;  %v912_v51 = vpack.c.bf16 %v2533_v28, %v2531_v27  ;;  %v2355_v27 = vld [vmem:[%s2903_s3 + $0x110] sm:$0xff]   ;;  %v1064_v10 = vpack.c.bf16 %v2701_v39, %v2687_v34 }
  0x32   : > { %2147 = vmatpush3.bf16.msra.mxu1 %v2332_v54  ;;  %2124 = vmatprep.subr.bf16.mxu0 %v2333_v60  ;;  %v2354_v54 = vld [vmem:[%s2903_s3 + $0x158] sm:$0xff]   ;;  %v2356_v28 = vld [vmem:[%s2903_s3 + $0x150] sm:$0xff]  }
  0x33   : > { %2148 = vmatprep.subr.bf16.mxu1 %v2334_v62 }
  0x34   : > { %2093 = vmatmul.mubr.bf16.gmra.mxu0 %v2615_v1 }
  0x35   : > { %2125 = vmatpush3.bf16.msra.mxu0 %v2333_v60  ;;  %2136 = vmatprep.mubr.bf16.mxu0 %v612_v2  ;;  %v2357_v60 = vld [vmem:[%s2903_s3 + $0x108] sm:$0xff]   ;;  %v2361_v2 = vld [vmem:[%s2903_s3 + $0x1b8] sm:$0xff]  }
  0x36   : > { %2149 = vmatpush3.bf16.msra.mxu1 %v2334_v62  ;;  %2126 = vmatprep.subr.bf16.mxu0 %v2335_v4  ;;  %v2358_v62 = vld [vmem:[%s2903_s3 + $0x148] sm:$0xff]  }
  0x37   : > { %2150 = vmatprep.subr.bf16.mxu1 %v2336_v5  ;;  %2117 = vmatmul.mubr.bf16.gmra.mxu1 %v2643_v15 }
  0x38   : > { %2160 = vmatprep.mubr.bf16.mxu1 %v762_v11  ;;  %v2366_v11 = vld [vmem:[%s2903_s3 + $0x1e8] sm:$0xff]  }
  0x39   : > { %2127 = vmatpush3.bf16.msra.mxu0 %v2335_v4  ;;  %v2362_v4 = vld [vmem:[%s2903_s3 + $0x1f8] sm:$0xff]  }
  0x3a   : > { %2151 = vmatpush3.bf16.msra.mxu1 %v2336_v5  ;;  %2128 = vmatprep.subr.bf16.mxu0 %v2337_v12  ;;  %v913_v5 = vpack.c.bf16 %v2584_v55, %v2535_v29  ;;  %v2365_v29 = vld [vmem:[%s2903_s3 + $0x1a8] sm:$0xff]  }
  0x3b   : > { %2152 = vmatprep.subr.bf16.mxu1 %v2338_v16  ;;  %v2778_v55 = vld [vmem:[#allocation2 + $0x82] sm:$0xff] }
  0x3c   : > { %v1516_v26 = vpack.c.bf16 %v1512_v25, %v2778_v55 }
  0x3d   : > { %2129 = vmatpush3.bf16.msra.mxu0 %v2337_v12  ;;  %v915_v12 = vpack.c.bf16 %v2662_v23, %v2591_v58  ;;  %v2370_v58 = vld [vmem:[%s2903_s3 + $0x1d8] sm:$0xff]  }
  0x3e   : > { %2153 = vmatpush3.bf16.msra.mxu1 %v2338_v16  ;;  %2130 = vmatprep.subr.bf16.mxu0 %v2339_v18  ;;  %v1065_v16 = vpack.c.bf16 %v2778_v55, %v2704_v40 }
  0x3f   : > { %2154 = vmatprep.subr.bf16.mxu1 %v2340_v20 }
  0x41   : > { %2131 = vmatpush3.bf16.msra.mxu0 %v2339_v18  ;;  %v2372_v18 = vld [vmem:[%s2903_s3 + $0x1d0] sm:$0xff]  }
  0x42   : > { %2155 = vmatpush3.bf16.msra.mxu1 %v2340_v20  ;;  %2132 = vmatprep.subr.bf16.mxu0 %v2341_v22  ;;  %v2376_v20 = vld [vmem:[%s2903_s3 + $0x1c0] sm:$0xff]  }
  0x43   : > { %2156 = vmatprep.subr.bf16.mxu1 %v2342_v13 }
  0x45   : > { %2133 = vmatpush3.bf16.msra.mxu0 %v2341_v22  ;;  %v2378_v22 = vld [vmem:[%s2903_s3 + $0x230] sm:$0xff]  }
  0x46   : > { %2157 = vmatpush3.bf16.msra.mxu1 %v2342_v13  ;;  %2134 = vmatprep.subr.bf16.mxu0 %v2343_v14  ;;  %v2379_v13 = vld [vmem:[%s2903_s3 + $0x228] sm:$0xff]  }
  0x47   : > { %2158 = vmatprep.subr.bf16.mxu1 %v2344_v24 }
  0x49   : > { %2135 = vmatpush3.bf16.msra.mxu0 %v2343_v14  ;;  %v1362_v14 = vld [vmem:[#allocation2 + $0x91] sm:$0xff] }
  0x4a   : > { %2159 = vmatpush3.bf16.msra.mxu1 %v2344_v24  ;;  %2168 = vmatprep.subr.bf16.mxu0 %v2345_v30  ;;  %v1216_v24 = vpack.c.bf16 %v2393_v3, %v2711_v44  ;;  %v2381_v3 = vld [vmem:[%s2903_s3 + $0x218] sm:$0xff]  }
  0x4b   : > { %2192 = vmatprep.subr.bf16.mxu1 %v2346_v31 }
  0x4c   : > { %2137 = vmatmul.mubr.bf16.vlgmr.msra.gmra.mxu0 %v2685_v33 }
  0x4d   : > { %2161 = vmatmul.mubr.bf16.vlgmr.msra.gmra.mxu1 %v763_v35  ;;  %2169 = vmatpush3.bf16.msra.mxu0 %v2345_v30 }
  0x4e   : > { %2193 = vmatpush3.bf16.msra.mxu1 %v2346_v31  ;;  %2170 = vmatprep.subr.bf16.mxu0 %v2347_v36 }
  0x4f   : > { %2194 = vmatprep.subr.bf16.mxu1 %v2348_v37  ;;  %2140 = vmatprep.mubr.bf16.mxu0 %v2699_v38 }
  0x50   : > { %2164 = vmatprep.mubr.bf16.mxu1 %v764_v41 }
  0x51   : > { %2171 = vmatpush3.bf16.msra.mxu0 %v2347_v36 }
  0x52   : > { %2195 = vmatpush3.bf16.msra.mxu1 %v2348_v37  ;;  %2172 = vmatprep.subr.bf16.mxu0 %v2349_v43 }
  0x53   : > { %2196 = vmatprep.subr.bf16.mxu1 %v2350_v45 }
  0x54   : > { %2141 = vmatmul.mubr.bf16.gmra.mxu0 %v2719_v46 }
  0x55   : > { %2173 = vmatpush3.bf16.msra.mxu0 %v2349_v43  ;;  %2165 = vmatmul.mubr.bf16.gmra.mxu1 %v765_v47 }
  0x56   : > { %2197 = vmatpush3.bf16.msra.mxu1 %v2350_v45  ;;  %2174 = vmatprep.subr.bf16.mxu0 %v2351_v48 }
  0x57   : > { %2198 = vmatprep.subr.bf16.mxu1 %v2352_v49  ;;  %2184 = vmatprep.mubr.bf16.mxu0 %v912_v51 }
  0x58   : > { %2208 = vmatprep.mubr.bf16.mxu1 %v1062_v52 }
  0x59   : > { %2175 = vmatpush3.bf16.msra.mxu0 %v2351_v48 }
  0x5a   : > { %2199 = vmatpush3.bf16.msra.mxu1 %v2352_v49  ;;  %2176 = vmatprep.subr.bf16.mxu0 %v2353_v53 }
  0x5b   : > { %2200 = vmatprep.subr.bf16.mxu1 %v2354_v54 }
  0x5d   : > { %2177 = vmatpush3.bf16.msra.mxu0 %v2353_v53 }
  0x5e   : > { %2201 = vmatpush3.bf16.msra.mxu1 %v2354_v54  ;;  %2178 = vmatprep.subr.bf16.mxu0 %v2355_v27 }
  0x5f   : > { %2202 = vmatprep.subr.bf16.mxu1 %v2356_v28 }
  0x61   : > { %2179 = vmatpush3.bf16.msra.mxu0 %v2355_v27 }
  0x62   : > { %2203 = vmatpush3.bf16.msra.mxu1 %v2356_v28  ;;  %2180 = vmatprep.subr.bf16.mxu0 %v2357_v60 }
  0x63   : > { %2204 = vmatprep.subr.bf16.mxu1 %v2358_v62 }
  0x65   : > { %2181 = vmatpush3.bf16.msra.mxu0 %v2357_v60 }
  0x66   : > { %2205 = vmatpush3.bf16.msra.mxu1 %v2358_v62  ;;  %2182 = vmatprep.subr.bf16.mxu0 %v2359_v63 }
  0x67   : > { %2206 = vmatprep.subr.bf16.mxu1 %v2360_v0 }
  0x69   : > { %2183 = vmatpush3.bf16.msra.mxu0 %v2359_v63 }
  0x6a   : > { %2207 = vmatpush3.bf16.msra.mxu1 %v2360_v0  ;;  %2216 = vmatprep.subr.bf16.mxu0 %v2361_v2 }
  0x6b   : > { %2240 = vmatprep.subr.bf16.mxu1 %v2362_v4 }
  0x6c   : > { %2185 = vmatmul.mubr.bf16.vlgmr.msra.gmra.mxu0 %v913_v5 }
  0x6d   : > { %2209 = vmatmul.mubr.bf16.vlgmr.msra.gmra.mxu1 %v1063_v6  ;;  %2217 = vmatpush3.bf16.msra.mxu0 %v2361_v2 }
  0x6e   : > { %2241 = vmatpush3.bf16.msra.mxu1 %v2362_v4  ;;  %2218 = vmatprep.subr.bf16.mxu0 %v2363_v7 }
  0x6f   : > { %2242 = vmatprep.subr.bf16.mxu1 %v2364_v9  ;;  %2188 = vmatprep.mubr.bf16.mxu0 %v914_v61  ;;  %v2371_v61 = vld [vmem:[%s2903_s3 + $0x190] sm:$0xff]  }
  0x70   : > { %2212 = vmatprep.mubr.bf16.mxu1 %v1064_v10 }
  0x71   : > { %2219 = vmatpush3.bf16.msra.mxu0 %v2363_v7 }
  0x72   : > { %2243 = vmatpush3.bf16.msra.mxu1 %v2364_v9  ;;  %2220 = vmatprep.subr.bf16.mxu0 %v2365_v29 }
  0x73   : > { %2244 = vmatprep.subr.bf16.mxu1 %v2366_v11 }
  0x74   : > { %2189 = vmatmul.mubr.bf16.gmra.mxu0 %v915_v12 }
  0x75   : > { %2221 = vmatpush3.bf16.msra.mxu0 %v2365_v29  ;;  %2213 = vmatmul.mubr.bf16.gmra.mxu1 %v1065_v16 }
  0x76   : > { %2245 = vmatpush3.bf16.msra.mxu1 %v2366_v11  ;;  %2222 = vmatprep.subr.bf16.mxu0 %v2367_v17 }
  0x77   : > { %2246 = vmatprep.subr.bf16.mxu1 %v2368_v56  ;;  %2232 = vmatprep.mubr.bf16.mxu0 %v2574_v50  ;;  %v2373_v50 = vld [vmem:[%s2903_s3 + $0x188] sm:$0xff]  }
  0x78   : > { %2256 = vmatprep.mubr.bf16.mxu1 %v2563_v42  ;;  %v2374_v42 = vld [vmem:[%s2903_s3 + $0x1c8] sm:$0xff]  }
  0x79   : > { %2223 = vmatpush3.bf16.msra.mxu0 %v2367_v17 }
  0x7a   : > { %2247 = vmatpush3.bf16.msra.mxu1 %v2368_v56  ;;  %2224 = vmatprep.subr.bf16.mxu0 %v2369_v57 }
  0x7b   : > { %2248 = vmatprep.subr.bf16.mxu1 %v2370_v58 }
  0x7d   : > { %2225 = vmatpush3.bf16.msra.mxu0 %v2369_v57 }
  0x7e   : > { %2249 = vmatpush3.bf16.msra.mxu1 %v2370_v58  ;;  %2226 = vmatprep.subr.bf16.mxu0 %v2371_v61 }
  0x7f   : > { %2250 = vmatprep.subr.bf16.mxu1 %v2372_v18 }
  0x81   : > { %2227 = vmatpush3.bf16.msra.mxu0 %v2371_v61 }
  0x82   : > { %2251 = vmatpush3.bf16.msra.mxu1 %v2372_v18  ;;  %2228 = vmatprep.subr.bf16.mxu0 %v2373_v50 }
  0x83   : > { %2252 = vmatprep.subr.bf16.mxu1 %v2374_v42 }
  0x85   : > { %2229 = vmatpush3.bf16.msra.mxu0 %v2373_v50 }
  0x86   : > { %2253 = vmatpush3.bf16.msra.mxu1 %v2374_v42  ;;  %2230 = vmatprep.subr.bf16.mxu0 %v2375_v19 }
  0x87   : > { %2254 = vmatprep.subr.bf16.mxu1 %v2376_v20 }
  0x89   : > { %2231 = vmatpush3.bf16.msra.mxu0 %v2375_v19 }
  0x8a   : > { %2255 = vmatpush3.bf16.msra.mxu1 %v2376_v20  ;;  %2264 = vmatprep.subr.bf16.mxu0 %v2377_v21 }
  0x8b   : > { %2288 = vmatprep.subr.bf16.mxu1 %v2377_v21 }
  0x8c   : > { %2233 = vmatmul.mubr.bf16.vlgmr.msra.gmra.mxu0 %v2631_v8  ;;  %v1366_v8 = vpack.c.bf16 %v1362_v14, %v2662_v23  ;;  %v2384_v23 = vld [vmem:[%s2903_s3 + $0x200] sm:$0xff]  }
  0x8d   : > { %2257 = vmatmul.mubr.bf16.vlgmr.msra.gmra.mxu1 %v2598_v59  ;;  %2265 = vmatpush3.bf16.msra.mxu0 %v2377_v21  ;;  %v2380_v59 = vld [vmem:[%s2903_s3 + $0x220] sm:$0xff]  }
  0x8e   : > { %2296 = vmatpush3.bf16.msra.mxu1 %v2377_v21  ;;  %2266 = vmatprep.subr.bf16.mxu0 %v2378_v22 }
  0x8f   : > { %2289 = vmatprep.subr.bf16.mxu1 %v2378_v22  ;;  %2236 = vmatprep.mubr.bf16.mxu0 %v2643_v15  ;;  %v2383_v15 = vld [vmem:[%s2903_s3 + $0x208] sm:$0xff]  }
  0x90   : > { %2260 = vmatprep.mubr.bf16.mxu1 %v2615_v1  ;;  %v2382_v1 = vld [vmem:[%s2903_s3 + $0x210] sm:$0xff]  }
  0x91   : > { %2267 = vmatpush3.bf16.msra.mxu0 %v2378_v22 }
  0x92   : > { %2297 = vmatpush3.bf16.msra.mxu1 %v2378_v22  ;;  %2268 = vmatprep.subr.bf16.mxu0 %v2379_v13 }
  0x93   : > { %2290 = vmatprep.subr.bf16.mxu1 %v2379_v13 }
  0x94   : > { %2237 = vmatmul.mubr.bf16.gmra.mxu0 %v1216_v24 }
  0x95   : > { %2269 = vmatpush3.bf16.msra.mxu0 %v2379_v13  ;;  %2261 = vmatmul.mubr.bf16.gmra.mxu1 %v1366_v8 }
  0x96   : > { %2298 = vmatpush3.bf16.msra.mxu1 %v2379_v13  ;;  %2270 = vmatprep.subr.bf16.mxu0 %v2380_v59 }
  0x97   : > { %2291 = vmatprep.subr.bf16.mxu1 %v2380_v59  ;;  %2280 = vmatprep.mubr.bf16.mxu0 %v2685_v33 }
  0x98   : > { %2284 = vmatprep.mubr.bf16.mxu1 %v2719_v46 }
  0x99   : > { %2271 = vmatpush3.bf16.msra.mxu0 %v2380_v59 }
  0x9a   : > { %2299 = vmatpush3.bf16.msra.mxu1 %v2380_v59  ;;  %2272 = vmatprep.subr.bf16.mxu0 %v2381_v3 }
  0x9b   : > { %2292 = vmatprep.subr.bf16.mxu1 %v2381_v3 }
  0x9d   : > { %2273 = vmatpush3.bf16.msra.mxu0 %v2381_v3 }
  0x9e   : > { %2300 = vmatpush3.bf16.msra.mxu1 %v2381_v3  ;;  %2274 = vmatprep.subr.bf16.mxu0 %v2382_v1 }
  0x9f   : > { %2293 = vmatprep.subr.bf16.mxu1 %v2382_v1 }
  0xa1   : > { %2275 = vmatpush3.bf16.msra.mxu0 %v2382_v1 }
  0xa2   : > { %2301 = vmatpush3.bf16.msra.mxu1 %v2382_v1  ;;  %2276 = vmatprep.subr.bf16.mxu0 %v2383_v15 }
  0xa3   : > { %2294 = vmatprep.subr.bf16.mxu1 %v2383_v15 }
  0xa5   : > { %2277 = vmatpush3.bf16.msra.mxu0 %v2383_v15 }
  0xa6   : > { %2302 = vmatpush3.bf16.msra.mxu1 %v2383_v15  ;;  %2278 = vmatprep.subr.bf16.mxu0 %v2384_v23 }
  0xa7   : > { %2295 = vmatprep.subr.bf16.mxu1 %v2384_v23 }
  0xa9   : > { %2279 = vmatpush3.bf16.msra.mxu0 %v2384_v23 }
  0xaa   : > { %2303 = vmatpush3.bf16.msra.mxu1 %v2384_v23 }
  0xac   : > { %2281 = vmatmul.mubr.bf16.vlgmr.msra.gmra.mxu0 %v2699_v38 }
  0xad   : > { %2285 = vmatmul.mubr.bf16.vlgmr.msra.gmra.mxu1 %v1516_v26 }
  0xec   : > { %v2090_v30 = vpop.f32.mrf.mxu0 }
  0xed   : > { %v2114_v32 = vpop.f32.mrf.mxu1 }
  0xee   : > { %v460_v31 = vpop.f32.mrf.mxu0  ;;  %v582_v13 = vadd.f32 %v2114_v32, %v2090_v30 }
  0xef   : > { %v573_v34 = vpop.f32.mrf.mxu1 }
  0xf0   : > { %v2091_v33 = vpop.f32.mrf.mxu0  ;;  %v574_v59 = vadd.f32 %v573_v34, %v460_v31 }
  0xf1   : > { %v2115_v37 = vpop.f32.mrf.mxu1 }
  0xf2   : > { %v463_v35 = vpop.f32.mrf.mxu0  ;;  %v585_v23 = vadd.f32 %v2115_v37, %v2091_v33 }
  0xf3   : > { %v576_v40 = vpop.f32.mrf.mxu1 }
  0xf4   : > { %v2094_v36 = vpop.f32.mrf.mxu0  ;;  %v577_v32 = vadd.f32 %v576_v40, %v463_v35 }
  0xf6   : > { %v476_v39 = vpop.f32.mrf.mxu0 }
  0xf7   : > { %v2118_v41 = vpop.f32.mrf.mxu1 }
  0xf8   : > { %v2095_v43 = vpop.f32.mrf.mxu0  ;;  %v598_v24 = vadd.f32 %v2118_v41, %v2094_v36 }
  0xf9   : > { %v589_v44 = vpop.f32.mrf.mxu1 }
  0xfa   : > { %v479_v45 = vpop.f32.mrf.mxu0  ;;  %v590_v1 = vadd.f32 %v589_v44, %v476_v39 }
  0xfb   : > { %v2119_v47 = vpop.f32.mrf.mxu1 }
  0xfd   : > { %v592_v49 = vpop.f32.mrf.mxu1 }
  0xfe   : > { %v593_v31 = vadd.f32 %v592_v49, %v479_v45 }
 0x10c   : > { %v2138_v46 = vpop.f32.mrf.mxu0 }
 0x10d   : > { %v2162_v38 = vpop.f32.mrf.mxu1  ;;  %v748_v3 = vadd.f32 %v2138_v46, %v582_v13 }
 0x10e   : > { %v715_v48 = vpop.f32.mrf.mxu0 }
 0x10f   : > { %v865_v52 = vpop.f32.mrf.mxu1  ;;  %v746_v25 = vadd.f32 %v715_v48, %v574_v59 }
 0x110   : > { %v2139_v51 = vpop.f32.mrf.mxu0 }
 0x111   : > { %v2163_v54 = vpop.f32.mrf.mxu1  ;;  %v749_v36 = vadd.f32 %v2139_v51, %v585_v23  ;;  %v896_v46 = vadd.f32 %v865_v52, %v746_v25 }
 0x112   : > { %v718_v53 = vpop.f32.mrf.mxu0 }
 0x113   : > { %v868_v28 = vpop.f32.mrf.mxu1  ;;  %v747_v39 = vadd.f32 %v718_v53, %v577_v32  ;;  %v899_v48 = vadd.f32 %v2163_v54, %v749_v36 }
 0x114   : > { %v2142_v27 = vpop.f32.mrf.mxu0 }
 0x115   : > { %v2166_v62 = vpop.f32.mrf.mxu1  ;;  %v752_v15 = vadd.f32 %v2142_v27, %v598_v24 }
 0x116   : > { %v731_v60 = vpop.f32.mrf.mxu0 }
 0x117   : > { %v881_v0 = vpop.f32.mrf.mxu1  ;;  %v902_v34 = vadd.f32 %v2166_v62, %v752_v15 }
 0x118   : > { %v2143_v63 = vpop.f32.mrf.mxu0 }
 0x119   : > { %v2167_v4 = vpop.f32.mrf.mxu1 }
 0x11a   : > { %v734_v2 = vpop.f32.mrf.mxu0 }
 0x11b   : > { %v884_v6 = vpop.f32.mrf.mxu1  ;;  %v751_v27 = vadd.f32 %v734_v2, %v593_v31  ;;  %v1658_v31 = vld [vmem:[%s2869_s13 + $0x18] sm:$0xff] }
 0x12c   : > { %v2186_v5 = vpop.f32.mrf.mxu0 }
 0x12d   : > { %v2210_v9 = vpop.f32.mrf.mxu1 }
 0x12e   : > { %v1015_v7 = vpop.f32.mrf.mxu0 }
 0x12f   : > { %v1165_v29 = vpop.f32.mrf.mxu1  ;;  %v1046_v59 = vadd.f32 %v1015_v7, %v896_v46 }
 0x130   : > { %v2187_v10 = vpop.f32.mrf.mxu0 }
 0x131   : > { %v2211_v11 = vpop.f32.mrf.mxu1  ;;  %v1049_v40 = vadd.f32 %v2187_v10, %v899_v48  ;;  %v1196_v52 = vadd.f32 %v1165_v29, %v1046_v59  ;;  %v1656_v59 = vld [vmem:[%s2869_s13 + $0x8] sm:$0xff] }
 0x132   : > { %v1018_v55 = vpop.f32.mrf.mxu0 }
 0x133   : > { %v2857_v16 = vpop.f32.mrf.mxu1  ;;  %v1199_v54 = vadd.f32 %v2211_v11, %v1049_v40 }
 0x134   : > { %v2190_v12 = vpop.f32.mrf.mxu0  ;;  %2907 = vst [vmem:[#allocation3_spill] sm:$0xff] %v2857_v16  ;;  %v601_v16 = vadd.f32 %v2119_v47, %v2095_v43 }
 0x135   : > { %v2214_v17 = vpop.f32.mrf.mxu1  ;;  %v1052_v33 = vadd.f32 %v2190_v12, %v902_v34 }
 0x136   : > { %v1031_v56 = vpop.f32.mrf.mxu0  ;;  %v753_v13 = vadd.f32 %v2143_v63, %v601_v16 }
 0x137   : > { %v1181_v57 = vpop.f32.mrf.mxu1  ;;  %v1202_v45 = vadd.f32 %v2214_v17, %v1052_v33 }
 0x138   : > { %v2191_v58 = vpop.f32.mrf.mxu0  ;;  %v903_v43 = vadd.f32 %v2167_v4, %v753_v13 }
 0x139   : > { %v2215_v61 = vpop.f32.mrf.mxu1 }
 0x13a   : > { %v1034_v18 = vpop.f32.mrf.mxu0  ;;  %v1053_v49 = vadd.f32 %v2191_v58, %v903_v43 }
 0x13b   : > { %v1184_v42 = vpop.f32.mrf.mxu1 }
 0x14c   : > { %v2234_v50 = vpop.f32.mrf.mxu0 }
 0x14d   : > { %v2258_v19 = vpop.f32.mrf.mxu1 }
 0x14e   : > { %v1316_v20 = vpop.f32.mrf.mxu0 }
 0x14f   : > { %v2859_v21 = vpop.f32.mrf.mxu1  ;;  %v1347_v7 = vadd.f32 %v1316_v20, %v1196_v52 }
 0x150   : > { %2908 = vst [vmem:[#allocation4_spill] sm:$0xff] %v2859_v21  ;;  %v2235_v22 = vpop.f32.mrf.mxu0  ;;  %v750_v21 = vadd.f32 %v731_v60, %v590_v1  ;;  %v897_v60 = vadd.f32 %v868_v28, %v747_v39  ;;  %v1203_v28 = vadd.f32 %v2215_v61, %v1053_v49 }
 0x151   : > { %v2861_v14 = vpop.f32.mrf.mxu1 }
 0x152   : > { %2909 = vst [vmem:[#allocation5_spill] sm:$0xff] %v2861_v14  ;;  %v1319_v8 = vpop.f32.mrf.mxu0  ;;  %v898_v14 = vadd.f32 %v2162_v38, %v748_v3  ;;  %v900_v24 = vadd.f32 %v881_v0, %v750_v21  ;;  %v901_v38 = vadd.f32 %v884_v6, %v751_v27  ;;  %v1047_v53 = vadd.f32 %v1018_v55, %v897_v60  ;;  %v1661_v21 = vld [vmem:[%s2869_s13 + $0x30] sm:$0xff] }
 0x153   : > { %v2863_v26 = vpop.f32.mrf.mxu1  ;;  %v1350_v55 = vadd.f32 %v2235_v22, %v1199_v54  ;;  %v1655_v22 = vld [vmem:[%s2869_s13] sm:$0xff] }
 0x154   : > { %2910 = vst [vmem:[#allocation6_spill] sm:$0xff] %v2863_v26  ;;  %v2238_v30 = vpop.f32.mrf.mxu0  ;;  %v1048_v44 = vadd.f32 %v2186_v5, %v898_v14  ;;  %v1050_v47 = vadd.f32 %v1031_v56, %v900_v24  ;;  %v1051_v2 = vadd.f32 %v1034_v18, %v901_v38  ;;  %v1662_v24 = vld [vmem:[%s2869_s13 + $0x38] sm:$0xff] }
 0x155   : > { %v2262_v41 = vpop.f32.mrf.mxu1  ;;  %v1353_v5 = vadd.f32 %v2238_v30, %v1202_v45  ;;  %v1659_v30 = vld [vmem:[%s2869_s13 + $0x20] sm:$0xff] }
 0x156   : > { %v1332_v37 = vpop.f32.mrf.mxu0  ;;  %v1198_v35 = vadd.f32 %v2210_v9, %v1048_v44  ;;  %v1200_v0 = vadd.f32 %v1181_v57, %v1050_v47  ;;  %v2911_v9 = vld [vmem:[#allocation3_spill] sm:$0xff]  ;;  %v1201_v16 = vadd.f32 %v1184_v42, %v1051_v2  ;;  %v1657_v57 = vld [vmem:[%s2869_s13 + $0x10] sm:$0xff] }
 0x157   : > { %v1482_v26 = vpop.f32.mrf.mxu1  ;;  %v1197_v10 = vadd.f32 %v2911_v9, %v1047_v53  ;;  %v1503_v11 = vadd.f32 %v2262_v41, %v1353_v5  ;;  %v2912_v58 = vld [vmem:[#allocation4_spill] sm:$0xff] }
 0x158   : > { %v2239_v51 = vpop.f32.mrf.mxu0  ;;  %v1349_v62 = vadd.f32 %v2234_v50, %v1198_v35  ;;  %v1351_v4 = vadd.f32 %v1332_v37, %v1200_v0  ;;  %v1497_v18 = vadd.f32 %v2912_v58, %v1347_v7  ;;  %v1660_v35 = vld [vmem:[%s2869_s13 + $0x28] sm:$0xff] }
 0x159   : > { %v2263_v63 = vpop.f32.mrf.mxu1  ;;  %v1354_v17 = vadd.f32 %v2239_v51, %v1203_v28  ;;  %v1348_v50 = vadd.f32 %v1319_v8, %v1197_v10  ;;  %v2913_v1 = vld [vmem:[#allocation5_spill] sm:$0xff] }
 0x15a   : > { %v1335_v6 = vpop.f32.mrf.mxu0  ;;  %v1499_v29 = vadd.f32 %v2258_v19, %v1349_v62  ;;  %v1501_v14 = vadd.f32 %v1482_v26, %v1351_v4  ;;  %v1500_v15 = vadd.f32 %v2913_v1, %v1350_v55 }
 0x15b   : > { %v1485_v12 = vpop.f32.mrf.mxu1  ;;  %v1352_v3 = vadd.f32 %v1335_v6, %v1201_v16  ;;  %v1504_v32 = vadd.f32 %v2263_v63, %v1354_v17  ;;  %v2914_v34 = vld [vmem:[#allocation6_spill] sm:$0xff] }
 0x15c   : > { %v1498_v13 = vadd.f32 %v2914_v34, %v1348_v50 }
 0x15d   : > { %v1502_v27 = vadd.f32 %v1485_v12, %v1352_v3 }
 0x16c   : > { %v2282_v56 = vpop.f32.mrf.mxu0 }
 0x16d   : > { %v1649_v61 = vadd.f32 %v2282_v56, %v1499_v29  ;;  %v2286_v20 = vpop.f32.mrf.mxu1 }
 0x16e   : > { %v1653_v42 = vadd.f32 %v2286_v20, %v1503_v11  ;;  %v1616_v19 = vpop.f32.mrf.mxu0 }
 0x16f   : > { %v1665_v23 = vadd.f32 %v1657_v57, %v1649_v61  ;;  %v1647_v8 = vadd.f32 %v1616_v19, %v1497_v18  ;;  %v1632_v25 = vpop.f32.mrf.mxu1 }
 0x170   : > { %v1669_v26 = vadd.f32 %v1661_v21, %v1653_v42  ;;  %v1651_v36 = vadd.f32 %v1632_v25, %v1501_v14  ;;  %v2283_v41 = vpop.f32.mrf.mxu0 }
 0x171   : > { %1673 = vst [vmem:[%s2879_s21 + $0x10] sm:$0xff] %v1665_v23  ;;  %v1663_v46 = vadd.f32 %v1655_v22, %v1647_v8  ;;  %v1650_v39 = vadd.f32 %v2283_v41, %v1500_v15  ;;  %v2287_v44 = vpop.f32.mrf.mxu1 }
 0x172   : > { %1677 = vst [vmem:[%s2879_s21 + $0x30] sm:$0xff] %v1669_v26  ;;  %v1667_v33 = vadd.f32 %v1659_v30, %v1651_v36  ;;  %v1654_v37 = vadd.f32 %v2287_v44, %v1504_v32  ;;  %v1619_v48 = vpop.f32.mrf.mxu0 }
 0x173   : > { %1671 = vst [vmem:[%s2879_s21] sm:$0xff] %v1663_v46  ;;  %v1666_v43 = vadd.f32 %v1658_v31, %v1650_v39  ;;  %v1648_v47 = vadd.f32 %v1619_v48, %v1498_v13  ;;  %v1635_v60 = vpop.f32.mrf.mxu1 }
 0x174   : > { %1675 = vst [vmem:[%s2879_s21 + $0x20] sm:$0xff] %v1667_v33  ;;  %v1670_v40 = vadd.f32 %v1662_v24, %v1654_v37  ;;  %v1652_v38 = vadd.f32 %v1635_v60, %v1502_v27 }
 0x175   : > { %1674 = vst [vmem:[%s2879_s21 + $0x18] sm:$0xff] %v1666_v43  ;;  %v1664_v45 = vadd.f32 %v1656_v59, %v1648_v47 }
 0x176   : > { %1678 = vst [vmem:[%s2879_s21 + $0x38] sm:$0xff] %v1670_v40  ;;  %v1668_v49 = vadd.f32 %v1660_v35, %v1652_v38 }
 0x177   : > { %1672 = vst [vmem:[%s2879_s21 + $0x8] sm:$0xff] %v1664_v45 }
 0x178   : > { %1676 = vst [vmem:[%s2879_s21 + $0x28] sm:$0xff] %v1668_v49 }
 0x179 PF: > { %s15_s18 = sadd.s32 1, %s2391_s18  }
 0x17a   : > { %p12_p4 = scmp.ge.s32.totalorder %s15_s18, 4  }
 0x17c   :  { %14 = sbr.rel (!%p12_p4) target bundleno = 1 (0x1), region = 83 }

</bundles_post_ra>
